<compile_context>
chip_gen: v6e
topology: v6e:2x2x1
jax: 0.10.0
libtpu: 0.0.40
codegen_flags: <defaults>
</compile_context>

<pallas_src>
import jax
import jax.numpy as jnp
from jax.experimental import pallas as pl
from jax.experimental.pallas import tpu as pltpu

_LANE = 128


def _round_up(x, m):
    return (x + m - 1) // m * m


def _vmem_budget():
    """(vmem_limit_bytes, tile_budget_bytes), generation-dependent."""
    cap = 64 * 1024 * 1024
    try:
        info = pltpu.get_tpu_info()
        cap = int(getattr(info, "vmem_capacity_bytes", cap)) or cap
    except Exception:
        pass
    if cap >= 128 * 1024 * 1024:            # v5e / v6e: 128 MiB VMEM
        limit = 100 * 1024 * 1024
    else:                                    # v7x: 64 MiB per TensorCore
        limit = min(48 * 1024 * 1024, 3 * cap // 4)
    return limit, limit - 8 * 1024 * 1024


def _pick_row_tile(n_pad, hid_pad, out_pad, budget):
    """Largest row tile dividing n_pad whose worst-case per-call working set
    (double-buffered int8 A tile + output tile, resident XW/W2/bias/mask) fits
    the budget; prefer tiles giving an even grid length (megacore balance)."""
    def fits(t):
        a_tiles = 2 * t * n_pad * 1                       # int8 A row tile, 2 bufs
        dinv = 2 * t * 4
        small = 2 * (hid_pad + 2 * out_pad) * 4 + 2 * hid_pad * out_pad * 2
        call_b = (a_tiles + dinv + small
                  + 2 * n_pad * hid_pad * 2               # resident XW1s (bf16)
                  + 2 * t * out_pad * 2)                  # bf16 out tile, 2 bufs
        call_c = (a_tiles + dinv + small
                  + 2 * n_pad * out_pad * 2               # resident XW2s (bf16)
                  + 2 * t * out_pad * 4)                  # f32 out tile, 2 bufs
        return max(call_b, call_c) <= budget

    cands = [t for t in (2048, 1024, 512, 256, 128) if n_pad % t == 0 and fits(t)]
    if not cands:
        return 128
    even = [t for t in cands if (n_pad // t) % 2 == 0]
    return even[0] if even else cands[0]


# ------------------------------------------------------------------ kernels

def _xw_scale_kernel(x_ref, w_ref, dinv_ref, o_ref):
    # XW row tile pre-scaled by d^{-1/2} (folds A_hat's column normalization).
    xw = jnp.dot(x_ref[...], w_ref[...], preferred_element_type=jnp.float32)
    o_ref[...] = (xw * dinv_ref[...]).astype(o_ref.dtype)


def _prop1_fuse_kernel(a_ref, xw_ref, dinv_ref, b_ref, w2_ref, o_ref):
    # Layer-1 propagate + bias + relu, fused with layer-2's feature transform:
    #   out = d^{-1/2} * (relu(d^{-1/2} * (A_bin @ XW1s) + b1) @ W2)
    a = a_ref[...].astype(jnp.float32).astype(jnp.bfloat16)   # binary, exact
    z = jnp.dot(a, xw_ref[...], preferred_element_type=jnp.float32)
    z = z * dinv_ref[...] + b_ref[...]
    h = jnp.maximum(z, 0.0).astype(jnp.bfloat16)
    xw2 = jnp.dot(h, w2_ref[...], preferred_element_type=jnp.float32)
    o_ref[...] = (xw2 * dinv_ref[...]).astype(o_ref.dtype)


def _prop2_kernel(a_ref, xw_ref, dinv_ref, b_ref, mask_ref, o_ref):
    # Layer-2 propagate + bias + masked log_softmax (additive column mask).
    a = a_ref[...].astype(jnp.float32).astype(jnp.bfloat16)
    z = jnp.dot(a, xw_ref[...], preferred_element_type=jnp.float32)
    z = z * dinv_ref[...] + b_ref[...]
    zm = z + mask_ref[...]                 # -1e30 on padded cols (f32 epilogue)
    m = jnp.max(zm, axis=1, keepdims=True)
    s = jnp.sum(jnp.exp(zm - m), axis=1, keepdims=True)
    o_ref[...] = (z - m - jnp.log(s)).astype(o_ref.dtype)


def _fused_kernel(a_ref, dinv_ref, x_ref, w1_ref, b1_ref, w2_ref, b2_ref,
                  mask_ref, o_ref):
    # Whole 2-layer GCN in one call (small-graph fast path: everything VMEM,
    # no intermediate HBM traffic, single launch).
    a = a_ref[...].astype(jnp.float32).astype(jnp.bfloat16)
    dinv = dinv_ref[...]
    xw1 = jnp.dot(x_ref[...], w1_ref[...], preferred_element_type=jnp.float32)
    xw1 = (xw1 * dinv).astype(jnp.bfloat16)
    z1 = jnp.dot(a, xw1, preferred_element_type=jnp.float32) * dinv + b1_ref[...]
    h = jnp.maximum(z1, 0.0).astype(jnp.bfloat16)
    xw2 = jnp.dot(h, w2_ref[...], preferred_element_type=jnp.float32)
    xw2 = (xw2 * dinv).astype(jnp.bfloat16)
    z2 = jnp.dot(a, xw2, preferred_element_type=jnp.float32) * dinv + b2_ref[...]
    zm = z2 + mask_ref[...]
    m = jnp.max(zm, axis=1, keepdims=True)
    s = jnp.sum(jnp.exp(zm - m), axis=1, keepdims=True)
    o_ref[...] = (z2 - m - jnp.log(s)).astype(o_ref.dtype)


# ----------------------------------------------------------------- wrappers

def build_graph_operators(edge_index, num_nodes):
    """Padded binary (A+I) in int8 plus f32 d^{-1/2}; built ONCE and reused.

    dinv is zero on padded rows so they stay exactly zero through both layers.
    """
    # TODO(synk): edge_index -> dense (A+I) scatter stays in plain JAX glue.
    n_pad = _round_up(num_nodes, 256) if num_nodes > 128 else 128
    src, dst = edge_index[0], edge_index[1]
    adj = jnp.zeros((num_nodes, num_nodes), jnp.float32)
    adj = adj.at[src, dst].set(1.0)
    adj = adj.at[dst, src].set(1.0)                              # undirected
    adj = jnp.maximum(adj, jnp.eye(num_nodes, dtype=jnp.float32))  # self loops
    deg = jnp.sum(adj, axis=1)
    dinv = 1.0 / jnp.sqrt(jnp.maximum(deg, 1.0))
    a_bin = jnp.zeros((n_pad, n_pad), jnp.int8).at[:num_nodes, :num_nodes].set(
        adj.astype(jnp.int8))
    dinv_p = jnp.zeros((n_pad, 1), jnp.float32).at[:num_nodes, 0].set(dinv)
    return a_bin, dinv_p


def student_gnn_forward(a_bin, dinv, x, w1, b1, w2, b2, *, force_tiled=False):
    """out = log_softmax(A_hat @ (relu(A_hat @ (x@W1) + b1) @ W2) + b2, dim=1).

    a_bin: (n_pad, n_pad) int8 binary A+I (zero-padded), dinv: (n_pad, 1) f32.
    """
    n, in_c = x.shape
    hid_c = w1.shape[1]
    out_c = w2.shape[1]
    n_pad = a_bin.shape[0]
    in_pad = _round_up(in_c, _LANE)
    hid_pad = _round_up(hid_c, _LANE)
    out_pad = _round_up(out_c, _LANE)

    # Lane-dense padding of the small operands (A padding is hoisted/cached).
    x_p = jnp.zeros((n_pad, in_pad), jnp.bfloat16).at[:n, :in_c].set(
        x.astype(jnp.bfloat16))
    w1_p = jnp.zeros((in_pad, hid_pad), jnp.bfloat16).at[:in_c, :hid_c].set(
        w1.astype(jnp.bfloat16))
    w2_p = jnp.zeros((hid_pad, out_pad), jnp.bfloat16).at[:hid_c, :out_c].set(
        w2.astype(jnp.bfloat16))
    b1_p = jnp.zeros((1, hid_pad), jnp.float32).at[:, :hid_c].set(
        b1.reshape(1, -1).astype(jnp.float32))
    b2_p = jnp.zeros((1, out_pad), jnp.float32).at[:, :out_c].set(
        b2.reshape(1, -1).astype(jnp.float32))
    # Additive log_softmax mask: 0 on valid output columns, -1e30 on padding.
    mask_p = jnp.full((1, out_pad), -1e30, jnp.float32).at[:, :out_c].set(0.0)

    vmem_limit, budget = _vmem_budget()

    # Small-graph fast path: both layers in one call if it fits comfortably.
    fused_bytes = (n_pad * n_pad                                  # int8 A
                   + n_pad * in_pad * 2                           # X bf16
                   + 6 * n_pad * max(hid_pad, out_pad) * 4        # temps (f32)
                   + n_pad * out_pad * 4)                         # f32 output
    if not force_tiled and fused_bytes <= budget // 2:
        cp = pltpu.CompilerParams(dimension_semantics=("arbitrary",),
                                  vmem_limit_bytes=vmem_limit)
        full = lambda shape: pl.BlockSpec(shape, lambda i: (0, 0))
        z = pl.pallas_call(
            _fused_kernel,
            out_shape=jax.ShapeDtypeStruct((n_pad, out_pad), jnp.float32),
            grid=(1,),
            in_specs=[full((n_pad, n_pad)), full((n_pad, 1)),
                      full((n_pad, in_pad)), full((in_pad, hid_pad)),
                      full((1, hid_pad)), full((hid_pad, out_pad)),
                      full((1, out_pad)), full((1, out_pad))],
            out_specs=full((n_pad, out_pad)),
            compiler_params=cp,
        )(a_bin, dinv, x_p, w1_p, b1_p, w2_p, b2_p, mask_p)
        return z[:n, :out_c]

    # Tiled path: stream int8 A as auto-pipelined row tiles; XW / W2 / bias /
    # mask stay VMEM-resident via index_map -> (0, 0).
    # TODO(synk): very large graphs on v7x would additionally need a K grid
    # axis over A columns with an f32 accumulator so XW need not be resident.
    tile_n = _pick_row_tile(n_pad, hid_pad, out_pad, budget)
    grid = (n_pad // tile_n,)
    cp = pltpu.CompilerParams(dimension_semantics=("parallel",),
                              vmem_limit_bytes=vmem_limit)

    # (1) XW1s = d^{-1/2} * (X @ W1)
    xw1 = pl.pallas_call(
        _xw_scale_kernel,
        out_shape=jax.ShapeDtypeStruct((n_pad, hid_pad), jnp.bfloat16),
        grid=grid,
        in_specs=[pl.BlockSpec((tile_n, in_pad), lambda i: (i, 0)),
                  pl.BlockSpec((in_pad, hid_pad), lambda i: (0, 0)),
                  pl.BlockSpec((tile_n, 1), lambda i: (i, 0))],
        out_specs=pl.BlockSpec((tile_n, hid_pad), lambda i: (i, 0)),
        compiler_params=cp,
    )(x_p, w1_p, dinv)

    # (2) fused propagate-1 + layer-2 feature transform (H never hits HBM).
    xw2 = pl.pallas_call(
        _prop1_fuse_kernel,
        out_shape=jax.ShapeDtypeStruct((n_pad, out_pad), jnp.bfloat16),
        grid=grid,
        in_specs=[pl.BlockSpec((tile_n, n_pad), lambda i: (i, 0)),
                  pl.BlockSpec((n_pad, hid_pad), lambda i: (0, 0)),
                  pl.BlockSpec((tile_n, 1), lambda i: (i, 0)),
                  pl.BlockSpec((1, hid_pad), lambda i: (0, 0)),
                  pl.BlockSpec((hid_pad, out_pad), lambda i: (0, 0))],
        out_specs=pl.BlockSpec((tile_n, out_pad), lambda i: (i, 0)),
        compiler_params=cp,
    )(a_bin, xw1, dinv, b1_p, w2_p)

    # (3) propagate-2 + bias + log_softmax.
    z = pl.pallas_call(
        _prop2_kernel,
        out_shape=jax.ShapeDtypeStruct((n_pad, out_pad), jnp.float32),
        grid=grid,
        in_specs=[pl.BlockSpec((tile_n, n_pad), lambda i: (i, 0)),
                  pl.BlockSpec((n_pad, out_pad), lambda i: (0, 0)),
                  pl.BlockSpec((tile_n, 1), lambda i: (i, 0)),
                  pl.BlockSpec((1, out_pad), lambda i: (0, 0)),
                  pl.BlockSpec((1, out_pad), lambda i: (0, 0))],
        out_specs=pl.BlockSpec((tile_n, out_pad), lambda i: (i, 0)),
        compiler_params=cp,
    )(a_bin, xw2, dinv, b2_p, mask_p)

    return z[:n, :out_c]


if __name__ == "__main__":
    key = jax.random.PRNGKey(0)
    k_graph, k_x, k_w1, k_b1, k_w2, k_b2 = jax.random.split(key, 6)

    num_nodes = 300            # -> padded to 512 nodes (multiple of 256)
    in_channels = 16
    hidden_channels = 32
    out_channels = 8

    # Deterministic Erdos-Renyi-like graph (p=0.1) over the upper triangle.
    probs = jax.random.uniform(k_graph, (num_nodes, num_nodes))
    upper = jnp.triu(jnp.ones((num_nodes, num_nodes), bool), k=1)
    edge_mask = (probs < 0.1) & upper
    src, dst = jnp.nonzero(edge_mask, size=num_nodes * num_nodes, fill_value=0)
    num_edges = int(jnp.sum(edge_mask))
    edge_index = jnp.stack([src[:num_edges], dst[:num_edges]]).astype(jnp.int32)

    # Graph operators built once (hoisted out of the per-forward path).
    a_bin, dinv = build_graph_operators(edge_index, num_nodes)

    # Node features and deterministic GCN parameters (glorot-ish scaling).
    x = jax.random.normal(k_x, (num_nodes, in_channels), jnp.float32)
    w1 = jax.random.normal(k_w1, (in_channels, hidden_channels), jnp.float32) * (
        1.0 / jnp.sqrt(in_channels))
    b1 = jax.random.normal(k_b1, (1, hidden_channels), jnp.float32) * 0.01
    w2 = jax.random.normal(k_w2, (hidden_channels, out_channels), jnp.float32) * (
        1.0 / jnp.sqrt(hidden_channels))
    b2 = jax.random.normal(k_b2, (1, out_channels), jnp.float32) * 0.01

    # Exercise both the fused single-call fast path and the tiled path.
    out_fused = student_gnn_forward(a_bin, dinv, x, w1, b1, w2, b2)
    out_tiled = student_gnn_forward(a_bin, dinv, x, w1, b1, w2, b2,
                                    force_tiled=True)
    jax.block_until_ready((out_fused, out_tiled))

    assert out_fused.shape == (num_nodes, out_channels)
    assert out_tiled.shape == (num_nodes, out_channels)

    # Pure-JAX f32 reference (dense A_hat).
    adj = jnp.zeros((num_nodes, num_nodes), jnp.float32)
    adj = adj.at[edge_index[0], edge_index[1]].set(1.0)
    adj = adj.at[edge_index[1], edge_index[0]].set(1.0)
    adj = adj + jnp.eye(num_nodes, dtype=jnp.float32)
    dref = 1.0 / jnp.sqrt(jnp.sum(adj, axis=1))
    a_hat = dref[:, None] * adj * dref[None, :]
    h_ref = jax.nn.relu(a_hat @ (x @ w1) + b1)
    ref = jax.nn.log_softmax(a_hat @ (h_ref @ w2) + b2, axis=1)

    for out in (out_fused, out_tiled):
        # log_softmax rows must exponentiate-sum to ~1 (epilogue is f32).
        row_sums = jnp.exp(out).sum(axis=1)
        assert bool(jnp.all(jnp.abs(row_sums - 1.0) < 1e-3))
        # Loose tol: XW operands are bf16 on the MXU (A itself is now exact).
        assert bool(jnp.max(jnp.abs(out - ref)) < 0.1)

    print("KERNEL_OK")
</pallas_src>

<mosaic_0001>
module attributes {stable_mosaic.version = 11 : i64} {
  func.func @_fused_kernel(%arg0: i32, %arg1: memref<512x512xi8, #tpu.memory_space<vmem>>, %arg2: memref<512x1xf32, #tpu.memory_space<vmem>>, %arg3: memref<512x128xbf16, #tpu.memory_space<vmem>>, %arg4: memref<128x128xbf16, #tpu.memory_space<vmem>>, %arg5: memref<1x128xf32, #tpu.memory_space<vmem>>, %arg6: memref<128x128xbf16, #tpu.memory_space<vmem>>, %arg7: memref<1x128xf32, #tpu.memory_space<vmem>>, %arg8: memref<1x128xf32, #tpu.memory_space<vmem>>, %arg9: memref<512x128xf32, #tpu.memory_space<vmem>>) attributes {dimension_semantics = [#tpu.dimension_semantics<arbitrary>], iteration_bounds = array<i64: 1>, scalar_prefetch = 0 : i64, scratch_operands = 0 : i64, tpu.core_type = #tpu.core_type<tc>, window_params = [{pipeline_mode = #tpu.pipeline_mode<synchronous>, transform_indices = @transform_0, window_bounds = array<i64: 512, 512>}, {pipeline_mode = #tpu.pipeline_mode<synchronous>, transform_indices = @transform_1, window_bounds = array<i64: 512, 1>}, {pipeline_mode = #tpu.pipeline_mode<synchronous>, transform_indices = @transform_2, window_bounds = array<i64: 512, 128>}, {pipeline_mode = #tpu.pipeline_mode<synchronous>, transform_indices = @transform_3, window_bounds = array<i64: 128, 128>}, {pipeline_mode = #tpu.pipeline_mode<synchronous>, transform_indices = @transform_4, window_bounds = array<i64: 1, 128>}, {pipeline_mode = #tpu.pipeline_mode<synchronous>, transform_indices = @transform_5, window_bounds = array<i64: 128, 128>}, {pipeline_mode = #tpu.pipeline_mode<synchronous>, transform_indices = @transform_6, window_bounds = array<i64: 1, 128>}, {pipeline_mode = #tpu.pipeline_mode<synchronous>, transform_indices = @transform_7, window_bounds = array<i64: 1, 128>}, {pipeline_mode = #tpu.pipeline_mode<synchronous>, transform_indices = @transform_8, window_bounds = array<i64: 512, 128>}]} {
    %c0 = arith.constant 0 : index
    %c0_0 = arith.constant 0 : index
    %0 = vector.load %arg1[%c0, %c0_0] : memref<512x512xi8, #tpu.memory_space<vmem>>, vector<512x512xi8>
    %1 = arith.sitofp %0 : vector<512x512xi8> to vector<512x512xf32>
    %2 = arith.truncf %1 : vector<512x512xf32> to vector<512x512xbf16>
    %c0_1 = arith.constant 0 : index
    %c0_2 = arith.constant 0 : index
    %3 = vector.load %arg2[%c0_1, %c0_2] : memref<512x1xf32, #tpu.memory_space<vmem>>, vector<512x1xf32>
    %c0_3 = arith.constant 0 : index
    %c0_4 = arith.constant 0 : index
    %4 = vector.load %arg3[%c0_3, %c0_4] : memref<512x128xbf16, #tpu.memory_space<vmem>>, vector<512x128xbf16>
    %c0_5 = arith.constant 0 : index
    %c0_6 = arith.constant 0 : index
    %5 = vector.load %arg4[%c0_5, %c0_6] : memref<128x128xbf16, #tpu.memory_space<vmem>>, vector<128x128xbf16>
    %cst = arith.constant dense<0.000000e+00> : vector<512x128xf32>
    %6 = tpu.matmul %4, %5, %cst {dimension_numbers = #tpu.dot_dimension_numbers<[1], [0], [0], [1], [0, 0, 1, 1], [], []>} : vector<512x128xbf16>, vector<128x128xbf16>, vector<512x128xf32> -> vector<512x128xf32>
    %7 = vector.broadcast %3 : vector<512x1xf32> to vector<512x128xf32>
    %8 = arith.mulf %6, %7 : vector<512x128xf32>
    %9 = arith.truncf %8 : vector<512x128xf32> to vector<512x128xbf16>
    %cst_7 = arith.constant dense<0.000000e+00> : vector<512x128xf32>
    %10 = tpu.matmul %2, %9, %cst_7 {dimension_numbers = #tpu.dot_dimension_numbers<[1], [0], [0], [1], [0, 0, 1, 1], [], []>} : vector<512x512xbf16>, vector<512x128xbf16>, vector<512x128xf32> -> vector<512x128xf32>
    %11 = vector.broadcast %3 : vector<512x1xf32> to vector<512x128xf32>
    %12 = arith.mulf %10, %11 : vector<512x128xf32>
    %c0_8 = arith.constant 0 : index
    %c0_9 = arith.constant 0 : index
    %13 = vector.load %arg5[%c0_8, %c0_9] : memref<1x128xf32, #tpu.memory_space<vmem>>, vector<1x128xf32>
    %14 = vector.broadcast %13 : vector<1x128xf32> to vector<512x128xf32>
    %15 = arith.addf %12, %14 : vector<512x128xf32>
    %cst_10 = arith.constant 0.000000e+00 : f32
    %16 = vector.broadcast %cst_10 : f32 to vector<512x128xf32>
    %17 = arith.maximumf %15, %16 : vector<512x128xf32>
    %18 = arith.truncf %17 : vector<512x128xf32> to vector<512x128xbf16>
    %c0_11 = arith.constant 0 : index
    %c0_12 = arith.constant 0 : index
    %19 = vector.load %arg6[%c0_11, %c0_12] : memref<128x128xbf16, #tpu.memory_space<vmem>>, vector<128x128xbf16>
    %cst_13 = arith.constant dense<0.000000e+00> : vector<512x128xf32>
    %20 = tpu.matmul %18, %19, %cst_13 {dimension_numbers = #tpu.dot_dimension_numbers<[1], [0], [0], [1], [0, 0, 1, 1], [], []>} : vector<512x128xbf16>, vector<128x128xbf16>, vector<512x128xf32> -> vector<512x128xf32>
    %21 = vector.broadcast %3 : vector<512x1xf32> to vector<512x128xf32>
    %22 = arith.mulf %20, %21 : vector<512x128xf32>
    %23 = arith.truncf %22 : vector<512x128xf32> to vector<512x128xbf16>
    %cst_14 = arith.constant dense<0.000000e+00> : vector<512x128xf32>
    %24 = tpu.matmul %2, %23, %cst_14 {dimension_numbers = #tpu.dot_dimension_numbers<[1], [0], [0], [1], [0, 0, 1, 1], [], []>} : vector<512x512xbf16>, vector<512x128xbf16>, vector<512x128xf32> -> vector<512x128xf32>
    %25 = vector.broadcast %3 : vector<512x1xf32> to vector<512x128xf32>
    %26 = arith.mulf %24, %25 : vector<512x128xf32>
    %c0_15 = arith.constant 0 : index
    %c0_16 = arith.constant 0 : index
    %27 = vector.load %arg7[%c0_15, %c0_16] : memref<1x128xf32, #tpu.memory_space<vmem>>, vector<1x128xf32>
    %28 = vector.broadcast %27 : vector<1x128xf32> to vector<512x128xf32>
    %29 = arith.addf %26, %28 : vector<512x128xf32>
    %c0_17 = arith.constant 0 : index
    %c0_18 = arith.constant 0 : index
    %30 = vector.load %arg8[%c0_17, %c0_18] : memref<1x128xf32, #tpu.memory_space<vmem>>, vector<1x128xf32>
    %31 = vector.broadcast %30 : vector<1x128xf32> to vector<512x128xf32>
    %32 = arith.addf %29, %31 : vector<512x128xf32>
    %cst_19 = arith.constant dense<0xFF800000> : vector<512xf32>
    %33 = vector.multi_reduction <maximumf>, %32, %cst_19 [1] : vector<512x128xf32> to vector<512xf32>
    %34 = vector.shape_cast %33 : vector<512xf32> to vector<512x1xf32>
    %35 = vector.broadcast %34 : vector<512x1xf32> to vector<512x128xf32>
    %36 = arith.subf %32, %35 : vector<512x128xf32>
    %37 = math.exp %36 : vector<512x128xf32>
    %cst_20 = arith.constant dense<0.000000e+00> : vector<512xf32>
    %38 = vector.multi_reduction <add>, %37, %cst_20 [1] : vector<512x128xf32> to vector<512xf32>
    %39 = vector.shape_cast %38 : vector<512xf32> to vector<512x1xf32>
    %40 = vector.broadcast %34 : vector<512x1xf32> to vector<512x128xf32>
    %41 = arith.subf %29, %40 : vector<512x128xf32>
    %42 = math.log %39 : vector<512x1xf32>
    %43 = vector.broadcast %42 : vector<512x1xf32> to vector<512x128xf32>
    %44 = arith.subf %41, %43 : vector<512x128xf32>
    %c0_21 = arith.constant 0 : index
    %c0_22 = arith.constant 0 : index
    %45 = vector.load %arg9[%c0_21, %c0_22] : memref<512x128xf32, #tpu.memory_space<vmem>>, vector<512x128xf32>
    tpu.vector_store %arg9[%c0_21, %c0_22], %44 {strides = array<i32>} : memref<512x128xf32, #tpu.memory_space<vmem>>, vector<512x128xf32>,
    return
  }
  func.func @transform_0(%arg0: i32) -> (i32, i32) {
    %c0_i32 = arith.constant 0 : i32
    %c0_i32_0 = arith.constant 0 : i32
    %c0_i32_1 = arith.constant 0 : i32
    return %c0_i32, %c0_i32_0 : i32, i32
  }
  func.func @transform_1(%arg0: i32) -> (i32, i32) {
    %c0_i32 = arith.constant 0 : i32
    %c0_i32_0 = arith.constant 0 : i32
    %c0_i32_1 = arith.constant 0 : i32
    return %c0_i32, %c0_i32_0 : i32, i32
  }
  func.func @transform_2(%arg0: i32) -> (i32, i32) {
    %c0_i32 = arith.constant 0 : i32
    %c0_i32_0 = arith.constant 0 : i32
    %c0_i32_1 = arith.constant 0 : i32
    return %c0_i32, %c0_i32_0 : i32, i32
  }
  func.func @transform_3(%arg0: i32) -> (i32, i32) {
    %c0_i32 = arith.constant 0 : i32
    %c0_i32_0 = arith.constant 0 : i32
    %c0_i32_1 = arith.constant 0 : i32
    return %c0_i32, %c0_i32_0 : i32, i32
  }
  func.func @transform_4(%arg0: i32) -> (i32, i32) {
    %c0_i32 = arith.constant 0 : i32
    %c0_i32_0 = arith.constant 0 : i32
    %c0_i32_1 = arith.constant 0 : i32
    return %c0_i32, %c0_i32_0 : i32, i32
  }
  func.func @transform_5(%arg0: i32) -> (i32, i32) {
    %c0_i32 = arith.constant 0 : i32
    %c0_i32_0 = arith.constant 0 : i32
    %c0_i32_1 = arith.constant 0 : i32
    return %c0_i32, %c0_i32_0 : i32, i32
  }
  func.func @transform_6(%arg0: i32) -> (i32, i32) {
    %c0_i32 = arith.constant 0 : i32
    %c0_i32_0 = arith.constant 0 : i32
    %c0_i32_1 = arith.constant 0 : i32
    return %c0_i32, %c0_i32_0 : i32, i32
  }
  func.func @transform_7(%arg0: i32) -> (i32, i32) {
    %c0_i32 = arith.constant 0 : i32
    %c0_i32_0 = arith.constant 0 : i32
    %c0_i32_1 = arith.constant 0 : i32
    return %c0_i32, %c0_i32_0 : i32, i32
  }
  func.func @transform_8(%arg0: i32) -> (i32, i32) {
    %c0_i32 = arith.constant 0 : i32
    %c0_i32_0 = arith.constant 0 : i32
    %c0_i32_1 = arith.constant 0 : i32
    return %c0_i32, %c0_i32_0 : i32, i32
  }
}

</mosaic_0001>

<bundles_post_ra>
// kernel: tpu_custom_call.1
= control target key start
LH: loop header
LB: loop body
LE: loop exit
PB: predicated region body
PF: predicated region fallthrough
CT: control target
= control target key end

     0   :  { %13 = vsyncpa [#allocation3], 0  ;;  %s8098_s0 = inlined_call_operand.vmem [shape: s8[512,512], index: 0, kind: input, shape index: {}]   ;;  %s8099_s1 = inlined_call_operand.vmem [shape: f32[512,1], index: 1, kind: input, shape index: {}]   ;;  %s8100_s2 = inlined_call_operand.hbm [shape: bf16[512,128], index: 2, kind: input, shape index: {}]   ;;  %s8101_s3 = inlined_call_operand.hbm [shape: bf16[128,128], index: 3, kind: input, shape index: {}]   ;;  %s8102_s4 = inlined_call_operand.vmem [shape: f32[1,128], index: 4, kind: input, shape index: {}]   ;;  %s8103_s5 = inlined_call_operand.hbm [shape: bf16[128,128], index: 5, kind: input, shape index: {}]   ;;  %s8104_s6 = inlined_call_operand.vmem [shape: f32[1,128], index: 6, kind: input, shape index: {}]   ;;  %s8105_s7 = inlined_call_operand.vmem [shape: f32[1,128], index: 7, kind: input, shape index: {}]   ;;  %s8106_s8 = inlined_call_operand.hbm [shape: f32[512,128], index: 8, kind: output, shape index: {}]  }
   0x1   :  { %14 = vsyncpa [#allocation6], 0 }
   0x2   :  { %15 = vsyncpa [#allocation4], 0  ;;  %s4908_s27 = smov [#allocation5]   ;;  %s4909_s29 = smov [#allocation2]  }
   0x3   :  { %s37_s28 = sshll.u32 %s4908_s27, 4  ;;  %s25_s30 = sshll.u32 %s4909_s29, 4  ;;  %s38_s28 = int_to_ptr.vmem [resolvable:$true] %s37_s28  ;;  %s26_s30 = int_to_ptr.vmem [resolvable:$true] %s25_s30 }
   0x4   :  { %s4830_s9 = scalar_lea.vmem %s38_s28, 1024  ;;  %p4835_p1 = scmp.lt.s32.totalorder %s38_s28, %s38_s28 }
   0x5   :  { %p4831_p0 = scmp.ne.s32.totalorder %s38_s28, %s4830_s9  ;;  %p4836_p2 = scmp.lt.s32.totalorder %s4830_s9, %s4830_s9 }
   0x7   :  { %p4837_p3 = por %p4836_p2, %p4835_p1 }
   0x9   :  { %p4838_p4 = pnand %p4837_p3, %p4831_p0 }
   0xb   :  { %4841 = shalt.err (!%p4838_p4)
}
   0xc   :  { %s4910_s10 = smov 64   ;;  %s4911_s11 = smov 4  }
   0xd   :  { %43 = dma.hbm_to_vmem [thread:$0]  %s8101_s3, 1024, %s38_s28, [#allocation6], %s4910_s10, %s4910_s10, %s4911_s11  }
   0xe   :  { %s4850_s14 = scalar_lea.vmem %s26_s30, 4096  ;;  %p4855_p6 = scmp.lt.s32.totalorder %s26_s30, %s26_s30 }
   0xf   :  { %p4851_p5 = scmp.ne.s32.totalorder %s26_s30, %s4850_s14  ;;  %p4856_p7 = scmp.lt.s32.totalorder %s4850_s14, %s4850_s14 }
  0x11   :  { %p4857_p8 = por %p4856_p7, %p4855_p6 }
  0x13   :  { %p4858_p9 = pnand %p4857_p8, %p4851_p5 }
  0x15   :  { %4861 = shalt.err (!%p4858_p9)
}
  0x16   :  { %31 = dma.hbm_to_vmem [thread:$0]  %s8100_s2, 4096, %s26_s30, [#allocation3], %s4910_s10, %s4910_s10, %s4911_s11  }
  0x17   :  { %s4912_s17 = smov [#allocation7]  }
  0x18   :  { %s51_s18 = sshll.u32 %s4912_s17, 4  ;;  %s52_s18 = int_to_ptr.vmem [resolvable:$true] %s51_s18 }
  0x19   :  { %s4870_s19 = scalar_lea.vmem %s52_s18, 1024  ;;  %p4875_p11 = scmp.lt.s32.totalorder %s52_s18, %s52_s18 }
  0x1a   :  { %p4871_p10 = scmp.ne.s32.totalorder %s52_s18, %s4870_s19  ;;  %p4876_p12 = scmp.lt.s32.totalorder %s4870_s19, %s4870_s19 }
  0x1c   :  { %p4877_p13 = por %p4876_p12, %p4875_p11 }
  0x1e   :  { %p4878_p0 = pnand %p4877_p13, %p4871_p10 }
  0x20   :  { %4881 = shalt.err (!%p4878_p0)
}
  0x21   :  { %57 = dma.hbm_to_vmem [thread:$0]  %s8103_s5, 1024, %s52_s18, [#allocation6], %s4910_s10, %s4910_s10, %s4911_s11  }
  0x22   :  { %4902 = dma.done.wait [#allocation3], 4096  }
  0x23   :  { %4903 = vsyncadd [#allocation3], 4294963200 }
  0x24   :  { %4904 = dma.done.wait [#allocation6], 2048  }
  0x25   :  { %4905 = vsyncadd [#allocation6], 4294965248  ;;  %v8108_v0 = vmov 0   ;;  %v310_v1 = vld [vmem:[%s8099_s1 + $0x170] sm:$0xff]  ;;  %v4515_v3 = vld [vmem:[#allocation5 + $0x38] sm:$0xff]  }
  0x26   :  { %4514 = vset.pattern.permute.xlu1 %v8108_v0  ;;  %4513 = vset.pattern.permute.xlu0 %v8108_v0  ;;  %v278_v2 = vld [vmem:[%s8099_s1 + $0x70] sm:$0xff]  ;;  %v311_v4 = vld [vmem:[%s8099_s1 + $0x178] sm:$0xff]  ;;  %v277_v7 = vld [vmem:[%s8099_s1 + $0x68] sm:$0xff] }
  0x27   :  { %1353 = vmatprep.subr.bf16.mxu1 %v8108_v0  ;;  %1169 = vperm.xlu1 %4514, %v310_v1   ;;  %v279_v5 = vld [vmem:[%s8099_s1 + $0x78] sm:$0xff]  ;;  %v4516_v6 = vld [vmem:[#allocation5 + $0x30] sm:$0xff]   ;;  %v276_v8 = vld [vmem:[%s8099_s1 + $0x60] sm:$0xff] }
  0x28   :  { %1009 = vperm.xlu0 %4513, %v278_v2   ;;  %4312 = vmatprep.subr.bf16.mxu0 %v4515_v3  ;;  %v4517_v9 = vld [vmem:[#allocation5 + $0x28] sm:$0xff]   ;;  %v308_v11 = vld [vmem:[%s8099_s1 + $0x160] sm:$0xff]  ;;  %v275_v13 = vld [vmem:[%s8099_s1 + $0x58] sm:$0xff] }
  0x29   :  { %4313 = vmatpush3.bf16.msra.mxu0 %v4515_v3  ;;  %v309_v10 = vld [vmem:[%s8099_s1 + $0x168] sm:$0xff]  ;;  %v4518_v12 = vld [vmem:[#allocation5 + $0x20] sm:$0xff]   ;;  %v274_v14 = vld [vmem:[%s8099_s1 + $0x50] sm:$0xff] }
  0x2a   :  { %4314 = vmatprep.subr.bf16.mxu0 %v4516_v6  ;;  %v4519_v15 = vld [vmem:[#allocation5 + $0x18] sm:$0xff]   ;;  %v4523_v16 = vld [vmem:[#allocation2] sm:$0xff]   ;;  %v306_v18 = vld [vmem:[%s8099_s1 + $0x150] sm:$0xff] }
  0x2b   :  { %1174 = vperm.xlu1 %4514, %v311_v4   ;;  %v307_v17 = vld [vmem:[%s8099_s1 + $0x158] sm:$0xff]  ;;  %4328 = vmatprep.mubr.bf16.mxu0 %v4523_v16  ;;  %v4520_v19 = vld [vmem:[#allocation5 + $0x10] sm:$0xff]   ;;  %v273_v20 = vld [vmem:[%s8099_s1 + $0x48] sm:$0xff] }
  0x2c   :  { %1014 = vperm.xlu0 %4513, %v279_v5   ;;  %v272_v21 = vld [vmem:[%s8099_s1 + $0x40] sm:$0xff]  ;;  %v4521_v22 = vld [vmem:[#allocation5 + $0x8] sm:$0xff]   ;;  %v271_v26 = vld [vmem:[%s8099_s1 + $0x38] sm:$0xff] }
  0x2d   :  { %4315 = vmatpush3.bf16.msra.mxu0 %v4516_v6  ;;  %v305_v23 = vld [vmem:[%s8099_s1 + $0x148] sm:$0xff]  ;;  %v304_v24 = vld [vmem:[%s8099_s1 + $0x140] sm:$0xff]  ;;  %v270_v27 = vld [vmem:[%s8099_s1 + $0x30] sm:$0xff] }
  0x2e   :  { %4316 = vmatprep.subr.bf16.mxu0 %v4517_v9  ;;  %v4522_v25 = vld [vmem:[#allocation5] sm:$0xff]   ;;  %v4524_v28 = vld [vmem:[#allocation2 + $0x8] sm:$0xff]   ;;  %v4525_v29 = vld [vmem:[#allocation2 + $0x10] sm:$0xff]  }
  0x2f   :  { %1004 = vperm.xlu1 %4514, %v277_v7   ;;  %v303_v30 = vld [vmem:[%s8099_s1 + $0x138] sm:$0xff]  ;;  %v302_v31 = vld [vmem:[%s8099_s1 + $0x130] sm:$0xff]  ;;  %v269_v32 = vld [vmem:[%s8099_s1 + $0x28] sm:$0xff] }
  0x30   :  { %999 = vperm.xlu0 %4513, %v276_v8   ;;  %v268_v33 = vld [vmem:[%s8099_s1 + $0x20] sm:$0xff]  ;;  %v4526_v34 = vld [vmem:[#allocation2 + $0x18] sm:$0xff]   ;;  %v301_v36 = vld [vmem:[%s8099_s1 + $0x128] sm:$0xff] }
  0x31   :  { %4317 = vmatpush3.bf16.msra.mxu0 %v4517_v9  ;;  %v4527_v35 = vld [vmem:[#allocation2 + $0x20] sm:$0xff]   ;;  %v267_v38 = vld [vmem:[%s8099_s1 + $0x18] sm:$0xff]  ;;  %v266_v39 = vld [vmem:[%s8099_s1 + $0x10] sm:$0xff] }
  0x32   :  { %4318 = vmatprep.subr.bf16.mxu0 %v4518_v12  ;;  %v300_v37 = vld [vmem:[%s8099_s1 + $0x120] sm:$0xff]  ;;  %v4528_v40 = vld [vmem:[#allocation2 + $0x28] sm:$0xff]   ;;  %v4529_v41 = vld [vmem:[#allocation2 + $0x30] sm:$0xff]  }
  0x33   :  { %1164 = vperm.xlu1 %4514, %v309_v10   ;;  %v299_v42 = vld [vmem:[%s8099_s1 + $0x118] sm:$0xff]  ;;  %v298_v43 = vld [vmem:[%s8099_s1 + $0x110] sm:$0xff]  ;;  %v265_v44 = vld [vmem:[%s8099_s1 + $0x8] sm:$0xff] }
  0x34   :  { %1159 = vperm.xlu0 %4513, %v308_v11   ;;  %v264_v45 = vld [vmem:[%s8099_s1] sm:$0xff]  ;;  %v4530_v46 = vld [vmem:[#allocation2 + $0x38] sm:$0xff]   ;;  %v297_v48 = vld [vmem:[%s8099_s1 + $0x108] sm:$0xff] }
  0x35   :  { %4319 = vmatpush3.bf16.msra.mxu0 %v4518_v12  ;;  %v4531_v47 = vld [vmem:[#allocation2 + $0x40] sm:$0xff]   ;;  %v295_v50 = vld [vmem:[%s8099_s1 + $0xf8] sm:$0xff]  ;;  %v294_v51 = vld [vmem:[%s8099_s1 + $0xf0] sm:$0xff] }
  0x36   :  { %4320 = vmatprep.subr.bf16.mxu0 %v4519_v15  ;;  %v296_v49 = vld [vmem:[%s8099_s1 + $0x100] sm:$0xff]  ;;  %v4532_v52 = vld [vmem:[#allocation2 + $0x48] sm:$0xff]   ;;  %v4533_v53 = vld [vmem:[#allocation2 + $0x50] sm:$0xff]  }
  0x37   :  { %994 = vperm.xlu1 %4514, %v275_v13   ;;  %v327_v54 = vld [vmem:[%s8099_s1 + $0x1f8] sm:$0xff]  ;;  %v326_v55 = vld [vmem:[%s8099_s1 + $0x1f0] sm:$0xff]  ;;  %v293_v56 = vld [vmem:[%s8099_s1 + $0xe8] sm:$0xff] }
  0x38   :  { %989 = vperm.xlu0 %4513, %v274_v14   ;;  %v292_v57 = vld [vmem:[%s8099_s1 + $0xe0] sm:$0xff]  ;;  %v4534_v58 = vld [vmem:[#allocation2 + $0x58] sm:$0xff]   ;;  %v325_v60 = vld [vmem:[%s8099_s1 + $0x1e8] sm:$0xff] }
  0x39   :  { %4321 = vmatpush3.bf16.msra.mxu0 %v4519_v15  ;;  %v4535_v59 = vld [vmem:[#allocation2 + $0x60] sm:$0xff]   ;;  %v291_v62 = vld [vmem:[%s8099_s1 + $0xd8] sm:$0xff]  ;;  %v290_v63 = vld [vmem:[%s8099_s1 + $0xd0] sm:$0xff] }
  0x3a   :  { %4322 = vmatprep.subr.bf16.mxu0 %v4520_v19  ;;  %v324_v61 = vld [vmem:[%s8099_s1 + $0x1e0] sm:$0xff]  ;;  %v4536_v1 = vld [vmem:[#allocation2 + $0x68] sm:$0xff]   ;;  %v4537_v2 = vld [vmem:[#allocation2 + $0x70] sm:$0xff]  }
  0x3b   :  { %1154 = vperm.xlu1 %4514, %v307_v17   ;;  %v323_v3 = vld [vmem:[%s8099_s1 + $0x1d8] sm:$0xff]  ;;  %v322_v4 = vld [vmem:[%s8099_s1 + $0x1d0] sm:$0xff]  ;;  %v289_v5 = vld [vmem:[%s8099_s1 + $0xc8] sm:$0xff] }
  0x3c   :  { %1149 = vperm.xlu0 %4513, %v306_v18   ;;  %v288_v6 = vld [vmem:[%s8099_s1 + $0xc0] sm:$0xff]  ;;  %v4538_v7 = vld [vmem:[#allocation2 + $0x78] sm:$0xff]   ;;  %v321_v9 = vld [vmem:[%s8099_s1 + $0x1c8] sm:$0xff] }
  0x3d   :  { %4323 = vmatpush3.bf16.msra.mxu0 %v4520_v19  ;;  %v4539_v8 = vld [vmem:[#allocation2 + $0x80] sm:$0xff]   ;;  %v287_v11 = vld [vmem:[%s8099_s1 + $0xb8] sm:$0xff]  ;;  %v286_v12 = vld [vmem:[%s8099_s1 + $0xb0] sm:$0xff] }
  0x3e   :  { %4324 = vmatprep.subr.bf16.mxu0 %v4521_v22  ;;  %v320_v10 = vld [vmem:[%s8099_s1 + $0x1c0] sm:$0xff]  ;;  %v4540_v13 = vld [vmem:[#allocation2 + $0x88] sm:$0xff]   ;;  %v4541_v14 = vld [vmem:[#allocation2 + $0x90] sm:$0xff]  }
  0x3f   :  { %984 = vperm.xlu1 %4514, %v273_v20   ;;  %v319_v15 = vld [vmem:[%s8099_s1 + $0x1b8] sm:$0xff]  ;;  %v318_v16 = vld [vmem:[%s8099_s1 + $0x1b0] sm:$0xff]  ;;  %v285_v17 = vld [vmem:[%s8099_s1 + $0xa8] sm:$0xff] }
  0x40   :  { %979 = vperm.xlu0 %4513, %v272_v21   ;;  %v284_v18 = vld [vmem:[%s8099_s1 + $0xa0] sm:$0xff]  ;;  %v4542_v19 = vld [vmem:[#allocation2 + $0x98] sm:$0xff]   ;;  %v317_v21 = vld [vmem:[%s8099_s1 + $0x1a8] sm:$0xff] }
  0x41   :  { %4325 = vmatpush3.bf16.msra.mxu0 %v4521_v22  ;;  %v4543_v20 = vld [vmem:[#allocation2 + $0xa0] sm:$0xff]  }
  0x42   :  { %4326 = vmatprep.subr.bf16.mxu0 %v4522_v25  ;;  %v316_v22 = vld [vmem:[%s8099_s1 + $0x1a0] sm:$0xff] }
  0x43   :  { %1144 = vperm.xlu1 %4514, %v305_v23   ;;  %v283_v23 = vld [vmem:[%s8099_s1 + $0x98] sm:$0xff] }
  0x44   :  { %1139 = vperm.xlu0 %4513, %v304_v24   ;;  %v282_v24 = vld [vmem:[%s8099_s1 + $0x90] sm:$0xff] }
  0x45   :  { %4327 = vmatpush3.bf16.msra.mxu0 %v4522_v25  ;;  %v4544_v25 = vld [vmem:[#allocation2 + $0xa8] sm:$0xff]  }
  0x46   :  { %1642 = vmatprep.subr.bf16.mxu0 %v8108_v0 }
  0x47   :  { %974 = vperm.xlu1 %4514, %v271_v26   ;;  %v4545_v26 = vld [vmem:[#allocation2 + $0xb0] sm:$0xff]  }
  0x48   :  { %969 = vperm.xlu0 %4513, %v270_v27   ;;  %4329 = vmatmul.mubr.bf16.vlgmr.msra.gmra.mxu0 %v4524_v28  ;;  %v315_v27 = vld [vmem:[%s8099_s1 + $0x198] sm:$0xff]  ;;  %v314_v28 = vld [vmem:[%s8099_s1 + $0x190] sm:$0xff] }
  0x49   :  { %4332 = vmatprep.mubr.bf16.mxu0 %v4525_v29  ;;  %v281_v29 = vld [vmem:[%s8099_s1 + $0x88] sm:$0xff] }
  0x4b   :  { %1134 = vperm.xlu1 %4514, %v303_v30   ;;  %v280_v30 = vld [vmem:[%s8099_s1 + $0x80] sm:$0xff] }
  0x4c   :  { %1129 = vperm.xlu0 %4513, %v302_v31   ;;  %v4546_v31 = vld [vmem:[#allocation2 + $0xb8] sm:$0xff]  }
  0x4f   :  { %964 = vperm.xlu1 %4514, %v269_v32   ;;  %v4547_v32 = vld [vmem:[#allocation2 + $0xc0] sm:$0xff]  }
  0x50   :  { %959 = vperm.xlu0 %4513, %v268_v33   ;;  %4333 = vmatmul.mubr.bf16.gmra.mxu0 %v4526_v34  ;;  %v313_v33 = vld [vmem:[%s8099_s1 + $0x188] sm:$0xff]  ;;  %v312_v34 = vld [vmem:[%s8099_s1 + $0x180] sm:$0xff] }
  0x51   :  { %4336 = vmatprep.mubr.bf16.mxu0 %v4527_v35  ;;  %v4548_v35 = vld [vmem:[#allocation2 + $0xc8] sm:$0xff]  }
  0x53   :  { %1124 = vperm.xlu1 %4514, %v301_v36   ;;  %v4549_v36 = vld [vmem:[#allocation2 + $0xd0] sm:$0xff]  }
  0x54   :  { %1119 = vperm.xlu0 %4513, %v300_v37  }
  0x57   :  { %954 = vperm.xlu1 %4514, %v267_v38  }
  0x58   :  { %949 = vperm.xlu0 %4513, %v266_v39   ;;  %4337 = vmatmul.mubr.bf16.gmra.mxu0 %v4528_v40  ;;  %v4550_v39 = vld [vmem:[#allocation2 + $0xd8] sm:$0xff]   ;;  %v4551_v40 = vld [vmem:[#allocation2 + $0xe0] sm:$0xff]  }
  0x59   :  { %4340 = vmatprep.mubr.bf16.mxu0 %v4529_v41 }
  0x5b   :  { %1114 = vperm.xlu1 %4514, %v299_v42  }
  0x5c   :  { %1109 = vperm.xlu0 %4513, %v298_v43   ;;  %v4552_v43 = vld [vmem:[#allocation2 + $0xe8] sm:$0xff]  }
  0x5f   :  { %944 = vperm.xlu1 %4514, %v265_v44   ;;  %v4553_v44 = vld [vmem:[#allocation2 + $0xf0] sm:$0xff]  }
  0x60   :  { %939 = vperm.xlu0 %4513, %v264_v45   ;;  %4341 = vmatmul.mubr.bf16.gmra.mxu0 %v4530_v46 }
  0x61   :  { %4344 = vmatprep.mubr.bf16.mxu0 %v4531_v47 }
  0x63   :  { %1104 = vperm.xlu1 %4514, %v297_v48   ;;  %v4554_v48 = vld [vmem:[#allocation2 + $0xf8] sm:$0xff]  }
  0x64   :  { %1099 = vperm.xlu0 %4513, %v296_v49  }
  0x67   :  { %1094 = vperm.xlu1 %4514, %v295_v50  }
  0x68   :  { %1089 = vperm.xlu0 %4513, %v294_v51   ;;  %4345 = vmatmul.mubr.bf16.gmra.mxu0 %v4532_v52 }
  0x69   :  { %4348 = vmatprep.mubr.bf16.mxu0 %v4533_v53 }
  0x6b   :  { %1254 = vperm.xlu1 %4514, %v327_v54  }
  0x6c   :  { %1249 = vperm.xlu0 %4513, %v326_v55  }
  0x6f   :  { %1084 = vperm.xlu1 %4514, %v293_v56  }
  0x70   :  { %1079 = vperm.xlu0 %4513, %v292_v57   ;;  %4349 = vmatmul.mubr.bf16.gmra.mxu0 %v4534_v58 }
  0x71   :  { %4352 = vmatprep.mubr.bf16.mxu0 %v4535_v59 }
  0x73   :  { %1244 = vperm.xlu1 %4514, %v325_v60  }
  0x74   :  { %1239 = vperm.xlu0 %4513, %v324_v61  }
  0x77   :  { %1074 = vperm.xlu1 %4514, %v291_v62  }
  0x78   :  { %1069 = vperm.xlu0 %4513, %v290_v63   ;;  %4353 = vmatmul.mubr.bf16.gmra.mxu0 %v4536_v1 }
  0x79   :  { %4356 = vmatprep.mubr.bf16.mxu0 %v4537_v2 }
  0x7b   :  { %1234 = vperm.xlu1 %4514, %v323_v3  }
  0x7c   :  { %1229 = vperm.xlu0 %4513, %v322_v4  }
  0x7f   :  { %1064 = vperm.xlu1 %4514, %v289_v5  }
  0x80   :  { %1059 = vperm.xlu0 %4513, %v288_v6   ;;  %4357 = vmatmul.mubr.bf16.gmra.mxu0 %v4538_v7  ;;  %v5226_v7 = vld [vmem:[%s8098_s0 + $0x8] sm:$0xff] }
  0x81   :  { %4360 = vmatprep.mubr.bf16.mxu0 %v4539_v8  ;;  %8613 = vst [vmem:[#allocation36_spill] sm:$0xff] %v5226_v7  ;;  %v8107_v8 = vunpack.c.l.s8.bf16 %v5226_v7 }
  0x83   :  { %1224 = vperm.xlu1 %4514, %v321_v9   ;;  %1385 = vmatprep.mubr.bf16.mxu1 %v8107_v8 }
  0x84   :  { %1219 = vperm.xlu0 %4513, %v320_v10  }
  0x87   :  { %1054 = vperm.xlu1 %4514, %v287_v11  }
  0x88   :  { %1049 = vperm.xlu0 %4513, %v286_v12   ;;  %4361 = vmatmul.mubr.bf16.gmra.mxu0 %v4540_v13 }
  0x89   :  { %4364 = vmatprep.mubr.bf16.mxu0 %v4541_v14 }
  0x8b   :  { %1214 = vperm.xlu1 %4514, %v319_v15  }
  0x8c   :  { %1209 = vperm.xlu0 %4513, %v318_v16  }
  0x8f   :  { %1044 = vperm.xlu1 %4514, %v285_v17  }
  0x90   :  { %1039 = vperm.xlu0 %4513, %v284_v18   ;;  %4365 = vmatmul.mubr.bf16.gmra.mxu0 %v4542_v19 }
  0x91   :  { %4368 = vmatprep.mubr.bf16.mxu0 %v4543_v20 }
  0x93   :  { %1204 = vperm.xlu1 %4514, %v317_v21  }
  0x94   :  { %1199 = vperm.xlu0 %4513, %v316_v22  }
  0x97   :  { %1034 = vperm.xlu1 %4514, %v283_v23  }
  0x98   :  { %1029 = vperm.xlu0 %4513, %v282_v24   ;;  %4369 = vmatmul.mubr.bf16.gmra.mxu0 %v4544_v25 }
  0x99   :  { %4372 = vmatprep.mubr.bf16.mxu0 %v4545_v26 }
  0x9b   :  { %1194 = vperm.xlu1 %4514, %v315_v27  }
  0x9c   :  { %1189 = vperm.xlu0 %4513, %v314_v28  }
  0x9f   :  { %1024 = vperm.xlu1 %4514, %v281_v29  }
  0xa0   :  { %1019 = vperm.xlu0 %4513, %v280_v30   ;;  %4373 = vmatmul.mubr.bf16.gmra.mxu0 %v4546_v31 }
  0xa1   :  { %4376 = vmatprep.mubr.bf16.mxu0 %v4547_v32 }
  0xa2   :  { %v5167_v37 = vpop.permute.xlu1 %1169 }
  0xa3   :  { %1184 = vperm.xlu1 %4514, %v313_v33   ;;  %8589 = vst [vmem:[#allocation12_spill] sm:$0xff] %v5167_v37  ;;  %v5169_v38 = vpop.permute.xlu0 %1009 }
  0xa4   :  { %1179 = vperm.xlu0 %4513, %v312_v34   ;;  %8590 = vst [vmem:[#allocation13_spill] sm:$0xff] %v5169_v38 }
  0xa6   :  { %v5171_v41 = vpop.permute.xlu1 %1174 }
  0xa7   :  { %8591 = vst [vmem:[#allocation14_spill] sm:$0xff] %v5171_v41  ;;  %v5173_v42 = vpop.permute.xlu0 %1014 }
  0xa8   :  { %4377 = vmatmul.mubr.bf16.gmra.mxu0 %v4548_v35  ;;  %8592 = vst [vmem:[#allocation15_spill] sm:$0xff] %v5173_v42 }
  0xa9   :  { %4380 = vmatprep.mubr.bf16.mxu0 %v4549_v36 }
  0xaa   :  { %v5175_v45 = vpop.permute.xlu1 %1004 }
  0xab   :  { %8593 = vst [vmem:[#allocation16_spill] sm:$0xff] %v5175_v45  ;;  %v5177_v46 = vpop.permute.xlu0 %999 }
  0xac   :  { %8594 = vst [vmem:[#allocation17_spill] sm:$0xff] %v5177_v46 }
  0xae   :  { %v5179_v47 = vpop.permute.xlu1 %1164 }
  0xaf   :  { %8595 = vst [vmem:[#allocation18_spill] sm:$0xff] %v5179_v47  ;;  %v5181_v49 = vpop.permute.xlu0 %1159 }
  0xb0   :  { %4381 = vmatmul.mubr.bf16.gmra.mxu0 %v4550_v39  ;;  %8596 = vst [vmem:[#allocation19_spill] sm:$0xff] %v5181_v49 }
  0xb1   :  { %4384 = vmatprep.mubr.bf16.mxu0 %v4551_v40  ;;  %v5270_v40 = vld [vmem:[%s8098_s0 + $0x18] sm:$0xff] }
  0xb2   :  { %v5183_v50 = vpop.permute.xlu1 %994  ;;  %8628 = vst [vmem:[#allocation51_spill] sm:$0xff] %v5270_v40 }
  0xb3   :  { %8597 = vst [vmem:[#allocation20_spill] sm:$0xff] %v5183_v50  ;;  %v5185_v51 = vpop.permute.xlu0 %989 }
  0xb4   :  { %8598 = vst [vmem:[#allocation21_spill] sm:$0xff] %v5185_v51 }
  0xb6   :  { %v5187_v52 = vpop.permute.xlu1 %1154 }
  0xb7   :  { %8599 = vst [vmem:[#allocation22_spill] sm:$0xff] %v5187_v52  ;;  %v5189_v53 = vpop.permute.xlu0 %1149 }
  0xb8   :  { %4385 = vmatmul.mubr.bf16.gmra.mxu0 %v4552_v43  ;;  %8600 = vst [vmem:[#allocation23_spill] sm:$0xff] %v5189_v53 }
  0xb9   :  { %4388 = vmatprep.mubr.bf16.mxu0 %v4553_v44 }
  0xba   :  { %v5191_v54 = vpop.permute.xlu1 %984 }
  0xbb   :  { %8601 = vst [vmem:[#allocation24_spill] sm:$0xff] %v5191_v54  ;;  %v5193_v55 = vpop.permute.xlu0 %979 }
  0xbc   :  { %8602 = vst [vmem:[#allocation25_spill] sm:$0xff] %v5193_v55 }
  0xbe   :  { %v5195_v56 = vpop.permute.xlu1 %1144 }
  0xbf   :  { %8603 = vst [vmem:[#allocation26_spill] sm:$0xff] %v5195_v56  ;;  %v5197_v57 = vpop.permute.xlu0 %1139 }
  0xc0   :  { %4389 = vmatmul.mubr.bf16.gmra.mxu0 %v4554_v48  ;;  %8604 = vst [vmem:[#allocation27_spill] sm:$0xff] %v5197_v57  ;;  %v8117_v48 = vunpack.c.l.s8.bf16 %v5270_v40 }
  0xc2   :  { %v5199_v58 = vpop.permute.xlu1 %974  ;;  %1674 = vmatprep.mubr.bf16.mxu0 %v8117_v48 }
  0xc3   :  { %8605 = vst [vmem:[#allocation28_spill] sm:$0xff] %v5199_v58  ;;  %v5201_v59 = vpop.permute.xlu0 %969 }
  0xc4   :  { %8606 = vst [vmem:[#allocation29_spill] sm:$0xff] %v5201_v59 }
  0xc6   :  { %v5203_v60 = vpop.permute.xlu1 %1134 }
  0xc7   :  { %v5205_v61 = vpop.permute.xlu0 %1129 }
  0xca   :  { %v5207_v62 = vpop.permute.xlu1 %964 }
  0xcb   :  { %8607 = vst [vmem:[#allocation30_spill] sm:$0xff] %v5207_v62  ;;  %v5209_v63 = vpop.permute.xlu0 %959 }
  0xcc   :  { %8608 = vst [vmem:[#allocation31_spill] sm:$0xff] %v5209_v63 }
  0xce   :  { %v5211_v1 = vpop.permute.xlu1 %1124 }
  0xcf   :  { %v5213_v2 = vpop.permute.xlu0 %1119 }
  0xd2   :  { %v5215_v3 = vpop.permute.xlu1 %954 }
  0xd3   :  { %8609 = vst [vmem:[#allocation32_spill] sm:$0xff] %v5215_v3  ;;  %v5217_v4 = vpop.permute.xlu0 %949 }
  0xd4   :  { %8610 = vst [vmem:[#allocation33_spill] sm:$0xff] %v5217_v4 }
  0xd6   :  { %v5219_v5 = vpop.permute.xlu1 %1114 }
  0xd7   :  { %8611 = vst [vmem:[#allocation34_spill] sm:$0xff] %v5219_v5  ;;  %v5221_v6 = vpop.permute.xlu0 %1109 }
  0xd8   :  { %8612 = vst [vmem:[#allocation35_spill] sm:$0xff] %v5221_v6 }
  0xda   :  { %v5231_v9 = vpop.permute.xlu1 %944 }
  0xdb   :  { %8614 = vst [vmem:[#allocation37_spill] sm:$0xff] %v5231_v9  ;;  %v5233_v10 = vpop.permute.xlu0 %939 }
  0xdc   :  { %8615 = vst [vmem:[#allocation38_spill] sm:$0xff] %v5233_v10 }
  0xde   :  { %v5235_v11 = vpop.permute.xlu1 %1104 }
  0xdf   :  { %8616 = vst [vmem:[#allocation39_spill] sm:$0xff] %v5235_v11  ;;  %v5237_v12 = vpop.permute.xlu0 %1099 }
  0xe0   :  { %8617 = vst [vmem:[#allocation40_spill] sm:$0xff] %v5237_v12 }
  0xe2   :  { %v5241_v14 = vpop.permute.xlu1 %1094 }
  0xe3   :  { %8618 = vst [vmem:[#allocation41_spill] sm:$0xff] %v5241_v14  ;;  %v5245_v16 = vpop.permute.xlu0 %1089 }
  0xe4   :  { %8619 = vst [vmem:[#allocation42_spill] sm:$0xff] %v5245_v16 }
  0xe6   :  { %v5251_v19 = vpop.permute.xlu1 %1254 }
  0xe7   :  { %8620 = vst [vmem:[#allocation43_spill] sm:$0xff] %v5251_v19  ;;  %v5253_v21 = vpop.permute.xlu0 %1249 }
  0xe8   :  { %8621 = vst [vmem:[#allocation44_spill] sm:$0xff] %v5253_v21 }
  0xea   :  { %v5255_v24 = vpop.permute.xlu1 %1084 }
  0xeb   :  { %8622 = vst [vmem:[#allocation45_spill] sm:$0xff] %v5255_v24  ;;  %v5257_v26 = vpop.permute.xlu0 %1079 }
  0xec   :  { %8623 = vst [vmem:[#allocation46_spill] sm:$0xff] %v5257_v26 }
  0xee   :  { %v5259_v29 = vpop.permute.xlu1 %1244 }
  0xef   :  { %8624 = vst [vmem:[#allocation47_spill] sm:$0xff] %v5259_v29  ;;  %v5261_v31 = vpop.permute.xlu0 %1239 }
  0xf0   :  { %8625 = vst [vmem:[#allocation48_spill] sm:$0xff] %v5261_v31 }
  0xf2   :  { %v5263_v34 = vpop.permute.xlu1 %1074 }
  0xf3   :  { %8626 = vst [vmem:[#allocation49_spill] sm:$0xff] %v5263_v34  ;;  %v5265_v36 = vpop.permute.xlu0 %1069 }
  0xf4   :  { %8627 = vst [vmem:[#allocation50_spill] sm:$0xff] %v5265_v36 }
  0xf6   :  { %v5278_v29 = vpop.permute.xlu1 %1234 }
  0xf7   :  { %8629 = vst [vmem:[#allocation52_spill] sm:$0xff] %v5278_v29  ;;  %v5283_v12 = vpop.permute.xlu0 %1229 }
  0xf8   :  { %8630 = vst [vmem:[#allocation53_spill] sm:$0xff] %v5283_v12 }
  0xfa   :  { %v5292_v48 = vpop.permute.xlu1 %1064 }
  0xfb   :  { %8632 = vst [vmem:[#allocation54_spill] sm:$0xff] %v5292_v48 }
 0x108   :  { %v5239_v13 = vpop.f32.mrf.mxu0 }
 0x10a   :  { %v5243_v15 = vpop.f32.mrf.mxu0 }
 0x10c   :  { %v5247_v17 = vpop.f32.mrf.mxu0 }
 0x10e   :  { %v5249_v18 = vpop.f32.mrf.mxu0 }
 0x110   :  { %v4334_v20 = vpop.f32.mrf.mxu0 }
 0x112   :  { %v698_v22 = vpop.f32.mrf.mxu0 }
 0x114   :  { %v4335_v23 = vpop.f32.mrf.mxu0 }
 0x116   :  { %v701_v25 = vpop.f32.mrf.mxu0 }
 0x118   :  { %v4338_v27 = vpop.f32.mrf.mxu0 }
 0x11a   :  { %v714_v28 = vpop.f32.mrf.mxu0 }
 0x11c   :  { %v4339_v30 = vpop.f32.mrf.mxu0 }
 0x11e   :  { %v717_v32 = vpop.f32.mrf.mxu0 }
 0x120   :  { %v4342_v33 = vpop.f32.mrf.mxu0 }
 0x121   :  { %v1271_v43 = vmul.f32 %v4342_v33, %v5169_v38 }
 0x122   :  { %v730_v35 = vpop.f32.mrf.mxu0 }
 0x123   :  { %v1269_v21 = vmul.f32 %v5177_v46, %v730_v35  ;;  %v1266_v35 = vmul.f32 %v5191_v54, %v717_v32 }
 0x124   :  { %v4343_v39 = vpop.f32.mrf.mxu0 }
 0x125   :  { %v1272_v44 = vmul.f32 %v4343_v39, %v5173_v42  ;;  %v8631_v39 = vmov 0   ;;  %v1268_v42 = vmul.f32 %v4339_v30, %v5183_v50 }
 0x126   :  { %v733_v8 = vpop.f32.mrf.mxu0 }
 0x127   :  { %v1270_v0 = vmul.f32 %v5175_v45, %v733_v8  ;;  %v1328_v31 = vpack.c.bf16 %v1272_v44, %v1271_v43  ;;  %v1267_v44 = vmul.f32 %v4338_v27, %v5185_v51  ;;  %v5298_v45 = vpop.permute.xlu0 %1059  ;;  %v1264_v27 = vmul.f32 %v4335_v23, %v5199_v58 }
 0x128   :  { %v5280_v19 = vpop.f32.mrf.mxu0  ;;  %8633 = vst [vmem:[#allocation55_spill] sm:$0xff] %v5298_v45  ;;  %v1261_v23 = vmul.f32 %v5209_v63, %v698_v22 }
 0x129   :  { %1354 = vmatpush1.bf16.msra.mxu1 %v1328_v31  ;;  %v1327_v8 = vpack.c.bf16 %v1270_v0, %v1269_v21  ;;  %v1326_v31 = vpack.c.bf16 %v1268_v42, %v1267_v44  ;;  %v1265_v0 = vmul.f32 %v5193_v55, %v714_v28  ;;  %v1263_v42 = vmul.f32 %v4334_v20, %v5201_v59 }
 0x12a   :  { %v5285_v33 = vpop.f32.mrf.mxu0  ;;  %1355 = vmatprep.subr.bf16.mxu1 %v8631_v39  ;;  %v1260_v20 = vmul.f32 %v5247_v17, %v5215_v3  ;;  %v1257_v17 = vmul.f32 %v5233_v10, %v5243_v15 }
 0x12b   :  { %v1325_v30 = vpack.c.bf16 %v1266_v35, %v1265_v0  ;;  %v5312_v32 = vpop.permute.xlu0 %1219  ;;  %v1324_v28 = vpack.c.bf16 %v1264_v27, %v1263_v42  ;;  %v1259_v27 = vmul.f32 %v5239_v13, %v5217_v4  ;;  %v1258_v42 = vmul.f32 %v5231_v9, %v5249_v18 }
 0x12c   :  { %v5289_v43 = vpop.f32.mrf.mxu0  ;;  %8635 = vst [vmem:[#allocation57_spill] sm:$0xff] %v5312_v32 }
 0x12d   :  { %1356 = vmatpush1.bf16.msra.mxu1 %v1327_v8  ;;  %v5307_v8 = vpop.permute.xlu1 %1224  ;;  %v1322_v22 = vpack.c.bf16 %v1260_v20, %v1259_v27  ;;  %v1321_v13 = vpack.c.bf16 %v1258_v42, %v1257_v17 }
 0x12e   :  { %v5294_v38 = vpop.f32.mrf.mxu0  ;;  %1357 = vmatprep.subr.bf16.mxu1 %v8631_v39  ;;  %8634 = vst [vmem:[#allocation56_spill] sm:$0xff] %v5307_v8 }
 0x12f   :  { %v5324_v54 = vpop.permute.xlu0 %1049 }
 0x130   :  { %v5300_v46 = vpop.f32.mrf.mxu0  ;;  %8637 = vst [vmem:[#allocation59_spill] sm:$0xff] %v5324_v54 }
 0x131   :  { %1358 = vmatpush1.bf16.msra.mxu1 %v1326_v31  ;;  %v1262_v31 = vmul.f32 %v5207_v62, %v701_v25  ;;  %v5319_v35 = vpop.permute.xlu1 %1054 }
 0x132   :  { %v5303_v21 = vpop.f32.mrf.mxu0  ;;  %1359 = vmatprep.subr.bf16.mxu1 %v8631_v39  ;;  %8636 = vst [vmem:[#allocation58_spill] sm:$0xff] %v5319_v35 }
 0x134   :  { %v5309_v50 = vpop.f32.mrf.mxu0 }
 0x135   :  { %1360 = vmatpush1.bf16.msra.mxu1 %v1325_v30  ;;  %v1323_v30 = vpack.c.bf16 %v1262_v31, %v1261_v23  ;;  %v5335_v31 = vpop.permute.xlu0 %1209 }
 0x136   :  { %v5314_v44 = vpop.f32.mrf.mxu0  ;;  %1361 = vmatprep.subr.bf16.mxu1 %v8631_v39  ;;  %8639 = vst [vmem:[#allocation61_spill] sm:$0xff] %v5335_v31 }
 0x138   :  { %v4354_v51 = vpop.f32.mrf.mxu0 }
 0x139   :  { %1362 = vmatpush1.bf16.msra.mxu1 %v1324_v28  ;;  %v5331_v28 = vpop.permute.xlu1 %1214 }
 0x13a   :  { %v778_v0 = vpop.f32.mrf.mxu0  ;;  %1363 = vmatprep.subr.bf16.mxu1 %v8631_v39  ;;  %8638 = vst [vmem:[#allocation60_spill] sm:$0xff] %v5331_v28 }
 0x13c   :  { %v4355_v55 = vpop.f32.mrf.mxu0 }
 0x13d   :  { %1364 = vmatpush1.bf16.msra.mxu1 %v1323_v30  ;;  %v5340_v18 = vpop.permute.xlu1 %1044 }
 0x13e   :  { %v781_v25 = vpop.f32.mrf.mxu0  ;;  %1365 = vmatprep.subr.bf16.mxu1 %v8631_v39  ;;  %8640 = vst [vmem:[#allocation62_spill] sm:$0xff] %v5340_v18 }
 0x140   :  { %v4358_v58 = vpop.f32.mrf.mxu0 }
 0x141   :  { %1366 = vmatpush1.bf16.msra.mxu1 %v1322_v22  ;;  %v1287_v59 = vmul.f32 %v4358_v58, %v5245_v16  ;;  %v5344_v22 = vpop.permute.xlu0 %1039  ;;  %v1284_v58 = vmul.f32 %v4355_v55, %v5263_v34  ;;  %v1281_v55 = vmul.f32 %v5298_v45, %v778_v0 }
 0x142   :  { %v794_v23 = vpop.f32.mrf.mxu0  ;;  %1367 = vmatprep.subr.bf16.mxu1 %v8631_v39  ;;  %8641 = vst [vmem:[#allocation63_spill] sm:$0xff] %v5344_v22 }
 0x143   :  { %v1285_v42 = vmul.f32 %v5257_v26, %v794_v23  ;;  %v1282_v23 = vmul.f32 %v5292_v48, %v781_v25  ;;  %v1279_v25 = vmul.f32 %v5300_v46, %v5324_v54 }
 0x144   :  { %v4359_v30 = vpop.f32.mrf.mxu0 }
 0x145   :  { %v1288_v20 = vmul.f32 %v4359_v30, %v5241_v14  ;;  %1368 = vmatpush1.bf16.msra.mxu1 %v1321_v13  ;;  %v5353_v30 = vpop.permute.xlu1 %1204 }
 0x146   :  { %v797_v27 = vpop.f32.mrf.mxu0  ;;  %1369 = vmatprep.subr.bf16.mxu1 %v8631_v39  ;;  %8642 = vst [vmem:[#allocation64_spill] sm:$0xff] %v5353_v30 }
 0x147   :  { %v1336_v62 = vpack.c.bf16 %v1288_v20, %v1287_v59  ;;  %v1286_v15 = vmul.f32 %v5255_v24, %v797_v27  ;;  %v1283_v59 = vmul.f32 %v4354_v51, %v5265_v36  ;;  %v5358_v20 = vpop.permute.xlu0 %1199  ;;  %v1280_v51 = vmul.f32 %v5309_v50, %v5319_v35 }
 0x148   :  { %v5346_v63 = vpop.f32.mrf.mxu0  ;;  %8643 = vst [vmem:[#allocation65_spill] sm:$0xff] %v5358_v20 }
 0x149   :  { %1370 = vmatpush2.bf16.msra.mxu1 %v1336_v62  ;;  %v1335_v13 = vpack.c.bf16 %v1286_v15, %v1285_v42  ;;  %v1334_v62 = vpack.c.bf16 %v1284_v58, %v1283_v59  ;;  %v5367_v15 = vpop.permute.xlu1 %1034  ;;  %v1332_v59 = vpack.c.bf16 %v1280_v51, %v1279_v25 }
 0x14a   :  { %v5349_v17 = vpop.f32.mrf.mxu0  ;;  %1371 = vmatprep.subr.bf16.mxu1 %v8631_v39  ;;  %8644 = vst [vmem:[#allocation66_spill] sm:$0xff] %v5367_v15  ;;  %v1276_v46 = vmul.f32 %v5289_v43, %v5367_v15 }
 0x14b   :  { %v5374_v24 = vpop.permute.xlu0 %1029 }
 0x14c   :  { %v5355_v14 = vpop.f32.mrf.mxu0  ;;  %8645 = vst [vmem:[#allocation67_spill] sm:$0xff] %v5374_v24 }
 0x14d   :  { %1372 = vmatpush2.bf16.msra.mxu1 %v1335_v13  ;;  %v1333_v13 = vpack.c.bf16 %v1282_v23, %v1281_v55  ;;  %v5385_v26 = vpop.permute.xlu1 %1194  ;;  %v1277_v23 = vmul.f32 %v5344_v22, %v5303_v21 }
 0x14e   :  { %v5360_v27 = vpop.f32.mrf.mxu0  ;;  %1373 = vmatprep.subr.bf16.mxu1 %v8631_v39  ;;  %8646 = vst [vmem:[#allocation68_spill] sm:$0xff] %v5385_v26 }
 0x14f   :  { %v5389_v55 = vpop.permute.xlu0 %1189 }
 0x150   :  { %v5364_v16 = vpop.f32.mrf.mxu0  ;;  %8647 = vst [vmem:[#allocation69_spill] sm:$0xff] %v5389_v55 }
 0x151   :  { %1374 = vmatpush2.bf16.msra.mxu1 %v1334_v62  ;;  %v1278_v62 = vmul.f32 %v5340_v18, %v5314_v44  ;;  %v1275_v44 = vmul.f32 %v5280_v19, %v5374_v24  ;;  %v5396_v25 = vpop.permute.xlu1 %1024  ;;  %v5408_v19 = vld [vmem:[%s8098_s0] sm:$0xff] }
 0x152   :  { %v5369_v42 = vpop.f32.mrf.mxu0  ;;  %1375 = vmatprep.subr.bf16.mxu1 %v8631_v39  ;;  %8648 = vst [vmem:[#allocation70_spill] sm:$0xff] %v5396_v25  ;;  %8650 = vst [vmem:[#allocation72_spill] sm:$0xff] %v5408_v19 }
 0x153   :  { %v1330_v21 = vpack.c.bf16 %v1276_v46, %v1275_v44  ;;  %v5401_v48 = vpop.permute.xlu0 %1019 }
 0x154   :  { %v5376_v58 = vpop.f32.mrf.mxu0  ;;  %8649 = vst [vmem:[#allocation71_spill] sm:$0xff] %v5401_v48  ;;  %v1273_v43 = vmul.f32 %v5401_v48, %v5285_v33  ;;  %v8162_v33 = vunpack.c.h.s8.bf16 %v5226_v7 }
 0x155   :  { %1376 = vmatpush2.bf16.msra.mxu1 %v1333_v13  ;;  %v1331_v13 = vpack.c.bf16 %v1278_v62, %v1277_v23 }
 0x156   :  { %v5380_v0 = vpop.f32.mrf.mxu0  ;;  %1377 = vmatprep.subr.bf16.mxu1 %v8631_v39 }
 0x158   :  { %v4370_v50 = vpop.f32.mrf.mxu0 }
 0x159   :  { %1378 = vmatpush2.bf16.msra.mxu1 %v1332_v59  ;;  %v1274_v59 = vmul.f32 %v5396_v25, %v5294_v38 }
 0x15a   :  { %v842_v34 = vpop.f32.mrf.mxu0  ;;  %1379 = vmatprep.subr.bf16.mxu1 %v8631_v39 }
 0x15b   :  { %v1329_v23 = vpack.c.bf16 %v1274_v59, %v1273_v43  ;;  %v5429_v43 = vld [vmem:[%s8098_s0 + $0x28] sm:$0xff] }
 0x15c   :  { %v4371_v51 = vpop.f32.mrf.mxu0  ;;  %8651 = vst [vmem:[#allocation73_spill] sm:$0xff] %v5429_v43 }
 0x15d   :  { %1380 = vmatpush2.bf16.msra.mxu1 %v1331_v13  ;;  %v8163_v13 = vunpack.c.l.s8.bf16 %v5408_v19 }
 0x15e   :  { %v845_v36 = vpop.f32.mrf.mxu0  ;;  %1381 = vmatprep.subr.bf16.mxu1 %v8631_v39 }
 0x160   :  { %v4374_v45 = vpop.f32.mrf.mxu0 }
 0x161   :  { %1382 = vmatpush2.bf16.msra.mxu1 %v1330_v21  ;;  %v1303_v38 = vmul.f32 %v4374_v45, %v5167_v37 }
 0x162   :  { %v858_v62 = vpop.f32.mrf.mxu0  ;;  %1383 = vmatprep.subr.bf16.mxu1 %v8631_v39 }
 0x163   :  { %v1301_v59 = vmul.f32 %v5181_v49, %v858_v62  ;;  %v8167_v62 = vunpack.c.h.s8.bf16 %v5408_v19 }
 0x164   :  { %v4375_v46 = vpop.f32.mrf.mxu0 }
 0x165   :  { %v1304_v44 = vmul.f32 %v4375_v46, %v5171_v41  ;;  %1384 = vmatpush2.bf16.msra.mxu1 %v1329_v23  ;;  %v1300_v23 = vmul.f32 %v4371_v51, %v5187_v52 }
 0x166   :  { %v861_v21 = vpop.f32.mrf.mxu0 }
 0x167   :  { %v1344_v35 = vpack.c.bf16 %v1304_v44, %v1303_v38  ;;  %v1302_v54 = vmul.f32 %v5179_v47, %v861_v21  ;;  %v8166_v44 = vunpack.c.l.s8.bf16 %v5429_v43  ;;  %v8658_v47 = vld [vmem:[#allocation47_spill] sm:$0xff] }
 0x168   :  { %v5416_v18 = vpop.f32.mrf.mxu0  ;;  %1386 = vmatmul.mubr.bf16.vlgmr.msra.gmra.mxu1 %v8163_v13  ;;  %v1298_v13 = vmul.f32 %v5195_v56, %v845_v36  ;;  %v1296_v36 = vmul.f32 %v5376_v58, %v5203_v60 }
 0x169   :  { %1643 = vmatpush1.bf16.msra.mxu0 %v1344_v35  ;;  %1393 = vmatprep.mubr.bf16.mxu1 %v8162_v33  ;;  %v1343_v46 = vpack.c.bf16 %v1302_v54, %v1301_v59  ;;  %v1299_v35 = vmul.f32 %v4370_v50, %v5189_v53  ;;  %v1297_v54 = vmul.f32 %v5197_v57, %v842_v34  ;;  %v5451_v50 = vld [vmem:[%s8098_s0 + $0x20] sm:$0xff] }
 0x16a   :  { %v5423_v45 = vpop.f32.mrf.mxu0  ;;  %1644 = vmatprep.subr.bf16.mxu0 %v8631_v39  ;;  %8652 = vst [vmem:[#allocation74_spill] sm:$0xff] %v5451_v50  ;;  %v8169_v34 = vunpack.c.l.s8.bf16 %v5451_v50 }
 0x16b   :  { %v1342_v33 = vpack.c.bf16 %v1300_v23, %v1299_v35  ;;  %v1341_v59 = vpack.c.bf16 %v1298_v13, %v1297_v54  ;;  %v1293_v13 = vmul.f32 %v5213_v2, %v5369_v42  ;;  %v5479_v54 = vld [vmem:[%s8098_s0 + $0x48] sm:$0xff]  ;;  %v1291_v42 = vmul.f32 %v5346_v63, %v5221_v6  ;;  %v5499_v63 = vld [vmem:[%s8098_s0 + $0x40] sm:$0xff] }
 0x16c   :  { %v5432_v38 = vpop.f32.mrf.mxu0  ;;  %8653 = vst [vmem:[#allocation75_spill] sm:$0xff] %v5479_v54  ;;  %8655 = vst [vmem:[#allocation76_spill] sm:$0xff] %v5499_v63 }
 0x16d   :  { %1645 = vmatpush1.bf16.msra.mxu0 %v1343_v46  ;;  %v8168_v46 = vunpack.c.h.s8.bf16 %v5429_v43  ;;  %v1290_v43 = vmul.f32 %v5235_v11, %v5360_v27 }
 0x16e   :  { %v5437_v21 = vpop.f32.mrf.mxu0  ;;  %1646 = vmatprep.subr.bf16.mxu0 %v8631_v39 }
 0x170   :  { %v5441_v41 = vpop.f32.mrf.mxu0  ;;  %1394 = vmatmul.mubr.bf16.gmra.mxu1 %v8167_v62  ;;  %v1294_v62 = vmul.f32 %v5211_v1, %v5380_v0  ;;  %v1292_v0 = vmul.f32 %v5355_v14, %v5219_v5  ;;  %v8654_v14 = vld [vmem:[#allocation40_spill] sm:$0xff] }
 0x171   :  { %1647 = vmatpush1.bf16.msra.mxu0 %v1342_v33  ;;  %1401 = vmatprep.mubr.bf16.mxu1 %v8166_v44  ;;  %v1295_v33 = vmul.f32 %v5364_v16, %v5205_v61 }
 0x172   :  { %v5453_v51 = vpop.f32.mrf.mxu0  ;;  %1648 = vmatprep.subr.bf16.mxu0 %v8631_v39 }
 0x173   :  { %v1340_v44 = vpack.c.bf16 %v1296_v36, %v1295_v33  ;;  %v1339_v36 = vpack.c.bf16 %v1294_v62, %v1293_v13  ;;  %v8174_v33 = vunpack.c.h.s8.bf16 %v5451_v50  ;;  %v1289_v62 = vmul.f32 %v8654_v14, %v5349_v17  ;;  %v8657_v50 = vld [vmem:[#allocation43_spill] sm:$0xff] }
 0x174   :  { %v5458_v23 = vpop.f32.mrf.mxu0 }
 0x175   :  { %1649 = vmatpush1.bf16.msra.mxu0 %v1341_v59  ;;  %v1337_v27 = vpack.c.bf16 %v1290_v43, %v1289_v62  ;;  %v8659_v43 = vld [vmem:[#allocation48_spill] sm:$0xff] }
 0x176   :  { %v5464_v35 = vpop.f32.mrf.mxu0  ;;  %1650 = vmatprep.subr.bf16.mxu0 %v8631_v39 }
 0x178   :  { %v4386_v58 = vpop.f32.mrf.mxu0  ;;  %1402 = vmatmul.mubr.bf16.gmra.mxu1 %v8169_v34  ;;  %v1338_v34 = vpack.c.bf16 %v1292_v0, %v1291_v42  ;;  %v8656_v42 = vld [vmem:[#allocation44_spill] sm:$0xff] }
 0x179   :  { %1651 = vmatpush1.bf16.msra.mxu0 %v1340_v44  ;;  %1409 = vmatprep.mubr.bf16.mxu1 %v8168_v46  ;;  %v8177_v44 = vunpack.c.l.s8.bf16 %v5479_v54 }
 0x17a   :  { %v906_v16 = vpop.f32.mrf.mxu0  ;;  %1652 = vmatprep.subr.bf16.mxu0 %v8631_v39 }
 0x17c   :  { %v4387_v59 = vpop.f32.mrf.mxu0 }
 0x17d   :  { %1653 = vmatpush1.bf16.msra.mxu0 %v1339_v36  ;;  %v8210_v36 = vunpack.c.l.s8.bf16 %v5499_v63 }
 0x17e   :  { %v909_v46 = vpop.f32.mrf.mxu0  ;;  %1654 = vmatprep.subr.bf16.mxu0 %v8631_v39 }
 0x180   :  { %v4390_v19 = vpop.f32.mrf.mxu0  ;;  %1410 = vmatmul.mubr.bf16.gmra.mxu1 %v8174_v33 }
 0x181   :  { %1655 = vmatpush1.bf16.msra.mxu0 %v1338_v34  ;;  %1417 = vmatprep.mubr.bf16.mxu1 %v8177_v44  ;;  %v1319_v33 = vmul.f32 %v4390_v19, %v8656_v42  ;;  %v8184_v34 = vunpack.c.h.s8.bf16 %v5479_v54  ;;  %v5517_v19 = vld [vmem:[%s8098_s0 + $0x68] sm:$0xff] }
 0x182   :  { %v922_v13 = vpop.f32.mrf.mxu0  ;;  %1656 = vmatprep.subr.bf16.mxu0 %v8631_v39  ;;  %8660 = vst [vmem:[#allocation77_spill] sm:$0xff] %v5517_v19 }
 0x183   :  { %v1317_v62 = vmul.f32 %v8659_v43, %v922_v13 }
 0x184   :  { %v4391_v0 = vpop.f32.mrf.mxu0 }
 0x185   :  { %v1320_v17 = vmul.f32 %v4391_v0, %v8657_v50  ;;  %1657 = vmatpush1.bf16.msra.mxu0 %v1337_v27  ;;  %v1315_v0 = vmul.f32 %v4386_v58, %v5283_v12  ;;  %v1312_v58 = vmul.f32 %v5458_v23, %v5331_v28  ;;  %v1309_v23 = vmul.f32 %v5358_v20, %v5453_v51 }
 0x186   :  { %v925_v44 = vpop.f32.mrf.mxu0  ;;  %1658 = vmatprep.subr.bf16.mxu0 %v8631_v39  ;;  %v1307_v51 = vmul.f32 %v5416_v18, %v5389_v55  ;;  %v5577_v18 = vld [vmem:[%s8098_s0 + $0x10] sm:$0xff] }
 0x187   :  { %v1352_v37 = vpack.c.bf16 %v1320_v17, %v1319_v33  ;;  %v1318_v49 = vmul.f32 %v8658_v47, %v925_v44  ;;  %v1316_v33 = vmul.f32 %v4387_v59, %v5278_v29  ;;  %v8207_v44 = vunpack.c.h.s8.bf16 %v5499_v63  ;;  %8665 = vst [vmem:[#allocation82_spill] sm:$0xff] %v5577_v18 }
 0x188   :  { %1418 = vmatmul.mubr.bf16.gmra.mxu1 %v8210_v36  ;;  %v1314_v17 = vmul.f32 %v5307_v8, %v909_v46  ;;  %v5718_v36 = vld [vmem:[%s8098_s0 + $0xe0] sm:$0xff] }
 0x189   :  { %1659 = vmatpush2.bf16.msra.mxu0 %v1352_v37  ;;  %1425 = vmatprep.mubr.bf16.mxu1 %v8184_v34  ;;  %v1351_v27 = vpack.c.bf16 %v1318_v49, %v1317_v62  ;;  %v8204_v37 = vunpack.c.l.s8.bf16 %v5517_v19  ;;  %v1350_v13 = vpack.c.bf16 %v1316_v33, %v1315_v0  ;;  %v1313_v34 = vmul.f32 %v5312_v32, %v906_v16  ;;  %v5533_v49 = vld [vmem:[%s8098_s0 + $0x60] sm:$0xff] }
 0x18a   :  { %1660 = vmatprep.subr.bf16.mxu0 %v8631_v39  ;;  %8661 = vst [vmem:[#allocation78_spill] sm:$0xff] %v5533_v49  ;;  %v8201_v59 = vunpack.c.l.s8.bf16 %v5533_v49  ;;  %v1311_v16 = vmul.f32 %v5441_v41, %v5335_v31  ;;  %v8198_v62 = vunpack.c.h.s8.bf16 %v5517_v19  ;;  %v5555_v41 = vld [vmem:[%s8098_s0 + $0x88] sm:$0xff]  ;;  %v8195_v0 = vunpack.c.h.s8.bf16 %v5533_v49  ;;  %8678 = vst [vmem:[#allocation95_spill] sm:$0xff] %v5718_v36  ;;  %v6086_v49 = vld [vmem:[%s8098_s0 + $0x170] sm:$0xff] }
 0x18b   :  { %v1349_v46 = vpack.c.bf16 %v1314_v17, %v1313_v34  ;;  %8662 = vst [vmem:[#allocation79_spill] sm:$0xff] %v5555_v41  ;;  %v5563_v17 = vpop.permute.xlu1 %1184  ;;  %8709 = vst [vmem:[#allocation126_spill] sm:$0xff] %v6086_v49  ;;  %v8383_v54 = vunpack.c.h.s8.bf16 %v6086_v49 }
 0x18c   :  { %v1348_v33 = vpack.c.bf16 %v1312_v58, %v1311_v16  ;;  %8663 = vst [vmem:[#allocation80_spill] sm:$0xff] %v5563_v17  ;;  %v5568_v16 = vpop.permute.xlu0 %1179 }
 0x18d   :  { %1661 = vmatpush2.bf16.msra.mxu0 %v1351_v27  ;;  %v1310_v27 = vmul.f32 %v5353_v30, %v5464_v35  ;;  %v1308_v35 = vmul.f32 %v5432_v38, %v5385_v26  ;;  %8664 = vst [vmem:[#allocation81_spill] sm:$0xff] %v5568_v16  ;;  %v1305_v38 = vmul.f32 %v5568_v16, %v5423_v45 }
 0x18e   :  { %1662 = vmatprep.subr.bf16.mxu0 %v8631_v39 }
 0x18f   :  { %v1347_v34 = vpack.c.bf16 %v1310_v27, %v1309_v23  ;;  %v1346_v58 = vpack.c.bf16 %v1308_v35, %v1307_v51  ;;  %v8186_v27 = vunpack.c.l.s8.bf16 %v5577_v18  ;;  %v8185_v23 = vunpack.c.h.s8.bf16 %v5270_v40  ;;  %v5608_v51 = vld [vmem:[%s8098_s0 + $0xa8] sm:$0xff] }
 0x190   :  { %1426 = vmatmul.mubr.bf16.gmra.mxu1 %v8207_v44  ;;  %v8189_v35 = vunpack.c.h.s8.bf16 %v5555_v41  ;;  %8668 = vst [vmem:[#allocation85_spill] sm:$0xff] %v5608_v51 }
 0x191   :  { %1663 = vmatpush2.bf16.msra.mxu0 %v1350_v13  ;;  %1433 = vmatprep.mubr.bf16.mxu1 %v8204_v37  ;;  %v8192_v13 = vunpack.c.l.s8.bf16 %v5555_v41  ;;  %v5696_v37 = vld [vmem:[%s8098_s0 + $0xe8] sm:$0xff] }
 0x192   :  { %1664 = vmatprep.subr.bf16.mxu0 %v8631_v39  ;;  %8676 = vst [vmem:[#allocation93_spill] sm:$0xff] %v5696_v37 }
 0x195   :  { %1665 = vmatpush2.bf16.msra.mxu0 %v1349_v46  ;;  %v1306_v46 = vmul.f32 %v5563_v17, %v5437_v21  ;;  %v5584_v21 = vld [vmem:[%s8098_s0 + $0x80] sm:$0xff] }
 0x196   :  { %1666 = vmatprep.subr.bf16.mxu0 %v8631_v39  ;;  %8666 = vst [vmem:[#allocation83_spill] sm:$0xff] %v5584_v21  ;;  %v8190_v45 = vunpack.c.l.s8.bf16 %v5584_v21 }
 0x198   :  { %1434 = vmatmul.mubr.bf16.gmra.mxu1 %v8201_v59 }
 0x199   :  { %1667 = vmatpush2.bf16.msra.mxu0 %v1348_v33  ;;  %1441 = vmatprep.mubr.bf16.mxu1 %v8198_v62  ;;  %v1345_v33 = vpack.c.bf16 %v1306_v46, %v1305_v38  ;;  %v8188_v46 = vunpack.c.h.s8.bf16 %v5584_v21  ;;  %v5674_v62 = vld [vmem:[%s8098_s0 + $0xc0] sm:$0xff] }
 0x19a   :  { %1668 = vmatprep.subr.bf16.mxu0 %v8631_v39  ;;  %8674 = vst [vmem:[#allocation91_spill] sm:$0xff] %v5674_v62 }
 0x19d   :  { %1669 = vmatpush2.bf16.msra.mxu0 %v1347_v34  ;;  %v5603_v34 = vld [vmem:[%s8098_s0 + $0x38] sm:$0xff] }
 0x19e   :  { %1670 = vmatprep.subr.bf16.mxu0 %v8631_v39  ;;  %8667 = vst [vmem:[#allocation84_spill] sm:$0xff] %v5603_v34  ;;  %v8213_v38 = vunpack.c.l.s8.bf16 %v5603_v34 }
 0x1a0   :  { %1442 = vmatmul.mubr.bf16.gmra.mxu1 %v8195_v0 }
 0x1a1   :  { %1671 = vmatpush2.bf16.msra.mxu0 %v1346_v58  ;;  %1449 = vmatprep.mubr.bf16.mxu1 %v8192_v13  ;;  %v8187_v58 = vunpack.c.h.s8.bf16 %v5577_v18  ;;  %v5652_v13 = vld [vmem:[%s8098_s0 + $0xc8] sm:$0xff]  ;;  %v8223_v18 = vunpack.c.h.s8.bf16 %v5696_v37 }
 0x1a2   :  { %1672 = vmatprep.subr.bf16.mxu0 %v8631_v39  ;;  %8672 = vst [vmem:[#allocation89_spill] sm:$0xff] %v5652_v13 }
 0x1a5   :  { %1673 = vmatpush2.bf16.msra.mxu0 %v1345_v33  ;;  %v8191_v33 = vunpack.c.l.s8.bf16 %v5608_v51 }
 0x1a6   :  { %2611 = vmatprep.subr.bf16.mxu0 %v8631_v39 }
 0x1a8   :  { %1675 = vmatmul.mubr.bf16.vlgmr.msra.gmra.mxu0 %v8186_v27  ;;  %1450 = vmatmul.mubr.bf16.gmra.mxu1 %v8190_v45  ;;  %v5630_v27 = vld [vmem:[%s8098_s0 + $0xa0] sm:$0xff]  ;;  %v8197_v45 = vunpack.c.h.s8.bf16 %v5608_v51 }
 0x1a9   :  { %1682 = vmatprep.mubr.bf16.mxu0 %v8185_v23  ;;  %1457 = vmatprep.mubr.bf16.mxu1 %v8189_v35  ;;  %v5623_v23 = vld [vmem:[%s8098_s0 + $0x30] sm:$0xff]  ;;  %8670 = vst [vmem:[#allocation87_spill] sm:$0xff] %v5630_v27  ;;  %v8196_v35 = vunpack.c.h.s8.bf16 %v5603_v34 }
 0x1aa   :  { %8669 = vst [vmem:[#allocation86_spill] sm:$0xff] %v5623_v23 }
 0x1b0   :  { %1683 = vmatmul.mubr.bf16.gmra.mxu0 %v8187_v58  ;;  %1458 = vmatmul.mubr.bf16.gmra.mxu1 %v8188_v46  ;;  %v8193_v58 = vunpack.c.l.s8.bf16 %v5623_v23  ;;  %v8194_v46 = vunpack.c.l.s8.bf16 %v5630_v27 }
 0x1b1   :  { %1690 = vmatprep.mubr.bf16.mxu0 %v8213_v38  ;;  %1465 = vmatprep.mubr.bf16.mxu1 %v8191_v33  ;;  %v5647_v33 = vld [vmem:[%s8098_s0 + $0x58] sm:$0xff]  ;;  %v8219_v38 = vunpack.c.l.s8.bf16 %v5718_v36 }
 0x1b2   :  { %8671 = vst [vmem:[#allocation88_spill] sm:$0xff] %v5647_v33  ;;  %v8202_v0 = vunpack.c.l.s8.bf16 %v5647_v33  ;;  %v8208_v59 = vunpack.c.h.s8.bf16 %v5647_v33 }
 0x1b8   :  { %1691 = vmatmul.mubr.bf16.gmra.mxu0 %v8193_v58  ;;  %1466 = vmatmul.mubr.bf16.gmra.mxu1 %v8194_v46  ;;  %v8199_v58 = vunpack.c.h.s8.bf16 %v5623_v23  ;;  %v8200_v46 = vunpack.c.h.s8.bf16 %v5630_v27  ;;  %v5799_v23 = vld [vmem:[%s8098_s0 + $0xb0] sm:$0xff] }
 0x1b9   :  { %1698 = vmatprep.mubr.bf16.mxu0 %v8196_v35  ;;  %1473 = vmatprep.mubr.bf16.mxu1 %v8197_v45  ;;  %v8203_v35 = vunpack.c.l.s8.bf16 %v5652_v13  ;;  %v5667_v45 = vld [vmem:[%s8098_s0 + $0x50] sm:$0xff]  ;;  %8685 = vst [vmem:[#allocation102_spill] sm:$0xff] %v5799_v23 }
 0x1ba   :  { %8673 = vst [vmem:[#allocation90_spill] sm:$0xff] %v5667_v45  ;;  %v6034_v27 = vld [vmem:[%s8098_s0 + $0x150] sm:$0xff] }
 0x1bb   :  { %8705 = vst [vmem:[#allocation122_spill] sm:$0xff] %v6034_v27 }
 0x1c0   :  { %1699 = vmatmul.mubr.bf16.gmra.mxu0 %v8199_v58  ;;  %1474 = vmatmul.mubr.bf16.gmra.mxu1 %v8200_v46  ;;  %v8205_v58 = vunpack.c.l.s8.bf16 %v5667_v45  ;;  %v8206_v46 = vunpack.c.l.s8.bf16 %v5674_v62 }
 0x1c1   :  { %1706 = vmatprep.mubr.bf16.mxu0 %v8202_v0  ;;  %1481 = vmatprep.mubr.bf16.mxu1 %v8203_v35  ;;  %v8209_v0 = vunpack.c.h.s8.bf16 %v5652_v13  ;;  %v5691_v35 = vld [vmem:[%s8098_s0 + $0x78] sm:$0xff] }
 0x1c2   :  { %8675 = vst [vmem:[#allocation92_spill] sm:$0xff] %v5691_v35  ;;  %v8214_v44 = vunpack.c.l.s8.bf16 %v5691_v35 }
 0x1c8   :  { %1707 = vmatmul.mubr.bf16.gmra.mxu0 %v8205_v58  ;;  %1482 = vmatmul.mubr.bf16.gmra.mxu1 %v8206_v46  ;;  %v8211_v58 = vunpack.c.h.s8.bf16 %v5667_v45  ;;  %v8212_v46 = vunpack.c.h.s8.bf16 %v5674_v62 }
 0x1c9   :  { %1714 = vmatprep.mubr.bf16.mxu0 %v8208_v59  ;;  %1489 = vmatprep.mubr.bf16.mxu1 %v8209_v0  ;;  %v8217_v59 = vunpack.c.l.s8.bf16 %v5696_v37  ;;  %v5711_v0 = vld [vmem:[%s8098_s0 + $0x70] sm:$0xff] }
 0x1ca   :  { %8677 = vst [vmem:[#allocation94_spill] sm:$0xff] %v5711_v0 }
 0x1d0   :  { %1715 = vmatmul.mubr.bf16.gmra.mxu0 %v8211_v58  ;;  %1490 = vmatmul.mubr.bf16.gmra.mxu1 %v8212_v46  ;;  %v4555_v58 = vld [vmem:[#allocation7 + $0x38] sm:$0xff]   ;;  %v8218_v46 = vunpack.c.l.s8.bf16 %v5711_v0 }
 0x1d1   :  { %1722 = vmatprep.mubr.bf16.mxu0 %v8214_v44  ;;  %1497 = vmatprep.mubr.bf16.mxu1 %v8217_v59  ;;  %v8222_v44 = vunpack.c.h.s8.bf16 %v5691_v35  ;;  %v5740_v59 = vld [vmem:[%s8098_s0 + $0x108] sm:$0xff]  ;;  %v5755_v35 = vld [vmem:[%s8098_s0 + $0x90] sm:$0xff] }
 0x1d2   :  { %4392 = vmatprep.subr.bf16.mxu1 %v4555_v58  ;;  %8680 = vst [vmem:[#allocation97_spill] sm:$0xff] %v5740_v59  ;;  %8681 = vst [vmem:[#allocation98_spill] sm:$0xff] %v5755_v35  ;;  %v8239_v33 = vunpack.c.h.s8.bf16 %v5740_v59 }
 0x1d3   :  { %4393 = vmatpush3.bf16.msra.mxu1 %v4555_v58  ;;  %v5735_v58 = vld [vmem:[%s8098_s0 + $0x98] sm:$0xff] }
 0x1d4   :  { %8679 = vst [vmem:[#allocation96_spill] sm:$0xff] %v5735_v58  ;;  %v8230_v40 = vunpack.c.l.s8.bf16 %v5735_v58  ;;  %v8238_v45 = vunpack.c.h.s8.bf16 %v5735_v58  ;;  %v4559_v58 = vld [vmem:[#allocation7 + $0x18] sm:$0xff]  }
 0x1d8   :  { %1723 = vmatmul.mubr.bf16.gmra.mxu0 %v8218_v46  ;;  %1498 = vmatmul.mubr.bf16.gmra.mxu1 %v8219_v38  ;;  %v8228_v46 = vunpack.c.h.s8.bf16 %v5711_v0  ;;  %v8229_v38 = vunpack.c.h.s8.bf16 %v5718_v36  ;;  %v5762_v0 = vld [vmem:[%s8098_s0 + $0x100] sm:$0xff]  ;;  %v5982_v36 = vld [vmem:[%s8098_s0 + $0x130] sm:$0xff] }
 0x1d9   :  { %1730 = vmatprep.mubr.bf16.mxu0 %v8222_v44  ;;  %1505 = vmatprep.mubr.bf16.mxu1 %v8223_v18  ;;  %v8235_v44 = vunpack.c.l.s8.bf16 %v5740_v59  ;;  %v4556_v18 = vld [vmem:[#allocation7 + $0x30] sm:$0xff]   ;;  %8682 = vst [vmem:[#allocation99_spill] sm:$0xff] %v5762_v0  ;;  %v4561_v59 = vld [vmem:[#allocation7 + $0x8] sm:$0xff]   ;;  %8701 = vst [vmem:[#allocation118_spill] sm:$0xff] %v5982_v36 }
 0x1da   :  { %4394 = vmatprep.subr.bf16.mxu1 %v4556_v18 }
 0x1db   :  { %4395 = vmatpush3.bf16.msra.mxu1 %v4556_v18  ;;  %v4558_v18 = vld [vmem:[#allocation7 + $0x20] sm:$0xff]  }
 0x1e0   :  { %1731 = vmatmul.mubr.bf16.gmra.mxu0 %v8228_v46  ;;  %1506 = vmatmul.mubr.bf16.gmra.mxu1 %v8229_v38  ;;  %v4557_v46 = vld [vmem:[#allocation7 + $0x28] sm:$0xff]   ;;  %v8236_v38 = vunpack.c.l.s8.bf16 %v5755_v35 }
 0x1e1   :  { %1738 = vmatprep.mubr.bf16.mxu0 %v8230_v40  ;;  %1513 = vmatprep.mubr.bf16.mxu1 %v8235_v44  ;;  %v8237_v40 = vunpack.c.l.s8.bf16 %v5762_v0  ;;  %v5779_v44 = vld [vmem:[%s8098_s0 + $0xb8] sm:$0xff] }
 0x1e2   :  { %4396 = vmatprep.subr.bf16.mxu1 %v4557_v46  ;;  %8683 = vst [vmem:[#allocation100_spill] sm:$0xff] %v5779_v44 }
 0x1e3   :  { %4397 = vmatpush3.bf16.msra.mxu1 %v4557_v46  ;;  %v5784_v46 = vld [vmem:[%s8098_s0 + $0x128] sm:$0xff] }
 0x1e4   :  { %8684 = vst [vmem:[#allocation101_spill] sm:$0xff] %v5784_v46  ;;  %4398 = vmatprep.subr.bf16.mxu1 %v4558_v18 }
 0x1e7   :  { %4399 = vmatpush3.bf16.msra.mxu1 %v4558_v18  ;;  %v5806_v18 = vld [vmem:[%s8098_s0 + $0x120] sm:$0xff] }
 0x1e8   :  { %1739 = vmatmul.mubr.bf16.gmra.mxu0 %v8236_v38  ;;  %1514 = vmatmul.mubr.bf16.gmra.mxu1 %v8237_v40  ;;  %v8244_v38 = vunpack.c.h.s8.bf16 %v5755_v35  ;;  %v8245_v40 = vunpack.c.h.s8.bf16 %v5762_v0  ;;  %8686 = vst [vmem:[#allocation103_spill] sm:$0xff] %v5806_v18  ;;  %v8255_v35 = vunpack.c.h.s8.bf16 %v5779_v44  ;;  %v8257_v0 = vunpack.c.h.s8.bf16 %v5784_v46 }
 0x1e9   :  { %1746 = vmatprep.mubr.bf16.mxu0 %v8238_v45  ;;  %1521 = vmatprep.mubr.bf16.mxu1 %v8239_v33  ;;  %v8246_v45 = vunpack.c.l.s8.bf16 %v5779_v44  ;;  %v8253_v33 = vunpack.c.l.s8.bf16 %v5784_v46  ;;  %v5873_v44 = vld [vmem:[%s8098_s0 + $0x168] sm:$0xff] }
 0x1ea   :  { %4400 = vmatprep.subr.bf16.mxu1 %v4559_v58  ;;  %8692 = vst [vmem:[#allocation109_spill] sm:$0xff] %v5873_v44 }
 0x1eb   :  { %4401 = vmatpush3.bf16.msra.mxu1 %v4559_v58  ;;  %v4562_v58 = vld [vmem:[#allocation7] sm:$0xff]  }
 0x1f0   :  { %1747 = vmatmul.mubr.bf16.gmra.mxu0 %v8244_v38  ;;  %1522 = vmatmul.mubr.bf16.gmra.mxu1 %v8245_v40  ;;  %v4560_v38 = vld [vmem:[#allocation7 + $0x10] sm:$0xff]   ;;  %v8254_v40 = vunpack.c.l.s8.bf16 %v5799_v23 }
 0x1f1   :  { %1754 = vmatprep.mubr.bf16.mxu0 %v8246_v45  ;;  %1529 = vmatprep.mubr.bf16.mxu1 %v8253_v33  ;;  %v8256_v45 = vunpack.c.l.s8.bf16 %v5806_v18  ;;  %v5823_v33 = vld [vmem:[%s8098_s0 + $0xd8] sm:$0xff] }
 0x1f2   :  { %4402 = vmatprep.subr.bf16.mxu1 %v4560_v38  ;;  %8687 = vst [vmem:[#allocation104_spill] sm:$0xff] %v5823_v33 }
 0x1f3   :  { %4403 = vmatpush3.bf16.msra.mxu1 %v4560_v38  ;;  %v5828_v38 = vld [vmem:[%s8098_s0 + $0x148] sm:$0xff] }
 0x1f4   :  { %4404 = vmatprep.subr.bf16.mxu1 %v4561_v59  ;;  %8688 = vst [vmem:[#allocation105_spill] sm:$0xff] %v5828_v38 }
 0x1f7   :  { %4405 = vmatpush3.bf16.msra.mxu1 %v4561_v59  ;;  %v5844_v59 = vld [vmem:[%s8098_s0 + $0xd0] sm:$0xff] }
 0x1f8   :  { %1755 = vmatmul.mubr.bf16.gmra.mxu0 %v8254_v40  ;;  %1530 = vmatmul.mubr.bf16.gmra.mxu1 %v8256_v45  ;;  %v8258_v40 = vunpack.c.h.s8.bf16 %v5799_v23  ;;  %v8262_v45 = vunpack.c.l.s8.bf16 %v5823_v33  ;;  %8689 = vst [vmem:[#allocation106_spill] sm:$0xff] %v5844_v59  ;;  %v8270_v23 = vunpack.c.h.s8.bf16 %v5823_v33 }
 0x1f9   :  { %1762 = vmatprep.mubr.bf16.mxu0 %v8255_v35  ;;  %1537 = vmatprep.mubr.bf16.mxu1 %v8257_v0  ;;  %v8259_v35 = vunpack.c.h.s8.bf16 %v5806_v18  ;;  %v8263_v0 = vunpack.c.l.s8.bf16 %v5828_v38 }
 0x1fa   :  { %4406 = vmatprep.subr.bf16.mxu1 %v4562_v58 }
 0x1fb   :  { %4407 = vmatpush3.bf16.msra.mxu1 %v4562_v58  ;;  %v5851_v58 = vld [vmem:[%s8098_s0 + $0x140] sm:$0xff] }
 0x1fc   :  { %4472 = vmatprep.subr.bf16.mxu1 %v8631_v39  ;;  %8690 = vst [vmem:[#allocation107_spill] sm:$0xff] %v5851_v58 }
 0x200   :  { %1763 = vmatmul.mubr.bf16.gmra.mxu0 %v8258_v40  ;;  %1538 = vmatmul.mubr.bf16.gmra.mxu1 %v8259_v35  ;;  %v8266_v40 = vunpack.c.l.s8.bf16 %v5844_v59  ;;  %v8267_v35 = vunpack.c.l.s8.bf16 %v5851_v58 }
 0x201   :  { %1770 = vmatprep.mubr.bf16.mxu0 %v8262_v45  ;;  %1545 = vmatprep.mubr.bf16.mxu1 %v8263_v0  ;;  %v8271_v45 = vunpack.c.h.s8.bf16 %v5828_v38  ;;  %v5868_v0 = vld [vmem:[%s8098_s0 + $0xf8] sm:$0xff]  ;;  %v5895_v38 = vld [vmem:[%s8098_s0 + $0x160] sm:$0xff] }
 0x202   :  { %8691 = vst [vmem:[#allocation108_spill] sm:$0xff] %v5868_v0  ;;  %v8278_v33 = vunpack.c.l.s8.bf16 %v5868_v0  ;;  %8694 = vst [vmem:[#allocation111_spill] sm:$0xff] %v5895_v38 }
 0x208   :  { %1771 = vmatmul.mubr.bf16.gmra.mxu0 %v8266_v40  ;;  %1546 = vmatmul.mubr.bf16.gmra.mxu1 %v8267_v35  ;;  %v8274_v40 = vunpack.c.h.s8.bf16 %v5844_v59  ;;  %v8275_v35 = vunpack.c.h.s8.bf16 %v5851_v58  ;;  %v8286_v59 = vunpack.c.h.s8.bf16 %v5868_v0  ;;  %v5917_v58 = vld [vmem:[%s8098_s0 + $0x188] sm:$0xff] }
 0x209   :  { %1778 = vmatprep.mubr.bf16.mxu0 %v8270_v23  ;;  %1553 = vmatprep.mubr.bf16.mxu1 %v8271_v45  ;;  %v8279_v23 = vunpack.c.l.s8.bf16 %v5873_v44  ;;  %v5888_v45 = vld [vmem:[%s8098_s0 + $0xf0] sm:$0xff]  ;;  %8696 = vst [vmem:[#allocation113_spill] sm:$0xff] %v5917_v58 }
 0x20a   :  { %8693 = vst [vmem:[#allocation110_spill] sm:$0xff] %v5888_v45 }
 0x210   :  { %1779 = vmatmul.mubr.bf16.gmra.mxu0 %v8274_v40  ;;  %1554 = vmatmul.mubr.bf16.gmra.mxu1 %v8275_v35  ;;  %v8282_v40 = vunpack.c.l.s8.bf16 %v5888_v45  ;;  %v8283_v35 = vunpack.c.l.s8.bf16 %v5895_v38 }
 0x211   :  { %1786 = vmatprep.mubr.bf16.mxu0 %v8278_v33  ;;  %1561 = vmatprep.mubr.bf16.mxu1 %v8279_v23  ;;  %v8287_v33 = vunpack.c.h.s8.bf16 %v5873_v44  ;;  %v5912_v23 = vld [vmem:[%s8098_s0 + $0x118] sm:$0xff]  ;;  %v5939_v44 = vld [vmem:[%s8098_s0 + $0x180] sm:$0xff] }
 0x212   :  { %8695 = vst [vmem:[#allocation112_spill] sm:$0xff] %v5912_v23  ;;  %v8294_v0 = vunpack.c.l.s8.bf16 %v5912_v23  ;;  %8698 = vst [vmem:[#allocation115_spill] sm:$0xff] %v5939_v44 }
 0x218   :  { %1787 = vmatmul.mubr.bf16.gmra.mxu0 %v8282_v40  ;;  %1562 = vmatmul.mubr.bf16.gmra.mxu1 %v8283_v35  ;;  %v8290_v40 = vunpack.c.h.s8.bf16 %v5888_v45  ;;  %v8291_v35 = vunpack.c.h.s8.bf16 %v5895_v38  ;;  %v8304_v45 = vunpack.c.h.s8.bf16 %v5912_v23  ;;  %v5958_v38 = vld [vmem:[%s8098_s0 + $0x138] sm:$0xff] }
 0x219   :  { %1794 = vmatprep.mubr.bf16.mxu0 %v8286_v59  ;;  %1569 = vmatprep.mubr.bf16.mxu1 %v8287_v33  ;;  %v8295_v59 = vunpack.c.l.s8.bf16 %v5917_v58  ;;  %v5932_v33 = vld [vmem:[%s8098_s0 + $0x110] sm:$0xff]  ;;  %8699 = vst [vmem:[#allocation116_spill] sm:$0xff] %v5958_v38  ;;  %v8316_v23 = vunpack.c.l.s8.bf16 %v5958_v38 }
 0x21a   :  { %8697 = vst [vmem:[#allocation114_spill] sm:$0xff] %v5932_v33 }
 0x220   :  { %1795 = vmatmul.mubr.bf16.gmra.mxu0 %v8290_v40  ;;  %1570 = vmatmul.mubr.bf16.gmra.mxu1 %v8291_v35  ;;  %v8300_v40 = vunpack.c.l.s8.bf16 %v5932_v33  ;;  %v8301_v35 = vunpack.c.l.s8.bf16 %v5939_v44 }
 0x221   :  { %1802 = vmatprep.mubr.bf16.mxu0 %v8294_v0  ;;  %1577 = vmatprep.mubr.bf16.mxu1 %v8295_v59  ;;  %v8307_v0 = vunpack.c.h.s8.bf16 %v5917_v58 }
 0x228   :  { %1803 = vmatmul.mubr.bf16.gmra.mxu0 %v8300_v40  ;;  %1578 = vmatmul.mubr.bf16.gmra.mxu1 %v8301_v35  ;;  %v5949_v59 = vpop.f32.mrf.mxu1  ;;  %v5963_v40 = vld [vmem:[%s8098_s0 + $0x1a8] sm:$0xff]  ;;  %v8312_v35 = vunpack.c.h.s8.bf16 %v5932_v33 }
 0x229   :  { %1810 = vmatprep.mubr.bf16.mxu0 %v8304_v45  ;;  %1585 = vmatprep.mubr.bf16.mxu1 %v8307_v0  ;;  %8700 = vst [vmem:[#allocation117_spill] sm:$0xff] %v5963_v40  ;;  %v8313_v45 = vunpack.c.h.s8.bf16 %v5939_v44  ;;  %v8323_v0 = vunpack.c.l.s8.bf16 %v5963_v40  ;;  %v8328_v44 = vunpack.c.h.s8.bf16 %v5958_v38  ;;  %v8331_v37 = vunpack.c.h.s8.bf16 %v5963_v40 }
 0x22a   :  { %v1389_v18 = vpop.f32.mrf.mxu1 }
 0x22c   :  { %v5966_v46 = vpop.f32.mrf.mxu1 }
 0x22e   :  { %v1392_v58 = vpop.f32.mrf.mxu1 }
 0x22f   :  { %v5989_v58 = vld [vmem:[%s8098_s0 + $0x1a0] sm:$0xff] }
 0x230   :  { %1811 = vmatmul.mubr.bf16.gmra.mxu0 %v8312_v35  ;;  %1586 = vmatmul.mubr.bf16.gmra.mxu1 %v8313_v45  ;;  %v5975_v18 = vpop.f32.mrf.mxu1  ;;  %8702 = vst [vmem:[#allocation119_spill] sm:$0xff] %v5989_v58  ;;  %v8324_v45 = vunpack.c.l.s8.bf16 %v5982_v36 }
 0x231   :  { %1818 = vmatprep.mubr.bf16.mxu0 %v8316_v23  ;;  %1593 = vmatprep.mubr.bf16.mxu1 %v8323_v0  ;;  %v8325_v23 = vunpack.c.l.s8.bf16 %v5989_v58 }
 0x232   :  { %v1397_v35 = vpop.f32.mrf.mxu1 }
 0x233   :  { %v6010_v35 = vld [vmem:[%s8098_s0 + $0x158] sm:$0xff] }
 0x234   :  { %v5992_v33 = vpop.f32.mrf.mxu1  ;;  %8703 = vst [vmem:[#allocation120_spill] sm:$0xff] %v6010_v35  ;;  %v8340_v38 = vunpack.c.l.s8.bf16 %v6010_v35 }
 0x236   :  { %v1400_v62 = vpop.f32.mrf.mxu1 }
 0x238   :  { %1819 = vmatmul.mubr.bf16.gmra.mxu0 %v8324_v45  ;;  %1594 = vmatmul.mubr.bf16.gmra.mxu1 %v8325_v23  ;;  %v6001_v0 = vpop.f32.mrf.mxu1  ;;  %v6015_v45 = vld [vmem:[%s8098_s0 + $0x1c8] sm:$0xff]  ;;  %v8336_v23 = vunpack.c.h.s8.bf16 %v5982_v36 }
 0x239   :  { %1826 = vmatprep.mubr.bf16.mxu0 %v8328_v44  ;;  %1601 = vmatprep.mubr.bf16.mxu1 %v8331_v37  ;;  %8704 = vst [vmem:[#allocation121_spill] sm:$0xff] %v6015_v45  ;;  %v8337_v44 = vunpack.c.h.s8.bf16 %v5989_v58  ;;  %v8347_v37 = vunpack.c.l.s8.bf16 %v6015_v45  ;;  %v8352_v58 = vunpack.c.h.s8.bf16 %v6010_v35  ;;  %v8355_v51 = vunpack.c.h.s8.bf16 %v6015_v45 }
 0x23a   :  { %v1405_v62 = vpop.f32.mrf.mxu1 }
 0x23c   :  { %v6018_v13 = vpop.f32.mrf.mxu1 }
 0x23e   :  { %v1408_v40 = vpop.f32.mrf.mxu1 }
 0x23f   :  { %v6041_v40 = vld [vmem:[%s8098_s0 + $0x1c0] sm:$0xff] }
 0x240   :  { %1827 = vmatmul.mubr.bf16.gmra.mxu0 %v8336_v23  ;;  %1602 = vmatmul.mubr.bf16.gmra.mxu1 %v8337_v44  ;;  %v6027_v62 = vpop.f32.mrf.mxu1  ;;  %8706 = vst [vmem:[#allocation123_spill] sm:$0xff] %v6041_v40  ;;  %v8348_v44 = vunpack.c.l.s8.bf16 %v6034_v27 }
 0x241   :  { %1834 = vmatprep.mubr.bf16.mxu0 %v8340_v38  ;;  %1609 = vmatprep.mubr.bf16.mxu1 %v8347_v37  ;;  %v8349_v38 = vunpack.c.l.s8.bf16 %v6041_v40 }
 0x242   :  { %v1413_v23 = vpop.f32.mrf.mxu1 }
 0x243   :  { %v6062_v23 = vld [vmem:[%s8098_s0 + $0x178] sm:$0xff] }
 0x244   :  { %v6044_v36 = vpop.f32.mrf.mxu1  ;;  %8707 = vst [vmem:[#allocation124_spill] sm:$0xff] %v6062_v23  ;;  %v8364_v35 = vunpack.c.l.s8.bf16 %v6062_v23 }
 0x246   :  { %v1416_v21 = vpop.f32.mrf.mxu1 }
 0x248   :  { %1835 = vmatmul.mubr.bf16.gmra.mxu0 %v8348_v44  ;;  %1610 = vmatmul.mubr.bf16.gmra.mxu1 %v8349_v38  ;;  %v6053_v37 = vpop.f32.mrf.mxu1  ;;  %v6067_v44 = vld [vmem:[%s8098_s0 + $0x1e8] sm:$0xff]  ;;  %v8360_v38 = vunpack.c.h.s8.bf16 %v6034_v27 }
 0x249   :  { %1842 = vmatprep.mubr.bf16.mxu0 %v8352_v58  ;;  %1617 = vmatprep.mubr.bf16.mxu1 %v8355_v51  ;;  %8708 = vst [vmem:[#allocation125_spill] sm:$0xff] %v6067_v44  ;;  %v8361_v58 = vunpack.c.h.s8.bf16 %v6041_v40  ;;  %v8371_v51 = vunpack.c.l.s8.bf16 %v6067_v44  ;;  %v8379_v40 = vunpack.c.h.s8.bf16 %v6062_v23  ;;  %v8380_v19 = vunpack.c.h.s8.bf16 %v6067_v44 }
 0x24a   :  { %v1421_v21 = vpop.f32.mrf.mxu1 }
 0x24c   :  { %v6070_v41 = vpop.f32.mrf.mxu1 }
 0x24e   :  { %v1424_v45 = vpop.f32.mrf.mxu1 }
 0x24f   :  { %v6093_v45 = vld [vmem:[%s8098_s0 + $0x1e0] sm:$0xff] }
 0x250   :  { %1843 = vmatmul.mubr.bf16.gmra.mxu0 %v8360_v38  ;;  %1618 = vmatmul.mubr.bf16.gmra.mxu1 %v8361_v58  ;;  %v6079_v21 = vpop.f32.mrf.mxu1  ;;  %8710 = vst [vmem:[#allocation127_spill] sm:$0xff] %v6093_v45  ;;  %v8374_v58 = vunpack.c.l.s8.bf16 %v6086_v49 }
 0x251   :  { %1850 = vmatprep.mubr.bf16.mxu0 %v8364_v35  ;;  %1625 = vmatprep.mubr.bf16.mxu1 %v8371_v51  ;;  %v8375_v35 = vunpack.c.l.s8.bf16 %v6093_v45 }
 0x252   :  { %v1429_v38 = vpop.f32.mrf.mxu1 }
 0x253   :  { %v6114_v38 = vld [vmem:[%s8098_s0 + $0x198] sm:$0xff] }
 0x254   :  { %v6096_v27 = vpop.f32.mrf.mxu1  ;;  %8711 = vst [vmem:[#allocation128_spill] sm:$0xff] %v6114_v38  ;;  %v8389_v39 = vunpack.c.l.s8.bf16 %v6114_v38 }
 0x256   :  { %v1432_v63 = vpop.f32.mrf.mxu1 }
 0x258   :  { %1851 = vmatmul.mubr.bf16.gmra.mxu0 %v8374_v58  ;;  %1626 = vmatmul.mubr.bf16.gmra.mxu1 %v8375_v35  ;;  %v6105_v51 = vpop.f32.mrf.mxu1  ;;  %v8388_v35 = vunpack.c.h.s8.bf16 %v6093_v45 }
 0x259   :  { %1858 = vmatprep.mubr.bf16.mxu0 %v8379_v40  ;;  %1633 = vmatprep.mubr.bf16.mxu1 %v8380_v19 }
 0x25a   :  { %v1437_v63 = vpop.f32.mrf.mxu1 }
 0x25b   :  { %v6132_v63 = vld [vmem:[%s8098_s0 + $0x190] sm:$0xff] }
 0x25c   :  { %v6117_v58 = vpop.f32.mrf.mxu1  ;;  %8712 = vst [vmem:[#allocation129_spill] sm:$0xff] %v6132_v63  ;;  %v8392_v23 = vunpack.c.l.s8.bf16 %v6132_v63 }
 0x25e   :  { %v1440_v34 = vpop.f32.mrf.mxu1 }
 0x260   :  { %1859 = vmatmul.mubr.bf16.gmra.mxu0 %v8383_v54  ;;  %1634 = vmatmul.mubr.bf16.gmra.mxu1 %v8388_v35  ;;  %v6125_v40 = vpop.f32.mrf.mxu1  ;;  %v8393_v54 = vunpack.c.h.s8.bf16 %v6114_v38 }
 0x261   :  { %1866 = vmatprep.mubr.bf16.mxu0 %v8389_v39 }
 0x262   :  { %v1445_v19 = vpop.f32.mrf.mxu1 }
 0x263   :  { %v6148_v19 = vld [vmem:[%s8098_s0 + $0x1b8] sm:$0xff] }
 0x264   :  { %v6135_v34 = vpop.f32.mrf.mxu1  ;;  %8713 = vst [vmem:[#allocation130_spill] sm:$0xff] %v6148_v19 }
 0x266   :  { %v1448_v49 = vpop.f32.mrf.mxu1 }
 0x268   :  { %v1676_v45 = vpop.f32.mrf.mxu0  ;;  %1867 = vmatmul.mubr.bf16.gmra.mxu0 %v8392_v23  ;;  %v6140_v35 = vpop.f32.mrf.mxu1  ;;  %v6154_v23 = vld [vmem:[%s8102_s4] ss:$0 sm:$0xff] }
 0x269   :  { %v1677_v39 = vadd.f32 %v1676_v45, %v5949_v59  ;;  %1874 = vmatprep.mubr.bf16.mxu0 %v8393_v54  ;;  %v8402_v59 = vunpack.c.h.s8.bf16 %v6132_v63  ;;  %v8405_v54 = vunpack.c.l.s8.bf16 %v6148_v19 }
 0x26a   :  { %v1678_v44 = vpop.f32.mrf.mxu0  ;;  %v1453_v50 = vpop.f32.mrf.mxu1 }
 0x26b   :  { %v1931_v49 = vmul.f32 %v1677_v39, %v5233_v10 }
 0x26c   :  { %v1679_v42 = vpop.f32.mrf.mxu0  ;;  %v6157_v45 = vpop.f32.mrf.mxu1 }
 0x26d   :  { %v1680_v44 = vadd.f32 %v1679_v42, %v5966_v46  ;;  %v2002_v50 = vadd.f32 %v6154_v23, %v1931_v49 }
 0x26e   :  { %v1681_v38 = vpop.f32.mrf.mxu0  ;;  %v1456_v47 = vpop.f32.mrf.mxu1 }
 0x26f   :  { %v1932_v39 = vmul.f32 %v1680_v44, %v5231_v9  ;;  %v6174_v47 = vld [vmem:[%s8098_s0 + $0x1b0] sm:$0xff]  ;;  %v2066_v38 = vmax.f32 %v2002_v50, 0.0 }
 0x270   :  { %v1684_v10 = vpop.f32.mrf.mxu0  ;;  %1875 = vmatmul.mubr.bf16.gmra.mxu0 %v8402_v59  ;;  %v6165_v43 = vpop.f32.mrf.mxu1  ;;  %8714 = vst [vmem:[#allocation131_spill] sm:$0xff] %v6174_v47  ;;  %v8413_v63 = vunpack.c.l.s8.bf16 %v6174_v47 }
 0x271   :  { %v2003_v29 = vadd.f32 %v6154_v23, %v1932_v39  ;;  %v1685_v12 = vadd.f32 %v1684_v10, %v5975_v18  ;;  %1882 = vmatprep.mubr.bf16.mxu0 %v8405_v54  ;;  %v8412_v54 = vunpack.c.h.s8.bf16 %v6148_v19 }
 0x272   :  { %v1686_v42 = vpop.f32.mrf.mxu0  ;;  %v1461_v46 = vpop.f32.mrf.mxu1 }
 0x273   :  { %v2067_v49 = vmax.f32 %v2003_v29, 0.0  ;;  %v1933_v44 = vmul.f32 %v1685_v12, %v5217_v4  ;;  %v8717_v4 = vld [vmem:[#allocation30_spill] sm:$0xff] }
 0x274   :  { %v1687_v59 = vpop.f32.mrf.mxu0  ;;  %v6178_v39 = vpop.f32.mrf.mxu1 }
 0x275   :  { %v1688_v10 = vadd.f32 %v1687_v59, %v5992_v33  ;;  %v2130_v18 = vpack.c.bf16 %v2067_v49, %v2066_v38  ;;  %v2004_v32 = vadd.f32 %v6154_v23, %v1933_v44  ;;  %v8716_v49 = vld [vmem:[#allocation31_spill] sm:$0xff] }
 0x276   :  { %v1689_v9 = vpop.f32.mrf.mxu0  ;;  %v1464_v8 = vpop.f32.mrf.mxu1 }
 0x277   :  { %v1934_v42 = vmul.f32 %v1688_v10, %v5215_v3  ;;  %4408 = vmatprep.mubr.bf16.mxu1 %v2130_v18  ;;  %v6195_v8 = vld [vmem:[%s8098_s0 + $0x1d8] sm:$0xff]  ;;  %v2068_v46 = vmax.f32 %v2004_v32, 0.0  ;;  %v8418_v18 = vunpack.c.h.s8.bf16 %v6174_v47 }
 0x278   :  { %v1692_v29 = vpop.f32.mrf.mxu0  ;;  %1883 = vmatmul.mubr.bf16.gmra.mxu0 %v8413_v63  ;;  %v6186_v12 = vpop.f32.mrf.mxu1  ;;  %8715 = vst [vmem:[#allocation132_spill] sm:$0xff] %v6195_v8 }
 0x279   :  { %v2005_v50 = vadd.f32 %v6154_v23, %v1934_v42  ;;  %v1693_v33 = vadd.f32 %v1692_v29, %v6001_v0  ;;  %1890 = vmatprep.mubr.bf16.mxu0 %v8412_v54 }
 0x27a   :  { %v1694_v9 = vpop.f32.mrf.mxu0  ;;  %v1469_v59 = vpop.f32.mrf.mxu1 }
 0x27b   :  { %v2069_v38 = vmax.f32 %v2005_v50, 0.0  ;;  %v1935_v44 = vmul.f32 %v1693_v33, %v8716_v49  ;;  %v8419_v9 = vunpack.c.l.s8.bf16 %v6195_v8 }
 0x27c   :  { %v1695_v10 = vpop.f32.mrf.mxu0  ;;  %v6199_v42 = vpop.f32.mrf.mxu1 }
 0x27d   :  { %v2131_v0 = vpack.c.bf16 %v2069_v38, %v2068_v46  ;;  %v1696_v29 = vadd.f32 %v1695_v10, %v6018_v13  ;;  %v2006_v19 = vadd.f32 %v6154_v23, %v1935_v44  ;;  %v8719_v10 = vld [vmem:[#allocation29_spill] sm:$0xff] }
 0x27e   :  { %v1697_v54 = vpop.f32.mrf.mxu0  ;;  %v1472_v63 = vpop.f32.mrf.mxu1 }
 0x27f   :  { %v1936_v59 = vmul.f32 %v1696_v29, %v8717_v4  ;;  %4409 = vmatmul.mubr.bf16.vlgmr.msra.gmra.mxu1 %v2131_v0  ;;  %v6216_v54 = vld [vmem:[%s8098_s0 + $0x1d0] sm:$0xff]  ;;  %v2070_v38 = vmax.f32 %v2006_v19, 0.0 }
 0x280   :  { %v1700_v32 = vpop.f32.mrf.mxu0  ;;  %1891 = vmatmul.mubr.bf16.gmra.mxu0 %v8418_v18  ;;  %v6207_v50 = vpop.f32.mrf.mxu1  ;;  %8718 = vst [vmem:[#allocation133_spill] sm:$0xff] %v6216_v54  ;;  %v8424_v18 = vunpack.c.l.s8.bf16 %v6216_v54 }
 0x281   :  { %v2007_v33 = vadd.f32 %v6154_v23, %v1936_v59  ;;  %v1701_v46 = vadd.f32 %v1700_v32, %v6027_v62  ;;  %1898 = vmatprep.mubr.bf16.mxu0 %v8419_v9  ;;  %v8425_v9 = vunpack.c.h.s8.bf16 %v6195_v8 }
 0x282   :  { %v1702_v13 = vpop.f32.mrf.mxu0  ;;  %v1477_v63 = vpop.f32.mrf.mxu1 }
 0x283   :  { %v2071_v44 = vmax.f32 %v2007_v33, 0.0  ;;  %v1937_v0 = vmul.f32 %v1701_v46, %v8719_v10  ;;  %v8720_v13 = vld [vmem:[#allocation28_spill] sm:$0xff] }
 0x284   :  { %v1703_v29 = vpop.f32.mrf.mxu0  ;;  %v6220_v59 = vpop.f32.mrf.mxu1  ;;  %v8723_v10 = vld [vmem:[#allocation24_spill] sm:$0xff] }
 0x285   :  { %v1704_v62 = vadd.f32 %v1703_v29, %v6044_v36  ;;  %v2132_v32 = vpack.c.bf16 %v2071_v44, %v2070_v38  ;;  %v2008_v49 = vadd.f32 %v6154_v23, %v1937_v0  ;;  %v8722_v29 = vld [vmem:[#allocation25_spill] sm:$0xff] }
 0x286   :  { %v1705_v47 = vpop.f32.mrf.mxu0  ;;  %v1480_v3 = vpop.f32.mrf.mxu1 }
 0x287   :  { %v1938_v63 = vmul.f32 %v1704_v62, %v8720_v13  ;;  %4412 = vmatprep.mubr.bf16.mxu1 %v2132_v32  ;;  %v6237_v3 = vld [vmem:[%s8098_s0 + $0x1f8] sm:$0xff]  ;;  %v2072_v44 = vmax.f32 %v2008_v49, 0.0 }
 0x288   :  { %v1708_v19 = vpop.f32.mrf.mxu0  ;;  %1899 = vmatmul.mubr.bf16.gmra.mxu0 %v8424_v18  ;;  %v6228_v33 = vpop.f32.mrf.mxu1  ;;  %8721 = vst [vmem:[#allocation134_spill] sm:$0xff] %v6237_v3  ;;  %v8428_v18 = vunpack.c.h.s8.bf16 %v6216_v54 }
 0x289   :  { %v2009_v46 = vadd.f32 %v6154_v23, %v1938_v63  ;;  %v1709_v36 = vadd.f32 %v1708_v19, %v6053_v37  ;;  %1906 = vmatprep.mubr.bf16.mxu0 %v8425_v9 }
 0x28a   :  { %v1710_v47 = vpop.f32.mrf.mxu0  ;;  %v1485_v38 = vpop.f32.mrf.mxu1 }
 0x28b   :  { %v2073_v0 = vmax.f32 %v2009_v46, 0.0  ;;  %v1939_v62 = vmul.f32 %v1709_v36, %v8722_v29  ;;  %v8429_v47 = vunpack.c.l.s8.bf16 %v6237_v3 }
 0x28c   :  { %v1711_v32 = vpop.f32.mrf.mxu0  ;;  %v6241_v63 = vpop.f32.mrf.mxu1 }
 0x28d   :  { %v2133_v37 = vpack.c.bf16 %v2073_v0, %v2072_v44  ;;  %v1712_v19 = vadd.f32 %v1711_v32, %v6070_v41  ;;  %v2010_v4 = vadd.f32 %v6154_v23, %v1939_v62  ;;  %v6258_v41 = vld [vmem:[%s8098_s0 + $0x1f0] sm:$0xff]  ;;  %v8725_v32 = vld [vmem:[#allocation21_spill] sm:$0xff] }
 0x28e   :  { %v1713_v9 = vpop.f32.mrf.mxu0  ;;  %v1488_v8 = vpop.f32.mrf.mxu1  ;;  %8724 = vst [vmem:[#allocation135_spill] sm:$0xff] %v6258_v41 }
 0x28f   :  { %v1940_v38 = vmul.f32 %v1712_v19, %v8723_v10  ;;  %4413 = vmatmul.mubr.bf16.gmra.mxu1 %v2133_v37  ;;  %v2074_v0 = vmax.f32 %v2010_v4, 0.0 }
 0x290   :  { %v1716_v49 = vpop.f32.mrf.mxu0  ;;  %1907 = vmatmul.mubr.bf16.gmra.mxu0 %v8428_v18  ;;  %v6249_v46 = vpop.f32.mrf.mxu1  ;;  %v8432_v18 = vunpack.c.l.s8.bf16 %v6258_v41 }
 0x291   :  { %v2011_v36 = vadd.f32 %v6154_v23, %v1940_v38  ;;  %v1717_v44 = vadd.f32 %v1716_v49, %v6079_v21  ;;  %1914 = vmatprep.mubr.bf16.mxu0 %v8429_v47  ;;  %v8433_v47 = vunpack.c.h.s8.bf16 %v6237_v3 }
 0x292   :  { %v1718_v8 = vpop.f32.mrf.mxu0  ;;  %v1493_v9 = vpop.f32.mrf.mxu1 }
 0x293   :  { %v2075_v62 = vmax.f32 %v2011_v36, 0.0  ;;  %v1941_v37 = vmul.f32 %v1717_v44, %v8725_v32  ;;  %v8726_v8 = vld [vmem:[#allocation20_spill] sm:$0xff] }
 0x294   :  { %v1719_v19 = vpop.f32.mrf.mxu0  ;;  %v6262_v38 = vpop.f32.mrf.mxu1 }
 0x295   :  { %v1720_v21 = vadd.f32 %v1719_v19, %v6096_v27  ;;  %v2134_v49 = vpack.c.bf16 %v2075_v62, %v2074_v0  ;;  %v2012_v29 = vadd.f32 %v6154_v23, %v1941_v37  ;;  %v8727_v37 = vld [vmem:[#allocation17_spill] sm:$0xff] }
 0x296   :  { %v1721_v54 = vpop.f32.mrf.mxu0  ;;  %v1496_v13 = vpop.f32.mrf.mxu1 }
 0x297   :  { %v1942_v9 = vmul.f32 %v1720_v21, %v8726_v8  ;;  %4416 = vmatprep.mubr.bf16.mxu1 %v2134_v49  ;;  %v2076_v0 = vmax.f32 %v2012_v29, 0.0  ;;  %v8434_v49 = vunpack.c.h.s8.bf16 %v6258_v41 }
 0x298   :  { %v1724_v4 = vpop.f32.mrf.mxu0  ;;  %1915 = vmatmul.mubr.bf16.gmra.mxu0 %v8432_v18  ;;  %v6270_v36 = vpop.f32.mrf.mxu1 }
 0x299   :  { %v2013_v44 = vadd.f32 %v6154_v23, %v1942_v9  ;;  %v1725_v27 = vadd.f32 %v1724_v4, %v6105_v51  ;;  %1922 = vmatprep.mubr.bf16.mxu0 %v8433_v47  ;;  %v8728_v4 = vld [vmem:[#allocation16_spill] sm:$0xff] }
 0x29a   :  { %v1726_v54 = vpop.f32.mrf.mxu0  ;;  %v1501_v13 = vpop.f32.mrf.mxu1 }
 0x29b   :  { %v2077_v62 = vmax.f32 %v2013_v44, 0.0  ;;  %v1943_v19 = vmul.f32 %v1725_v27, %v8727_v37  ;;  %v8729_v13 = vunpack.c.l.s8.bf16 %v5226_v7 }
 0x29c   :  { %v1727_v21 = vpop.f32.mrf.mxu0  ;;  %v6278_v10 = vpop.f32.mrf.mxu1 }
 0x29d   :  { %v2135_v18 = vpack.c.bf16 %v2077_v62, %v2076_v0  ;;  %v1728_v32 = vadd.f32 %v1727_v21, %v6117_v58  ;;  %v2014_v51 = vadd.f32 %v6154_v23, %v1943_v19  ;;  %v8730_v19 = vld [vmem:[#allocation13_spill] sm:$0xff] }
 0x29e   :  { %v1729_v9 = vpop.f32.mrf.mxu0  ;;  %v1504_v8 = vpop.f32.mrf.mxu1 }
 0x29f   :  { %v1944_v47 = vmul.f32 %v1728_v32, %v8728_v4  ;;  %4417 = vmatmul.mubr.bf16.gmra.mxu1 %v2135_v18  ;;  %v2078_v0 = vmax.f32 %v2014_v51, 0.0 }
 0x2a0   :  { %v1732_v54 = vpop.f32.mrf.mxu0  ;;  %1923 = vmatmul.mubr.bf16.gmra.mxu0 %v8434_v49  ;;  %v6285_v29 = vpop.f32.mrf.mxu1 }
 0x2a1   :  { %v2015_v44 = vadd.f32 %v6154_v23, %v1944_v47  ;;  %v1733_v27 = vadd.f32 %v1732_v54, %v6125_v40  ;;  %2643 = vmatprep.mubr.bf16.mxu0 %v8729_v13  ;;  %v8731_v40 = vld [vmem:[#allocation15_spill] sm:$0xff] }
 0x2a2   :  { %v1734_v58 = vpop.f32.mrf.mxu0  ;;  %v1509_v8 = vpop.f32.mrf.mxu1 }
 0x2a3   :  { %v2079_v62 = vmax.f32 %v2015_v44, 0.0  ;;  %v1945_v32 = vmul.f32 %v1733_v27, %v8730_v19 }
 0x2a4   :  { %v1735_v18 = vpop.f32.mrf.mxu0  ;;  %v6292_v21 = vpop.f32.mrf.mxu1 }
 0x2a5   :  { %v1736_v9 = vadd.f32 %v1735_v18, %v6135_v34  ;;  %v2136_v49 = vpack.c.bf16 %v2079_v62, %v2078_v0  ;;  %v2016_v47 = vadd.f32 %v6154_v23, %v1945_v32 }
 0x2a6   :  { %v1737_v41 = vpop.f32.mrf.mxu0  ;;  %v1512_v3 = vpop.f32.mrf.mxu1 }
 0x2a7   :  { %v1946_v54 = vmul.f32 %v1736_v9, %v8731_v40  ;;  %4420 = vmatprep.mubr.bf16.mxu1 %v2136_v49  ;;  %v2080_v7 = vmax.f32 %v2016_v47, 0.0 }
 0x2a8   :  { %v1740_v13 = vpop.f32.mrf.mxu0  ;;  %v6297_v58 = vpop.f32.mrf.mxu1 }
 0x2a9   :  { %v2017_v51 = vadd.f32 %v6154_v23, %v1946_v54  ;;  %v1741_v44 = vadd.f32 %v1740_v13, %v6140_v35 }
 0x2aa   :  { %v1742_v27 = vpop.f32.mrf.mxu0  ;;  %v1517_v8 = vpop.f32.mrf.mxu1 }
 0x2ab   :  { %v2081_v37 = vmax.f32 %v2017_v51, 0.0  ;;  %v1947_v34 = vmul.f32 %v1741_v44, %v5401_v48 }
 0x2ac   :  { %v1743_v41 = vpop.f32.mrf.mxu0  ;;  %v6302_v3 = vpop.f32.mrf.mxu1 }
 0x2ad   :  { %v2137_v0 = vpack.c.bf16 %v2081_v37, %v2080_v7  ;;  %v1744_v62 = vadd.f32 %v1743_v41, %v6157_v45  ;;  %v2018_v18 = vadd.f32 %v6154_v23, %v1947_v34 }
 0x2ae   :  { %v1745_v49 = vpop.f32.mrf.mxu0  ;;  %v1520_v32 = vpop.f32.mrf.mxu1 }
 0x2af   :  { %v1948_v9 = vmul.f32 %v1744_v62, %v5396_v25  ;;  %4421 = vmatmul.mubr.bf16.gmra.mxu1 %v2137_v0  ;;  %v2082_v27 = vmax.f32 %v2018_v18, 0.0  ;;  %v8734_v25 = vld [vmem:[#allocation58_spill] sm:$0xff] }
 0x2b0   :  { %v1748_v35 = vpop.f32.mrf.mxu0  ;;  %v6307_v54 = vpop.f32.mrf.mxu1 }
 0x2b1   :  { %v2019_v47 = vadd.f32 %v6154_v23, %v1948_v9  ;;  %v1749_v13 = vadd.f32 %v1748_v35, %v6165_v43 }
 0x2b2   :  { %v1750_v51 = vpop.f32.mrf.mxu0  ;;  %v1525_v44 = vpop.f32.mrf.mxu1 }
 0x2b3   :  { %v2083_v7 = vmax.f32 %v2019_v47, 0.0  ;;  %v1949_v45 = vmul.f32 %v1749_v13, %v5374_v24 }
 0x2b4   :  { %v1751_v37 = vpop.f32.mrf.mxu0  ;;  %v6312_v8 = vpop.f32.mrf.mxu1 }
 0x2b5   :  { %v1752_v34 = vadd.f32 %v1751_v37, %v6178_v39  ;;  %v2138_v41 = vpack.c.bf16 %v2083_v7, %v2082_v27  ;;  %v2020_v49 = vadd.f32 %v6154_v23, %v1949_v45 }
 0x2b6   :  { %v1753_v0 = vpop.f32.mrf.mxu0  ;;  %v1528_v62 = vpop.f32.mrf.mxu1 }
 0x2b7   :  { %v1950_v32 = vmul.f32 %v1752_v34, %v5367_v15  ;;  %4424 = vmatprep.mubr.bf16.mxu1 %v2138_v41  ;;  %v2084_v51 = vmax.f32 %v2020_v49, 0.0  ;;  %v8732_v62 = vld [vmem:[#allocation62_spill] sm:$0xff] }
 0x2b8   :  { %v1756_v43 = vpop.f32.mrf.mxu0  ;;  %v6317_v9 = vpop.f32.mrf.mxu1  ;;  %v8736_v15 = vld [vmem:[#allocation54_spill] sm:$0xff] }
 0x2b9   :  { %v2021_v18 = vadd.f32 %v6154_v23, %v1950_v32  ;;  %v1757_v35 = vadd.f32 %v1756_v43, %v6186_v12 }
 0x2ba   :  { %v1758_v47 = vpop.f32.mrf.mxu0  ;;  %v1533_v13 = vpop.f32.mrf.mxu1 }
 0x2bb   :  { %v2085_v44 = vmax.f32 %v2021_v18, 0.0  ;;  %v1951_v39 = vmul.f32 %v1757_v35, %v5344_v22 }
 0x2bc   :  { %v1759_v27 = vpop.f32.mrf.mxu0  ;;  %v6322_v7 = vpop.f32.mrf.mxu1 }
 0x2bd   :  { %v2139_v45 = vpack.c.bf16 %v2085_v44, %v2084_v51  ;;  %v1760_v37 = vadd.f32 %v1759_v27, %v6199_v42  ;;  %v2022_v0 = vadd.f32 %v6154_v23, %v1951_v39  ;;  %v8733_v44 = vld [vmem:[#allocation59_spill] sm:$0xff] }
 0x2be   :  { %v1761_v34 = vpop.f32.mrf.mxu0  ;;  %v1536_v41 = vpop.f32.mrf.mxu1 }
 0x2bf   :  { %v1952_v32 = vmul.f32 %v1760_v37, %v8732_v62  ;;  %4425 = vmatmul.mubr.bf16.gmra.mxu1 %v2139_v45  ;;  %v2086_v13 = vmax.f32 %v2022_v0, 0.0  ;;  %v8738_v62 = vld [vmem:[#allocation49_spill] sm:$0xff] }
 0x2c0   :  { %v1764_v12 = vpop.f32.mrf.mxu0  ;;  %v6327_v43 = vpop.f32.mrf.mxu1 }
 0x2c1   :  { %v2023_v49 = vadd.f32 %v6154_v23, %v1952_v32  ;;  %v1765_v18 = vadd.f32 %v1764_v12, %v6207_v50 }
 0x2c2   :  { %v1766_v35 = vpop.f32.mrf.mxu0  ;;  %v1541_v47 = vpop.f32.mrf.mxu1 }
 0x2c3   :  { %v2087_v51 = vmax.f32 %v2023_v49, 0.0  ;;  %v1953_v42 = vmul.f32 %v1765_v18, %v8733_v44 }
 0x2c4   :  { %v1767_v27 = vpop.f32.mrf.mxu0  ;;  %v6332_v34 = vpop.f32.mrf.mxu1 }
 0x2c5   :  { %v1768_v39 = vadd.f32 %v1767_v27, %v6220_v59  ;;  %v2140_v37 = vpack.c.bf16 %v2087_v51, %v2086_v13  ;;  %v2024_v48 = vadd.f32 %v6154_v23, %v1953_v42  ;;  %v8735_v59 = vld [vmem:[#allocation55_spill] sm:$0xff] }
 0x2c6   :  { %v1769_v45 = vpop.f32.mrf.mxu0  ;;  %v1544_v41 = vpop.f32.mrf.mxu1 }
 0x2c7   :  { %v1954_v32 = vmul.f32 %v1768_v39, %v8734_v25  ;;  %4428 = vmatprep.mubr.bf16.mxu1 %v2140_v37  ;;  %v2088_v47 = vmax.f32 %v2024_v48, 0.0  ;;  %v8740_v25 = vld [vmem:[#allocation45_spill] sm:$0xff] }
 0x2c8   :  { %v1772_v50 = vpop.f32.mrf.mxu0  ;;  %v6337_v12 = vpop.f32.mrf.mxu1 }
 0x2c9   :  { %v2025_v0 = vadd.f32 %v6154_v23, %v1954_v32  ;;  %v1773_v49 = vadd.f32 %v1772_v50, %v6228_v33 }
 0x2ca   :  { %v1774_v18 = vpop.f32.mrf.mxu0  ;;  %v1549_v35 = vpop.f32.mrf.mxu1 }
 0x2cb   :  { %v2089_v24 = vmax.f32 %v2025_v0, 0.0  ;;  %v1955_v13 = vmul.f32 %v1773_v49, %v8735_v59 }
 0x2cc   :  { %v1775_v51 = vpop.f32.mrf.mxu0  ;;  %v6342_v27 = vpop.f32.mrf.mxu1 }
 0x2cd   :  { %v2141_v42 = vpack.c.bf16 %v2089_v24, %v2088_v47  ;;  %v1776_v39 = vadd.f32 %v1775_v51, %v6241_v63  ;;  %v2026_v41 = vadd.f32 %v6154_v23, %v1955_v13  ;;  %v8737_v47 = vld [vmem:[#allocation50_spill] sm:$0xff] }
 0x2ce   :  { %v1777_v37 = vpop.f32.mrf.mxu0  ;;  %v1552_v45 = vpop.f32.mrf.mxu1 }
 0x2cf   :  { %v1956_v32 = vmul.f32 %v1776_v39, %v8736_v15  ;;  %4429 = vmatmul.mubr.bf16.gmra.mxu1 %v2141_v42  ;;  %v2090_v35 = vmax.f32 %v2026_v41, 0.0  ;;  %v8742_v15 = vld [vmem:[#allocation41_spill] sm:$0xff] }
 0x2d0   :  { %v1780_v33 = vpop.f32.mrf.mxu0  ;;  %v6347_v50 = vpop.f32.mrf.mxu1 }
 0x2d1   :  { %v2027_v48 = vadd.f32 %v6154_v23, %v1956_v32  ;;  %v1781_v0 = vadd.f32 %v1780_v33, %v6249_v46 }
 0x2d2   :  { %v1782_v49 = vpop.f32.mrf.mxu0  ;;  %v1557_v18 = vpop.f32.mrf.mxu1 }
 0x2d3   :  { %v2091_v24 = vmax.f32 %v2027_v48, 0.0  ;;  %v1957_v63 = vmul.f32 %v1781_v0, %v8737_v47 }
 0x2d4   :  { %v1783_v51 = vpop.f32.mrf.mxu0  ;;  %v6352_v37 = vpop.f32.mrf.mxu1 }
 0x2d5   :  { %v1784_v13 = vadd.f32 %v1783_v51, %v6262_v38  ;;  %v2142_v39 = vpack.c.bf16 %v2091_v24, %v2090_v35  ;;  %v2028_v22 = vadd.f32 %v6154_v23, %v1957_v63  ;;  %v8739_v38 = vld [vmem:[#allocation46_spill] sm:$0xff] }
 0x2d6   :  { %v1785_v42 = vpop.f32.mrf.mxu0  ;;  %v1560_v45 = vpop.f32.mrf.mxu1 }
 0x2d7   :  { %v1958_v32 = vmul.f32 %v1784_v13, %v8738_v62  ;;  %4432 = vmatprep.mubr.bf16.mxu1 %v2142_v39  ;;  %v2092_v18 = vmax.f32 %v2028_v22, 0.0 }
 0x2d8   :  { %v1788_v46 = vpop.f32.mrf.mxu0  ;;  %v6357_v33 = vpop.f32.mrf.mxu1 }
 0x2d9   :  { %v2029_v41 = vadd.f32 %v6154_v23, %v1958_v32  ;;  %v1789_v48 = vadd.f32 %v1788_v46, %v6270_v36 }
 0x2da   :  { %v1790_v0 = vpop.f32.mrf.mxu0  ;;  %v1565_v49 = vpop.f32.mrf.mxu1 }
 0x2db   :  { %v2093_v44 = vmax.f32 %v2029_v41, 0.0  ;;  %v1959_v35 = vmul.f32 %v1789_v48, %v8739_v38 }
 0x2dc   :  { %v1791_v24 = vpop.f32.mrf.mxu0  ;;  %v6362_v51 = vpop.f32.mrf.mxu1 }
 0x2dd   :  { %v2143_v63 = vpack.c.bf16 %v2093_v44, %v2092_v18  ;;  %v1792_v13 = vadd.f32 %v1791_v24, %v6278_v10  ;;  %v2030_v45 = vadd.f32 %v6154_v23, %v1959_v35  ;;  %v8741_v18 = vld [vmem:[#allocation42_spill] sm:$0xff] }
 0x2de   :  { %v1793_v39 = vpop.f32.mrf.mxu0  ;;  %v1568_v42 = vpop.f32.mrf.mxu1 }
 0x2df   :  { %v1960_v32 = vmul.f32 %v1792_v13, %v8740_v25  ;;  %4433 = vmatmul.mubr.bf16.gmra.mxu1 %v2143_v63  ;;  %v2094_v49 = vmax.f32 %v2030_v45, 0.0 }
 0x2e0   :  { %v1796_v36 = vpop.f32.mrf.mxu0  ;;  %v6367_v46 = vpop.f32.mrf.mxu1 }
 0x2e1   :  { %v2031_v22 = vadd.f32 %v6154_v23, %v1960_v32  ;;  %v1797_v41 = vadd.f32 %v1796_v36, %v6285_v29 }
 0x2e2   :  { %v1798_v48 = vpop.f32.mrf.mxu0  ;;  %v1573_v0 = vpop.f32.mrf.mxu1 }
 0x2e3   :  { %v2095_v44 = vmax.f32 %v2031_v22, 0.0  ;;  %v1961_v10 = vmul.f32 %v1797_v41, %v8741_v18 }
 0x2e4   :  { %v1799_v24 = vpop.f32.mrf.mxu0  ;;  %v6372_v39 = vpop.f32.mrf.mxu1 }
 0x2e5   :  { %v1800_v35 = vadd.f32 %v1799_v24, %v6292_v21  ;;  %v2144_v13 = vpack.c.bf16 %v2095_v44, %v2094_v49  ;;  %v2032_v59 = vadd.f32 %v6154_v23, %v1961_v10 }
 0x2e6   :  { %v1801_v63 = vpop.f32.mrf.mxu0  ;;  %v1576_v42 = vpop.f32.mrf.mxu1 }
 0x2e7   :  { %v1962_v32 = vmul.f32 %v1800_v35, %v8742_v15  ;;  %4436 = vmatprep.mubr.bf16.mxu1 %v2144_v13  ;;  %v2096_v0 = vmax.f32 %v2032_v59, 0.0 }
 0x2e8   :  { %v1804_v29 = vpop.f32.mrf.mxu0  ;;  %v6377_v36 = vpop.f32.mrf.mxu1 }
 0x2e9   :  { %v2033_v45 = vadd.f32 %v6154_v23, %v1962_v32  ;;  %v1805_v22 = vadd.f32 %v1804_v29, %v6297_v58 }
 0x2ea   :  { %v1806_v41 = vpop.f32.mrf.mxu0  ;;  %v1581_v48 = vpop.f32.mrf.mxu1 }
 0x2eb   :  { %v2097_v47 = vmax.f32 %v2033_v45, 0.0  ;;  %v1963_v21 = vmul.f32 %v1805_v22, %v8654_v14  ;;  %v8744_v14 = vld [vmem:[#allocation18_spill] sm:$0xff] }
 0x2ec   :  { %v1807_v49 = vpop.f32.mrf.mxu0  ;;  %v6382_v44 = vpop.f32.mrf.mxu1 }
 0x2ed   :  { %v2145_v10 = vpack.c.bf16 %v2097_v47, %v2096_v0  ;;  %v1808_v24 = vadd.f32 %v1807_v49, %v6302_v3  ;;  %v2034_v63 = vadd.f32 %v6154_v23, %v1963_v21 }
 0x2ee   :  { %v1809_v35 = vpop.f32.mrf.mxu0  ;;  %v1584_v13 = vpop.f32.mrf.mxu1 }
 0x2ef   :  { %v1964_v42 = vmul.f32 %v1808_v24, %v5235_v11  ;;  %4437 = vmatmul.mubr.bf16.gmra.mxu1 %v2145_v10  ;;  %v2098_v41 = vmax.f32 %v2034_v63, 0.0 }
 0x2f0   :  { %v1812_v58 = vpop.f32.mrf.mxu0  ;;  %v6387_v32 = vpop.f32.mrf.mxu1 }
 0x2f1   :  { %v2035_v59 = vadd.f32 %v6154_v23, %v1964_v42  ;;  %v1813_v29 = vadd.f32 %v1812_v58, %v6307_v54 }
 0x2f2   :  { %v1814_v45 = vpop.f32.mrf.mxu0  ;;  %v1589_v22 = vpop.f32.mrf.mxu1 }
 0x2f3   :  { %v2099_v47 = vmax.f32 %v2035_v59, 0.0  ;;  %v1965_v3 = vmul.f32 %v1813_v29, %v5221_v6  ;;  %v8746_v6 = vld [vmem:[#allocation14_spill] sm:$0xff] }
 0x2f4   :  { %v1815_v48 = vpop.f32.mrf.mxu0  ;;  %v6392_v0 = vpop.f32.mrf.mxu1 }
 0x2f5   :  { %v1816_v21 = vadd.f32 %v1815_v48, %v6312_v8  ;;  %v2146_v49 = vpack.c.bf16 %v2099_v47, %v2098_v41  ;;  %v2036_v35 = vadd.f32 %v6154_v23, %v1965_v3 }
 0x2f6   :  { %v1817_v10 = vpop.f32.mrf.mxu0  ;;  %v1592_v24 = vpop.f32.mrf.mxu1 }
 0x2f7   :  { %v1966_v13 = vmul.f32 %v1816_v21, %v5219_v5  ;;  %4440 = vmatprep.mubr.bf16.mxu1 %v2146_v49  ;;  %v2100_v45 = vmax.f32 %v2036_v35, 0.0 }
 0x2f8   :  { %v1820_v54 = vpop.f32.mrf.mxu0  ;;  %v6397_v42 = vpop.f32.mrf.mxu1 }
 0x2f9   :  { %v2037_v63 = vadd.f32 %v6154_v23, %v1966_v13  ;;  %v1821_v58 = vadd.f32 %v1820_v54, %v6317_v9 }
 0x2fa   :  { %v1822_v59 = vpop.f32.mrf.mxu0  ;;  %v1597_v29 = vpop.f32.mrf.mxu1 }
 0x2fb   :  { %v2101_v22 = vmax.f32 %v2037_v63, 0.0  ;;  %v1967_v8 = vmul.f32 %v1821_v58, %v5213_v2 }
 0x2fc   :  { %v1823_v41 = vpop.f32.mrf.mxu0  ;;  %v6402_v47 = vpop.f32.mrf.mxu1 }
 0x2fd   :  { %v2147_v3 = vpack.c.bf16 %v2101_v22, %v2100_v45  ;;  %v1824_v48 = vadd.f32 %v1823_v41, %v6322_v7  ;;  %v2038_v10 = vadd.f32 %v6154_v23, %v1967_v8 }
 0x2fe   :  { %v1825_v21 = vpop.f32.mrf.mxu0  ;;  %v1600_v49 = vpop.f32.mrf.mxu1 }
 0x2ff   :  { %v1968_v24 = vmul.f32 %v1824_v48, %v5211_v1  ;;  %4441 = vmatmul.mubr.bf16.gmra.mxu1 %v2147_v3  ;;  %v2102_v59 = vmax.f32 %v2038_v10, 0.0 }
 0x300   :  { %v1828_v9 = vpop.f32.mrf.mxu0  ;;  %v6407_v13 = vpop.f32.mrf.mxu1 }
 0x301   :  { %v2039_v35 = vadd.f32 %v6154_v23, %v1968_v24  ;;  %v1829_v54 = vadd.f32 %v1828_v9, %v6327_v43 }
 0x302   :  { %v1830_v63 = vpop.f32.mrf.mxu0  ;;  %v1605_v58 = vpop.f32.mrf.mxu1 }
 0x303   :  { %v2103_v29 = vmax.f32 %v2039_v35, 0.0  ;;  %v1969_v7 = vmul.f32 %v1829_v54, %v5205_v61 }
 0x304   :  { %v1831_v45 = vpop.f32.mrf.mxu0  ;;  %v6412_v22 = vpop.f32.mrf.mxu1 }
 0x305   :  { %v1832_v8 = vadd.f32 %v1831_v45, %v6332_v34  ;;  %v2148_v41 = vpack.c.bf16 %v2103_v29, %v2102_v59  ;;  %v2040_v21 = vadd.f32 %v6154_v23, %v1969_v7 }
 0x306   :  { %v1833_v3 = vpop.f32.mrf.mxu0  ;;  %v1608_v48 = vpop.f32.mrf.mxu1 }
 0x307   :  { %v1970_v49 = vmul.f32 %v1832_v8, %v5203_v60  ;;  %4444 = vmatprep.mubr.bf16.mxu1 %v2148_v41  ;;  %v2104_v63 = vmax.f32 %v2040_v21, 0.0 }
 0x308   :  { %v1836_v43 = vpop.f32.mrf.mxu0  ;;  %v6417_v24 = vpop.f32.mrf.mxu1 }
 0x309   :  { %v2041_v10 = vadd.f32 %v6154_v23, %v1970_v49  ;;  %v1837_v9 = vadd.f32 %v1836_v43, %v6337_v12 }
 0x30a   :  { %v1838_v35 = vpop.f32.mrf.mxu0  ;;  %v1613_v54 = vpop.f32.mrf.mxu1 }
 0x30b   :  { %v2105_v58 = vmax.f32 %v2041_v10, 0.0  ;;  %v1971_v34 = vmul.f32 %v1837_v9, %v5197_v57 }
 0x30c   :  { %v1839_v59 = vpop.f32.mrf.mxu0  ;;  %v6422_v29 = vpop.f32.mrf.mxu1 }
 0x30d   :  { %v2149_v7 = vpack.c.bf16 %v2105_v58, %v2104_v63  ;;  %v1840_v45 = vadd.f32 %v1839_v59, %v6342_v27  ;;  %v2042_v3 = vadd.f32 %v6154_v23, %v1971_v34 }
 0x30e   :  { %v1841_v8 = vpop.f32.mrf.mxu0  ;;  %v1616_v41 = vpop.f32.mrf.mxu1 }
 0x30f   :  { %v1972_v48 = vmul.f32 %v1840_v45, %v5195_v56  ;;  %4445 = vmatmul.mubr.bf16.gmra.mxu1 %v2149_v7  ;;  %v2106_v35 = vmax.f32 %v2042_v3, 0.0 }
 0x310   :  { %v1844_v12 = vpop.f32.mrf.mxu0  ;;  %v6427_v49 = vpop.f32.mrf.mxu1 }
 0x311   :  { %v2043_v21 = vadd.f32 %v6154_v23, %v1972_v48  ;;  %v1845_v43 = vadd.f32 %v1844_v12, %v6347_v50 }
 0x312   :  { %v1846_v10 = vpop.f32.mrf.mxu0  ;;  %v1621_v9 = vpop.f32.mrf.mxu1 }
 0x313   :  { %v2107_v54 = vmax.f32 %v2043_v21, 0.0  ;;  %v1973_v27 = vmul.f32 %v1845_v43, %v5189_v53 }
 0x314   :  { %v1847_v63 = vpop.f32.mrf.mxu0  ;;  %v6432_v58 = vpop.f32.mrf.mxu1 }
 0x315   :  { %v1848_v34 = vadd.f32 %v1847_v63, %v6352_v37  ;;  %v2150_v59 = vpack.c.bf16 %v2107_v54, %v2106_v35  ;;  %v2044_v8 = vadd.f32 %v6154_v23, %v1973_v27  ;;  %v8743_v37 = vld [vmem:[#allocation19_spill] sm:$0xff] }
 0x316   :  { %v1849_v7 = vpop.f32.mrf.mxu0  ;;  %v1624_v45 = vpop.f32.mrf.mxu1 }
 0x317   :  { %v1974_v41 = vmul.f32 %v1848_v34, %v5187_v52  ;;  %4448 = vmatprep.mubr.bf16.mxu1 %v2150_v59  ;;  %v2108_v10 = vmax.f32 %v2044_v8, 0.0 }
 0x318   :  { %v1852_v50 = vpop.f32.mrf.mxu0  ;;  %v6437_v48 = vpop.f32.mrf.mxu1 }
 0x319   :  { %v2045_v3 = vadd.f32 %v6154_v23, %v1974_v41  ;;  %v1853_v12 = vadd.f32 %v1852_v50, %v6357_v33 }
 0x31a   :  { %v1854_v21 = vpop.f32.mrf.mxu0  ;;  %v1629_v43 = vpop.f32.mrf.mxu1 }
 0x31b   :  { %v2109_v9 = vmax.f32 %v2045_v3, 0.0  ;;  %v1975_v35 = vmul.f32 %v1853_v12, %v8743_v37 }
 0x31c   :  { %v1855_v54 = vpop.f32.mrf.mxu0  ;;  %v6442_v63 = vpop.f32.mrf.mxu1 }
 0x31d   :  { %v2151_v27 = vpack.c.bf16 %v2109_v9, %v2108_v10  ;;  %v1856_v34 = vadd.f32 %v1855_v54, %v6362_v51  ;;  %v2046_v45 = vadd.f32 %v6154_v23, %v1975_v35  ;;  %v8745_v9 = vld [vmem:[#allocation12_spill] sm:$0xff] }
 0x31e   :  { %v1857_v59 = vpop.f32.mrf.mxu0  ;;  %v1632_v7 = vpop.f32.mrf.mxu1 }
 0x31f   :  { %v1976_v41 = vmul.f32 %v1856_v34, %v8744_v14  ;;  %4449 = vmatmul.mubr.bf16.gmra.mxu1 %v2151_v27  ;;  %v2110_v43 = vmax.f32 %v2046_v45, 0.0 }
 0x320   :  { %v1860_v33 = vpop.f32.mrf.mxu0  ;;  %v6447_v50 = vpop.f32.mrf.mxu1 }
 0x321   :  { %v2047_v8 = vadd.f32 %v6154_v23, %v1976_v41  ;;  %v1861_v3 = vadd.f32 %v1860_v33, %v6367_v46 }
 0x322   :  { %v1862_v12 = vpop.f32.mrf.mxu0  ;;  %v1637_v21 = vpop.f32.mrf.mxu1 }
 0x323   :  { %v2111_v10 = vmax.f32 %v2047_v8, 0.0  ;;  %v1977_v51 = vmul.f32 %v1861_v3, %v8745_v9 }
 0x324   :  { %v1863_v54 = vpop.f32.mrf.mxu0  ;;  %v6452_v59 = vpop.f32.mrf.mxu1 }
 0x325   :  { %v1864_v35 = vadd.f32 %v1863_v54, %v6372_v39  ;;  %v2152_v34 = vpack.c.bf16 %v2111_v10, %v2110_v43  ;;  %v2048_v11 = vadd.f32 %v6154_v23, %v1977_v51 }
 0x326   :  { %v1865_v27 = vpop.f32.mrf.mxu0  ;;  %v1640_v7 = vpop.f32.mrf.mxu1 }
 0x327   :  { %v1978_v41 = vmul.f32 %v1864_v35, %v8746_v6  ;;  %4452 = vmatprep.mubr.bf16.mxu1 %v2152_v34  ;;  %v2112_v3 = vmax.f32 %v2048_v11, 0.0 }
 0x328   :  { %v1868_v46 = vpop.f32.mrf.mxu0 }
 0x329   :  { %v2049_v33 = vadd.f32 %v6154_v23, %v1978_v41  ;;  %v1869_v45 = vadd.f32 %v1868_v46, %v6377_v36 }
 0x32a   :  { %v1870_v8 = vpop.f32.mrf.mxu0 }
 0x32b   :  { %v2113_v12 = vmax.f32 %v2049_v33, 0.0  ;;  %v1979_v21 = vmul.f32 %v1869_v45, %v5568_v16 }
 0x32c   :  { %v1871_v5 = vpop.f32.mrf.mxu0 }
 0x32d   :  { %v2153_v39 = vpack.c.bf16 %v2113_v12, %v2112_v3  ;;  %v1872_v43 = vadd.f32 %v1871_v5, %v6382_v44  ;;  %v2050_v51 = vadd.f32 %v6154_v23, %v1979_v21 }
 0x32e   :  { %v1873_v10 = vpop.f32.mrf.mxu0 }
 0x32f   :  { %v1980_v54 = vmul.f32 %v1872_v43, %v5563_v17  ;;  %4453 = vmatmul.mubr.bf16.gmra.mxu1 %v2153_v39  ;;  %v2114_v11 = vmax.f32 %v2050_v51, 0.0 }
 0x330   :  { %v1876_v35 = vpop.f32.mrf.mxu0 }
 0x331   :  { %v2051_v34 = vadd.f32 %v6154_v23, %v1980_v54  ;;  %v1877_v36 = vadd.f32 %v1876_v35, %v6387_v32 }
 0x332   :  { %v1878_v27 = vpop.f32.mrf.mxu0 }
 0x333   :  { %v2115_v7 = vmax.f32 %v2051_v34, 0.0  ;;  %v1981_v41 = vmul.f32 %v1877_v36, %v5389_v55 }
 0x334   :  { %v1879_v46 = vpop.f32.mrf.mxu0 }
 0x335   :  { %v1880_v33 = vadd.f32 %v1879_v46, %v6392_v0  ;;  %v2154_v5 = vpack.c.bf16 %v2115_v7, %v2114_v11  ;;  %v2052_v45 = vadd.f32 %v6154_v23, %v1981_v41 }
 0x336   :  { %v1881_v44 = vpop.f32.mrf.mxu0 }
 0x337   :  { %v1982_v8 = vmul.f32 %v1880_v33, %v5385_v26  ;;  %4456 = vmatprep.mubr.bf16.mxu1 %v2154_v5  ;;  %v2116_v39 = vmax.f32 %v2052_v45, 0.0 }
 0x338   :  { %v1884_v3 = vpop.f32.mrf.mxu0 }
 0x339   :  { %v2053_v12 = vadd.f32 %v6154_v23, %v1982_v8  ;;  %v1885_v32 = vadd.f32 %v1884_v3, %v6397_v42 }
 0x33a   :  { %v1886_v21 = vpop.f32.mrf.mxu0 }
 0x33b   :  { %v2117_v43 = vmax.f32 %v2053_v12, 0.0  ;;  %v1983_v10 = vmul.f32 %v1885_v32, %v5358_v20 }
 0x33c   :  { %v1887_v51 = vpop.f32.mrf.mxu0 }
 0x33d   :  { %v2155_v54 = vpack.c.bf16 %v2117_v43, %v2116_v39  ;;  %v1888_v0 = vadd.f32 %v1887_v51, %v6402_v47  ;;  %v2054_v34 = vadd.f32 %v6154_v23, %v1983_v10 }
 0x33e   :  { %v1889_v35 = vpop.f32.mrf.mxu0 }
 0x33f   :  { %v1984_v36 = vmul.f32 %v1888_v0, %v5353_v30  ;;  %4457 = vmatmul.mubr.bf16.gmra.mxu1 %v2155_v54  ;;  %v2118_v41 = vmax.f32 %v2054_v34, 0.0  ;;  %v6478_v44 = vpop.f32.mrf.mxu1  ;;  %v8747_v54 = vld [vmem:[#allocation57_spill] sm:$0xff] }
 0x340   :  { %v1892_v27 = vpop.f32.mrf.mxu0 }
 0x341   :  { %v2055_v11 = vadd.f32 %v6154_v23, %v1984_v36  ;;  %v1893_v42 = vadd.f32 %v1892_v27, %v6407_v13  ;;  %v6483_v21 = vpop.f32.mrf.mxu1  ;;  %v6488_v13 = vld [vmem:[%s8102_s4] ss:$0 sm:$0xff] }
 0x342   :  { %v1894_v7 = vpop.f32.mrf.mxu0 }
 0x343   :  { %v2119_v46 = vmax.f32 %v2055_v11, 0.0  ;;  %v1985_v33 = vmul.f32 %v1893_v42, %v5335_v31  ;;  %v6493_v35 = vpop.f32.mrf.mxu1  ;;  %v8748_v42 = vld [vmem:[#allocation56_spill] sm:$0xff] }
 0x344   :  { %v1895_v5 = vpop.f32.mrf.mxu0 }
 0x345   :  { %v1896_v47 = vadd.f32 %v1895_v5, %v6412_v22  ;;  %v2156_v45 = vpack.c.bf16 %v2119_v46, %v2118_v41  ;;  %v2056_v3 = vadd.f32 %v6154_v23, %v1985_v33  ;;  %v6498_v46 = vpop.f32.mrf.mxu1 }
 0x346   :  { %v1897_v8 = vpop.f32.mrf.mxu0 }
 0x347   :  { %v1986_v12 = vmul.f32 %v1896_v47, %v5331_v28  ;;  %4460 = vmatprep.mubr.bf16.mxu1 %v2156_v45  ;;  %v2120_v10 = vmax.f32 %v2056_v3, 0.0  ;;  %v8749_v3 = vld [vmem:[#allocation53_spill] sm:$0xff] }
 0x348   :  { %v1900_v32 = vpop.f32.mrf.mxu0 }
 0x349   :  { %v2057_v39 = vadd.f32 %v6488_v13, %v1986_v12  ;;  %v1901_v43 = vadd.f32 %v1900_v32, %v6417_v24 }
 0x34a   :  { %v1902_v22 = vpop.f32.mrf.mxu0 }
 0x34b   :  { %v2121_v51 = vmax.f32 %v2057_v39, 0.0  ;;  %v1987_v23 = vmul.f32 %v1901_v43, %v8747_v54 }
 0x34c   :  { %v1903_v0 = vpop.f32.mrf.mxu0 }
 0x34d   :  { %v2157_v34 = vpack.c.bf16 %v2121_v51, %v2120_v10  ;;  %v1904_v36 = vadd.f32 %v1903_v0, %v6422_v29  ;;  %v2058_v11 = vadd.f32 %v6488_v13, %v1987_v23  ;;  %v8750_v51 = vld [vmem:[#allocation52_spill] sm:$0xff] }
 0x34e   :  { %v1905_v27 = vpop.f32.mrf.mxu0 }
 0x34f   :  { %v1988_v7 = vmul.f32 %v1904_v36, %v8748_v42  ;;  %4461 = vmatmul.mubr.bf16.gmra.mxu1 %v2157_v34  ;;  %v2122_v47 = vmax.f32 %v2058_v11, 0.0  ;;  %v6502_v8 = vpop.f32.mrf.mxu1 }
 0x350   :  { %v1908_v41 = vpop.f32.mrf.mxu0 }
 0x351   :  { %v2059_v24 = vadd.f32 %v6488_v13, %v1988_v7  ;;  %v1909_v33 = vadd.f32 %v1908_v41, %v6427_v49  ;;  %v6507_v10 = vpop.f32.mrf.mxu1  ;;  %v8751_v41 = vld [vmem:[#allocation48_spill] sm:$0xff] }
 0x352   :  { %v1910_v5 = vpop.f32.mrf.mxu0 }
 0x353   :  { %v2123_v45 = vmax.f32 %v2059_v24, 0.0  ;;  %v1989_v29 = vmul.f32 %v1909_v33, %v8749_v3  ;;  %v4415_v11 = vpop.f32.mrf.mxu1 }
 0x354   :  { %v1911_v12 = vpop.f32.mrf.mxu0 }
 0x355   :  { %v1912_v32 = vadd.f32 %v1911_v12, %v6432_v58  ;;  %v2158_v39 = vpack.c.bf16 %v2123_v45, %v2122_v47  ;;  %v2060_v22 = vadd.f32 %v6488_v13, %v1989_v29  ;;  %v2279_v45 = vpop.f32.mrf.mxu1  ;;  %v8752_v12 = vld [vmem:[#allocation47_spill] sm:$0xff] }
 0x356   :  { %v1913_v43 = vpop.f32.mrf.mxu0 }
 0x357   :  { %v1990_v23 = vmul.f32 %v1912_v32, %v8750_v51  ;;  %4464 = vmatprep.mubr.bf16.mxu1 %v2158_v39  ;;  %v2124_v27 = vmax.f32 %v2060_v22, 0.0 }
 0x358   :  { %v1916_v49 = vpop.f32.mrf.mxu0 }
 0x359   :  { %v2061_v0 = vadd.f32 %v6488_v13, %v1990_v23  ;;  %v1917_v34 = vadd.f32 %v1916_v49, %v6437_v48 }
 0x35a   :  { %v1918_v36 = vpop.f32.mrf.mxu0 }
 0x35b   :  { %v2125_v7 = vmax.f32 %v2061_v0, 0.0  ;;  %v1991_v58 = vmul.f32 %v1917_v34, %v8751_v41  ;;  %v8753_v34 = vld [vmem:[#allocation44_spill] sm:$0xff] }
 0x35c   :  { %v1919_v24 = vpop.f32.mrf.mxu0 }
 0x35d   :  { %v2159_v33 = vpack.c.bf16 %v2125_v7, %v2124_v27  ;;  %v1920_v5 = vadd.f32 %v1919_v24, %v6442_v63  ;;  %v2062_v29 = vadd.f32 %v6488_v13, %v1991_v58 }
 0x35e   :  { %v1921_v47 = vpop.f32.mrf.mxu0 }
 0x35f   :  { %v1992_v32 = vmul.f32 %v1920_v5, %v8752_v12  ;;  %4465 = vmatmul.mubr.bf16.gmra.mxu1 %v2159_v33  ;;  %v4418_v43 = vpop.f32.mrf.mxu1  ;;  %v2126_v49 = vmax.f32 %v2062_v29, 0.0  ;;  %v8754_v33 = vld [vmem:[#allocation43_spill] sm:$0xff] }
 0x360   :  { %v1924_v39 = vpop.f32.mrf.mxu0 }
 0x361   :  { %v2063_v48 = vadd.f32 %v6488_v13, %v1992_v32  ;;  %v1925_v22 = vadd.f32 %v1924_v39, %v6447_v50  ;;  %v2292_v63 = vpop.f32.mrf.mxu1 }
 0x362   :  { %v1926_v23 = vpop.f32.mrf.mxu0 }
 0x363   :  { %v2127_v0 = vmax.f32 %v2063_v48, 0.0  ;;  %v1993_v36 = vmul.f32 %v1925_v22, %v8753_v34  ;;  %v4419_v32 = vpop.f32.mrf.mxu1  ;;  %v8755_v22 = vld [vmem:[#allocation84_spill] sm:$0xff] }
 0x364   :  { %v1927_v27 = vpop.f32.mrf.mxu0  ;;  %v8756_v17 = vunpack.c.l.s8.bf16 %v8755_v22 }
 0x365   :  { %v1928_v7 = vadd.f32 %v1927_v27, %v6452_v59  ;;  %v2160_v24 = vpack.c.bf16 %v2127_v0, %v2126_v49  ;;  %v2064_v5 = vadd.f32 %v6488_v13, %v1993_v36  ;;  %v2295_v48 = vpop.f32.mrf.mxu1 }
 0x366   :  { %v1929_v58 = vpop.f32.mrf.mxu0 }
 0x367   :  { %v1994_v47 = vmul.f32 %v1928_v7, %v8754_v33  ;;  %4468 = vmatprep.mubr.bf16.mxu1 %v2160_v24  ;;  %v2128_v50 = vmax.f32 %v2064_v5, 0.0  ;;  %v8759_v5 = vld [vmem:[#allocation20_spill] sm:$0xff] }
 0x369   :  { %v2065_v16 = vadd.f32 %v6488_v13, %v1994_v47  ;;  %v8757_v13 = vld [vmem:[#allocation17_spill] sm:$0xff]  ;;  %v2526_v47 = vmul.f32 %v4419_v32, %v8759_v5  ;;  %v8771_v5 = vld [vmem:[#allocation50_spill] sm:$0xff] }
 0x36b   :  { %v2129_v39 = vmax.f32 %v2065_v16, 0.0  ;;  %v8758_v16 = vmov 0  }
 0x36d   :  { %v2161_v29 = vpack.c.bf16 %v2129_v39, %v2128_v50  ;;  %v8760_v39 = vld [vmem:[#allocation21_spill] sm:$0xff] }
 0x36f   :  { %v4422_v23 = vpop.f32.mrf.mxu1  ;;  %4469 = vmatmul.mubr.bf16.gmra.mxu1 %v2161_v29 }
 0x370   :  { %2948 = vmatprep.mubr.bf16.mxu1 %v8756_v17  ;;  %v2529_v0 = vmul.f32 %v4422_v23, %v8730_v19  ;;  %v2525_v17 = vmul.f32 %v4418_v43, %v8760_v39  ;;  %v8761_v23 = vld [vmem:[#allocation24_spill] sm:$0xff] }
 0x371   :  { %v2308_v59 = vpop.f32.mrf.mxu1 }
 0x372   :  { %v2527_v58 = vmul.f32 %v2308_v59, %v8757_v13  ;;  %v2584_v29 = vpack.c.bf16 %v2526_v47, %v2525_v17  ;;  %v8763_v59 = vld [vmem:[#allocation28_spill] sm:$0xff] }
 0x373   :  { %v4423_v49 = vpop.f32.mrf.mxu1 }
 0x374   :  { %v2530_v36 = vmul.f32 %v4423_v49, %v8731_v40  ;;  %v2524_v49 = vmul.f32 %v2295_v48, %v8761_v23  ;;  %v8762_v40 = vld [vmem:[#allocation25_spill] sm:$0xff]  ;;  %v8766_v48 = vld [vmem:[#allocation31_spill] sm:$0xff] }
 0x375   :  { %v2311_v27 = vpop.f32.mrf.mxu1 }
 0x376   :  { %v2586_v7 = vpack.c.bf16 %v2530_v36, %v2529_v0  ;;  %v2528_v24 = vmul.f32 %v2311_v27, %v8728_v4  ;;  %v2523_v0 = vmul.f32 %v2292_v63, %v8762_v40  ;;  %v2522_v36 = vmul.f32 %v4415_v11, %v8763_v59  ;;  %v8767_v11 = vld [vmem:[#allocation32_spill] sm:$0xff] }
 0x377   :  { %v2519_v63 = vmul.f32 %v6507_v10, %v8766_v48  ;;  %v2518_v17 = vmul.f32 %v6493_v35, %v8767_v11 }
 0x378   :  { %2612 = vmatpush1.bf16.msra.mxu0 %v2586_v7  ;;  %v2585_v50 = vpack.c.bf16 %v2528_v24, %v2527_v58  ;;  %v2583_v27 = vpack.c.bf16 %v2524_v49, %v2523_v0  ;;  %v8764_v7 = vld [vmem:[#allocation29_spill] sm:$0xff]  ;;  %v8765_v58 = vld [vmem:[#allocation30_spill] sm:$0xff] }
 0x379   :  { %2613 = vmatprep.subr.bf16.mxu0 %v8758_v16  ;;  %v2521_v32 = vmul.f32 %v6502_v8, %v8764_v7  ;;  %v2520_v47 = vmul.f32 %v2279_v45, %v8765_v58 }
 0x37b   :  { %v2582_v43 = vpack.c.bf16 %v2522_v36, %v2521_v32  ;;  %v2581_v8 = vpack.c.bf16 %v2520_v47, %v2519_v63  ;;  %v8769_v36 = vld [vmem:[#allocation37_spill] sm:$0xff] }
 0x37c   :  { %2614 = vmatpush1.bf16.msra.mxu0 %v2585_v50  ;;  %v2516_v10 = vmul.f32 %v6498_v46, %v8769_v36 }
 0x37d   :  { %2615 = vmatprep.subr.bf16.mxu0 %v8758_v16 }
 0x37f   :  { %v6539_v24 = vpop.f32.mrf.mxu1 }
 0x380   :  { %2616 = vmatpush1.bf16.msra.mxu0 %v2584_v29  ;;  %v8768_v29 = vld [vmem:[#allocation33_spill] sm:$0xff] }
 0x381   :  { %2617 = vmatprep.subr.bf16.mxu0 %v8758_v16  ;;  %v6545_v50 = vpop.f32.mrf.mxu1  ;;  %v2517_v49 = vmul.f32 %v6478_v44, %v8768_v29 }
 0x383   :  { %v4427_v0 = vpop.f32.mrf.mxu1  ;;  %v2580_v45 = vpack.c.bf16 %v2518_v17, %v2517_v49 }
 0x384   :  { %2618 = vmatpush1.bf16.msra.mxu0 %v2583_v27  ;;  %v8770_v27 = vld [vmem:[#allocation38_spill] sm:$0xff] }
 0x385   :  { %2619 = vmatprep.subr.bf16.mxu0 %v8758_v16  ;;  %v2515_v32 = vmul.f32 %v6483_v21, %v8770_v27 }
 0x387   :  { %v2579_v35 = vpack.c.bf16 %v2516_v10, %v2515_v32 }
 0x388   :  { %2620 = vmatpush1.bf16.msra.mxu0 %v2582_v43  ;;  %v2327_v43 = vpop.f32.mrf.mxu1 }
 0x389   :  { %2621 = vmatprep.subr.bf16.mxu0 %v8758_v16 }
 0x38c   :  { %2622 = vmatpush1.bf16.msra.mxu0 %v2581_v8 }
 0x38d   :  { %2623 = vmatprep.subr.bf16.mxu0 %v8758_v16 }
 0x38f   :  { %v4430_v47 = vpop.f32.mrf.mxu1 }
 0x390   :  { %2624 = vmatpush1.bf16.msra.mxu0 %v2580_v45 }
 0x391   :  { %2625 = vmatprep.subr.bf16.mxu0 %v8758_v16  ;;  %v2340_v44 = vpop.f32.mrf.mxu1 }
 0x393   :  { %v4431_v63 = vpop.f32.mrf.mxu1 }
 0x394   :  { %2626 = vmatpush1.bf16.msra.mxu0 %v2579_v35 }
 0x395   :  { %2627 = vmatprep.subr.bf16.mxu0 %v8758_v16  ;;  %v2343_v8 = vpop.f32.mrf.mxu1 }
 0x39f   :  { %v4434_v11 = vpop.f32.mrf.mxu1 }
 0x3a0   :  { %v2541_v39 = vmul.f32 %v4434_v11, %v8771_v5  ;;  %v8776_v11 = vld [vmem:[#allocation62_spill] sm:$0xff] }
 0x3a1   :  { %v2356_v17 = vpop.f32.mrf.mxu1 }
 0x3a3   :  { %v4435_v49 = vpop.f32.mrf.mxu1 }
 0x3a4   :  { %v2542_v4 = vmul.f32 %v4435_v49, %v8738_v62 }
 0x3a5   :  { %v2359_v29 = vpop.f32.mrf.mxu1 }
 0x3af   :  { %v4438_v46 = vpop.f32.mrf.mxu1 }
 0x3b0   :  { %v2545_v21 = vmul.f32 %v4438_v46, %v8741_v18  ;;  %v2592_v46 = vpack.c.bf16 %v2542_v4, %v2541_v39  ;;  %v8772_v18 = vld [vmem:[#allocation54_spill] sm:$0xff]  ;;  %v2536_v4 = vmul.f32 %v2343_v8, %v8776_v11  ;;  %v8777_v39 = vld [vmem:[#allocation63_spill] sm:$0xff] }
 0x3b1   :  { %v2372_v36 = vpop.f32.mrf.mxu1  ;;  %v8780_v8 = vld [vmem:[#allocation70_spill] sm:$0xff] }
 0x3b2   :  { %v2543_v35 = vmul.f32 %v2372_v36, %v8739_v38  ;;  %v8774_v36 = vld [vmem:[#allocation58_spill] sm:$0xff] }
 0x3b3   :  { %v4439_v19 = vpop.f32.mrf.mxu1 }
 0x3b4   :  { %v2546_v45 = vmul.f32 %v4439_v19, %v8742_v15  ;;  %v2540_v19 = vmul.f32 %v2359_v29, %v8772_v18  ;;  %v8773_v15 = vld [vmem:[#allocation55_spill] sm:$0xff]  ;;  %v2535_v29 = vmul.f32 %v2340_v44, %v8777_v39 }
 0x3b5   :  { %v2375_v27 = vpop.f32.mrf.mxu1  ;;  %v8781_v44 = vld [vmem:[#allocation71_spill] sm:$0xff] }
 0x3b6   :  { %v2594_v10 = vpack.c.bf16 %v2546_v45, %v2545_v21  ;;  %v2544_v32 = vmul.f32 %v2375_v27, %v8740_v25  ;;  %v2539_v21 = vmul.f32 %v2356_v17, %v8773_v15  ;;  %v2538_v27 = vmul.f32 %v4431_v63, %v8774_v36  ;;  %v8793_v15 = vld [vmem:[#allocation75_spill] sm:$0xff] }
 0x3b8   :  { %2628 = vmatpush2.bf16.msra.mxu0 %v2594_v10  ;;  %v2593_v13 = vpack.c.bf16 %v2544_v32, %v2543_v35  ;;  %v2591_v45 = vpack.c.bf16 %v2540_v19, %v2539_v21  ;;  %v8775_v10 = vld [vmem:[#allocation59_spill] sm:$0xff]  ;;  %v8778_v32 = vld [vmem:[#allocation66_spill] sm:$0xff]  ;;  %v2589_v35 = vpack.c.bf16 %v2536_v4, %v2535_v29  ;;  %v2532_v21 = vmul.f32 %v2327_v43, %v8780_v8  ;;  %v8782_v4 = vld [vmem:[#allocation72_spill] sm:$0xff] }
 0x3b9   :  { %2629 = vmatprep.subr.bf16.mxu0 %v8758_v16  ;;  %v2537_v25 = vmul.f32 %v4430_v47, %v8775_v10  ;;  %v2534_v63 = vmul.f32 %v4427_v0, %v8778_v32  ;;  %v8783_v29 = vunpack.c.l.s8.bf16 %v8782_v4 }
 0x3bc   :  { %2630 = vmatpush2.bf16.msra.mxu0 %v2593_v13  ;;  %v2590_v13 = vpack.c.bf16 %v2538_v27, %v2537_v25  ;;  %v2531_v27 = vmul.f32 %v6545_v50, %v8781_v44  ;;  %v8786_v50 = vunpack.c.h.s8.bf16 %v8782_v4  ;;  %v8794_v4 = vunpack.c.l.s8.bf16 %v8793_v15 }
 0x3bd   :  { %2631 = vmatprep.subr.bf16.mxu0 %v8758_v16 }
 0x3be   :  { %v2587_v0 = vpack.c.bf16 %v2532_v21, %v2531_v27 }
 0x3bf   :  { %v6572_v49 = vpop.f32.mrf.mxu1 }
 0x3c0   :  { %2632 = vmatpush2.bf16.msra.mxu0 %v2592_v46  ;;  %v8779_v46 = vld [vmem:[#allocation67_spill] sm:$0xff] }
 0x3c1   :  { %2633 = vmatprep.subr.bf16.mxu0 %v8758_v16  ;;  %v6577_v17 = vpop.f32.mrf.mxu1  ;;  %v2533_v47 = vmul.f32 %v6539_v24, %v8779_v46 }
 0x3c3   :  { %v6583_v19 = vpop.f32.mrf.mxu1  ;;  %v2588_v25 = vpack.c.bf16 %v2534_v63, %v2533_v47  ;;  %v8784_v63 = vld [vmem:[#allocation36_spill] sm:$0xff] }
 0x3c4   :  { %2634 = vmatpush2.bf16.msra.mxu0 %v2591_v45 }
 0x3c5   :  { %2635 = vmatprep.subr.bf16.mxu0 %v8758_v16  ;;  %v6589_v45 = vpop.f32.mrf.mxu1 }
 0x3c8   :  { %2636 = vmatpush2.bf16.msra.mxu0 %v2590_v13 }
 0x3c9   :  { %2637 = vmatprep.subr.bf16.mxu0 %v8758_v16 }
 0x3cc   :  { %2638 = vmatpush2.bf16.msra.mxu0 %v2589_v35  ;;  %v8785_v35 = vunpack.c.h.s8.bf16 %v8784_v63 }
 0x3cd   :  { %2639 = vmatprep.subr.bf16.mxu0 %v8758_v16 }
 0x3cf   :  { %v4446_v13 = vpop.f32.mrf.mxu1 }
 0x3d0   :  { %2640 = vmatpush2.bf16.msra.mxu0 %v2588_v25  ;;  %v8787_v25 = vld [vmem:[#allocation73_spill] sm:$0xff] }
 0x3d1   :  { %2641 = vmatprep.subr.bf16.mxu0 %v8758_v16  ;;  %v2404_v24 = vpop.f32.mrf.mxu1  ;;  %v8788_v38 = vunpack.c.l.s8.bf16 %v8787_v25  ;;  %v8791_v5 = vunpack.c.h.s8.bf16 %v8787_v25 }
 0x3d3   :  { %v4447_v43 = vpop.f32.mrf.mxu1 }
 0x3d4   :  { %2642 = vmatpush2.bf16.msra.mxu0 %v2587_v0  ;;  %v8789_v0 = vld [vmem:[#allocation74_spill] sm:$0xff] }
 0x3d5   :  { %2900 = vmatprep.subr.bf16.mxu0 %v8758_v16  ;;  %v2407_v47 = vpop.f32.mrf.mxu1  ;;  %v8790_v62 = vunpack.c.l.s8.bf16 %v8789_v0 }
 0x3d7   :  { %2644 = vmatmul.mubr.bf16.vlgmr.msra.gmra.mxu0 %v8783_v29 }
 0x3d8   :  { %2651 = vmatprep.mubr.bf16.mxu0 %v8785_v35  ;;  %v8792_v35 = vunpack.c.h.s8.bf16 %v8789_v0 }
 0x3df   :  { %2652 = vmatmul.mubr.bf16.gmra.mxu0 %v8786_v50  ;;  %v4450_v21 = vpop.f32.mrf.mxu1 }
 0x3e0   :  { %2659 = vmatprep.mubr.bf16.mxu0 %v8788_v38 }
 0x3e1   :  { %v2420_v27 = vpop.f32.mrf.mxu1 }
 0x3e3   :  { %v4451_v29 = vpop.f32.mrf.mxu1 }
 0x3e4   :  { %v2558_v0 = vmul.f32 %v4451_v29, %v5187_v52  ;;  %v2555_v29 = vmul.f32 %v2420_v27, %v5197_v57 }
 0x3e5   :  { %v2423_v18 = vpop.f32.mrf.mxu1 }
 0x3e7   :  { %2660 = vmatmul.mubr.bf16.gmra.mxu0 %v8790_v62 }
 0x3e8   :  { %2667 = vmatprep.mubr.bf16.mxu0 %v8791_v5  ;;  %v8795_v5 = vld [vmem:[#allocation76_spill] sm:$0xff] }
 0x3e9   :  { %v8796_v39 = vunpack.c.l.s8.bf16 %v8795_v5 }
 0x3ef   :  { %v4454_v63 = vpop.f32.mrf.mxu1  ;;  %2668 = vmatmul.mubr.bf16.gmra.mxu0 %v8792_v35  ;;  %v8798_v35 = vunpack.c.h.s8.bf16 %v8795_v5 }
 0x3f0   :  { %2675 = vmatprep.mubr.bf16.mxu0 %v8794_v4  ;;  %v2561_v38 = vmul.f32 %v4454_v63, %v8745_v9 }
 0x3f1   :  { %v2436_v50 = vpop.f32.mrf.mxu1 }
 0x3f2   :  { %v2559_v32 = vmul.f32 %v2436_v50, %v8743_v37  ;;  %v2553_v50 = vmul.f32 %v4446_v13, %v5205_v61  ;;  %v8803_v13 = vld [vmem:[#allocation34_spill] sm:$0xff] }
 0x3f3   :  { %v4455_v36 = vpop.f32.mrf.mxu1 }
 0x3f4   :  { %v2562_v10 = vmul.f32 %v4455_v36, %v8746_v6  ;;  %v8797_v36 = vunpack.c.h.s8.bf16 %v8793_v15  ;;  %v2554_v15 = vmul.f32 %v4447_v43, %v5203_v60  ;;  %v2551_v43 = vmul.f32 %v2404_v24, %v5213_v2 }
 0x3f5   :  { %v2439_v11 = vpop.f32.mrf.mxu1 }
 0x3f6   :  { %v2602_v62 = vpack.c.bf16 %v2562_v10, %v2561_v38  ;;  %v2560_v25 = vmul.f32 %v2439_v11, %v8744_v14  ;;  %v2557_v10 = vmul.f32 %v4450_v21, %v5189_v53  ;;  %v8799_v21 = vld [vmem:[#allocation77_spill] sm:$0xff]  ;;  %v2598_v27 = vpack.c.bf16 %v2554_v15, %v2553_v50 }
 0x3f7   :  { %2676 = vmatmul.mubr.bf16.gmra.mxu0 %v8796_v39  ;;  %v2556_v39 = vmul.f32 %v2423_v18, %v5195_v56  ;;  %v8800_v4 = vunpack.c.l.s8.bf16 %v8799_v21  ;;  %v2552_v38 = vmul.f32 %v2407_v47, %v5211_v1  ;;  %v8805_v47 = vld [vmem:[#allocation35_spill] sm:$0xff] }
 0x3f8   :  { %2901 = vmatpush1.bf16.msra.mxu0 %v2602_v62  ;;  %4488 = vmatpush1.bf16.msra.mxu1 %v2602_v62  ;;  %v2601_v63 = vpack.c.bf16 %v2560_v25, %v2559_v32  ;;  %v2600_v11 = vpack.c.bf16 %v2558_v0, %v2557_v10  ;;  %v8801_v62 = vld [vmem:[#allocation78_spill] sm:$0xff]  ;;  %v2550_v0 = vmul.f32 %v6583_v19, %v8803_v13 }
 0x3f9   :  { %2902 = vmatprep.subr.bf16.mxu0 %v8758_v16  ;;  %4473 = vmatprep.subr.bf16.mxu1 %v8758_v16  ;;  %v2599_v32 = vpack.c.bf16 %v2556_v39, %v2555_v29  ;;  %v8802_v25 = vunpack.c.l.s8.bf16 %v8801_v62  ;;  %v2549_v10 = vmul.f32 %v6572_v49, %v8805_v47  ;;  %v8806_v39 = vld [vmem:[#allocation39_spill] sm:$0xff]  ;;  %v8807_v19 = vunpack.c.h.s8.bf16 %v8801_v62  ;;  %v8808_v29 = vld [vmem:[#allocation40_spill] sm:$0xff] }
 0x3fa   :  { %2683 = vmatprep.mubr.bf16.mxu0 %v8797_v36  ;;  %v8804_v36 = vunpack.c.h.s8.bf16 %v8799_v21  ;;  %v2547_v15 = vmul.f32 %v6577_v17, %v8808_v29  ;;  %v8809_v21 = vld [vmem:[#allocation79_spill] sm:$0xff] }
 0x3fc   :  { %2903 = vmatpush1.bf16.msra.mxu0 %v2601_v63  ;;  %4489 = vmatpush1.bf16.msra.mxu1 %v2601_v63  ;;  %v2597_v63 = vpack.c.bf16 %v2552_v38, %v2551_v43  ;;  %v8813_v38 = vunpack.c.h.s8.bf16 %v8809_v21 }
 0x3fd   :  { %2904 = vmatprep.subr.bf16.mxu0 %v8758_v16  ;;  %4474 = vmatprep.subr.bf16.mxu1 %v8758_v16 }
 0x3ff   :  { %2684 = vmatmul.mubr.bf16.gmra.mxu0 %v8798_v35  ;;  %v6633_v18 = vpop.f32.mrf.mxu1  ;;  %v2548_v35 = vmul.f32 %v6589_v45, %v8806_v39  ;;  %v8811_v45 = vld [vmem:[#allocation83_spill] sm:$0xff] }
 0x400   :  { %2905 = vmatpush1.bf16.msra.mxu0 %v2600_v11  ;;  %4490 = vmatpush1.bf16.msra.mxu1 %v2600_v11  ;;  %v2596_v11 = vpack.c.bf16 %v2550_v0, %v2549_v10  ;;  %v8814_v43 = vunpack.c.h.s8.bf16 %v8811_v45  ;;  %v8815_v0 = vld [vmem:[#allocation85_spill] sm:$0xff] }
 0x401   :  { %2906 = vmatprep.subr.bf16.mxu0 %v8758_v16  ;;  %4475 = vmatprep.subr.bf16.mxu1 %v8758_v16  ;;  %v6641_v5 = vpop.f32.mrf.mxu1 }
 0x402   :  { %2691 = vmatprep.mubr.bf16.mxu0 %v8800_v4  ;;  %v8810_v4 = vunpack.c.l.s8.bf16 %v8809_v21 }
 0x403   :  { %v6651_v24 = vpop.f32.mrf.mxu1 }
 0x404   :  { %2907 = vmatpush1.bf16.msra.mxu0 %v2599_v32  ;;  %4491 = vmatpush1.bf16.msra.mxu1 %v2599_v32  ;;  %v2595_v32 = vpack.c.bf16 %v2548_v35, %v2547_v15 }
 0x405   :  { %2908 = vmatprep.subr.bf16.mxu0 %v8758_v16  ;;  %4476 = vmatprep.subr.bf16.mxu1 %v8758_v16  ;;  %v6661_v49 = vpop.f32.mrf.mxu1 }
 0x407   :  { %2692 = vmatmul.mubr.bf16.gmra.mxu0 %v8802_v25 }
 0x408   :  { %2909 = vmatpush1.bf16.msra.mxu0 %v2598_v27  ;;  %4492 = vmatpush1.bf16.msra.mxu1 %v2598_v27  ;;  %v8812_v27 = vunpack.c.l.s8.bf16 %v8811_v45 }
 0x409   :  { %2910 = vmatprep.subr.bf16.mxu0 %v8758_v16  ;;  %4477 = vmatprep.subr.bf16.mxu1 %v8758_v16 }
 0x40a   :  { %2699 = vmatprep.mubr.bf16.mxu0 %v8804_v36 }
 0x40c   :  { %2911 = vmatpush1.bf16.msra.mxu0 %v2597_v63  ;;  %4493 = vmatpush1.bf16.msra.mxu1 %v2597_v63  ;;  %v8816_v63 = vunpack.c.l.s8.bf16 %v8815_v0 }
 0x40d   :  { %2912 = vmatprep.subr.bf16.mxu0 %v8758_v16  ;;  %4478 = vmatprep.subr.bf16.mxu1 %v8758_v16 }
 0x40f   :  { %2700 = vmatmul.mubr.bf16.gmra.mxu0 %v8807_v19  ;;  %v4462_v50 = vpop.f32.mrf.mxu1  ;;  %v8819_v19 = vunpack.c.h.s8.bf16 %v8815_v0 }
 0x410   :  { %2913 = vmatpush1.bf16.msra.mxu0 %v2596_v11  ;;  %4494 = vmatpush1.bf16.msra.mxu1 %v2596_v11  ;;  %v8817_v11 = vld [vmem:[#allocation87_spill] sm:$0xff] }
 0x411   :  { %2914 = vmatprep.subr.bf16.mxu0 %v8758_v16  ;;  %4479 = vmatprep.subr.bf16.mxu1 %v8758_v16  ;;  %v2468_v17 = vpop.f32.mrf.mxu1  ;;  %v8818_v35 = vunpack.c.l.s8.bf16 %v8817_v11 }
 0x412   :  { %2707 = vmatprep.mubr.bf16.mxu0 %v8810_v4  ;;  %v8820_v4 = vunpack.c.h.s8.bf16 %v8817_v11 }
 0x413   :  { %v4463_v62 = vpop.f32.mrf.mxu1 }
 0x414   :  { %2915 = vmatpush1.bf16.msra.mxu0 %v2595_v32  ;;  %4495 = vmatpush1.bf16.msra.mxu1 %v2595_v32 }
 0x415   :  { %2916 = vmatprep.subr.bf16.mxu0 %v8758_v16  ;;  %4480 = vmatprep.subr.bf16.mxu1 %v8758_v16  ;;  %v2471_v25 = vpop.f32.mrf.mxu1 }
 0x417   :  { %2708 = vmatmul.mubr.bf16.gmra.mxu0 %v8812_v27  ;;  %v8821_v27 = vld [vmem:[#allocation89_spill] sm:$0xff] }
 0x418   :  { %2715 = vmatprep.mubr.bf16.mxu0 %v8813_v38  ;;  %v8822_v45 = vunpack.c.l.s8.bf16 %v8821_v27 }
 0x41f   :  { %2716 = vmatmul.mubr.bf16.gmra.mxu0 %v8814_v43  ;;  %v4466_v36 = vpop.f32.mrf.mxu1 }
 0x420   :  { %2723 = vmatprep.mubr.bf16.mxu0 %v8816_v63 }
 0x421   :  { %v2484_v10 = vpop.f32.mrf.mxu1 }
 0x423   :  { %v4467_v15 = vpop.f32.mrf.mxu1 }
 0x424   :  { %v2574_v11 = vmul.f32 %v4467_v15, %v8750_v51  ;;  %v2571_v15 = vmul.f32 %v2484_v10, %v8747_v54 }
 0x425   :  { %v2487_v32 = vpop.f32.mrf.mxu1 }
 0x427   :  { %2724 = vmatmul.mubr.bf16.gmra.mxu0 %v8818_v35 }
 0x428   :  { %2731 = vmatprep.mubr.bf16.mxu0 %v8819_v19  ;;  %v8823_v19 = vld [vmem:[#allocation91_spill] sm:$0xff] }
 0x429   :  { %v8824_v14 = vunpack.c.l.s8.bf16 %v8823_v19 }
 0x42f   :  { %v4470_v21 = vpop.f32.mrf.mxu1  ;;  %2732 = vmatmul.mubr.bf16.gmra.mxu0 %v8820_v4  ;;  %v8825_v4 = vunpack.c.h.s8.bf16 %v8821_v27  ;;  %v8827_v27 = vld [vmem:[#allocation93_spill] sm:$0xff] }
 0x430   :  { %2739 = vmatprep.mubr.bf16.mxu0 %v8822_v45  ;;  %v2577_v63 = vmul.f32 %v4470_v21, %v8753_v34  ;;  %v8826_v45 = vunpack.c.h.s8.bf16 %v8823_v19  ;;  %v8831_v19 = vunpack.c.h.s8.bf16 %v8827_v27 }
 0x431   :  { %v2500_v38 = vpop.f32.mrf.mxu1 }
 0x432   :  { %v2575_v37 = vmul.f32 %v2500_v38, %v8751_v41  ;;  %v8828_v38 = vunpack.c.l.s8.bf16 %v8827_v27  ;;  %v8941_v41 = vld [vmem:[#allocation120_spill] sm:$0xff] }
 0x433   :  { %v4471_v43 = vpop.f32.mrf.mxu1 }
 0x434   :  { %v2578_v6 = vmul.f32 %v4471_v43, %v8754_v33  ;;  %v2569_v43 = vmul.f32 %v4462_v50, %v5335_v31  ;;  %v2566_v50 = vmul.f32 %v6651_v24, %v5385_v26  ;;  %v8834_v24 = vld [vmem:[#allocation81_spill] sm:$0xff] }
 0x435   :  { %v2503_v9 = vpop.f32.mrf.mxu1 }
 0x436   :  { %v2610_v35 = vpack.c.bf16 %v2578_v6, %v2577_v63  ;;  %v2576_v0 = vmul.f32 %v2503_v9, %v8752_v12  ;;  %v2573_v6 = vmul.f32 %v4466_v36, %v8749_v3  ;;  %v2572_v9 = vmul.f32 %v2487_v32, %v8748_v42  ;;  %v8829_v63 = vld [vmem:[#allocation95_spill] sm:$0xff] }
 0x437   :  { %2740 = vmatmul.mubr.bf16.gmra.mxu0 %v8824_v14  ;;  %v2568_v32 = vmul.f32 %v2471_v25, %v5353_v30  ;;  %v2565_v25 = vmul.f32 %v6633_v18, %v5389_v55 }
 0x438   :  { %2917 = vmatpush2.bf16.msra.mxu0 %v2610_v35  ;;  %4496 = vmatpush2.bf16.msra.mxu1 %v2610_v35  ;;  %v2609_v21 = vpack.c.bf16 %v2576_v0, %v2575_v37  ;;  %v2608_v14 = vpack.c.bf16 %v2574_v11, %v2573_v6  ;;  %v2570_v37 = vmul.f32 %v4463_v62, %v5331_v28  ;;  %v8830_v35 = vunpack.c.l.s8.bf16 %v8829_v63  ;;  %v8832_v11 = vld [vmem:[#allocation80_spill] sm:$0xff] }
 0x439   :  { %2918 = vmatprep.subr.bf16.mxu0 %v8758_v16  ;;  %4481 = vmatprep.subr.bf16.mxu1 %v8758_v16  ;;  %v2607_v36 = vpack.c.bf16 %v2572_v9, %v2571_v15  ;;  %v2567_v62 = vmul.f32 %v2468_v17, %v5358_v20  ;;  %v2604_v17 = vpack.c.bf16 %v2566_v50, %v2565_v25  ;;  %v8839_v15 = vld [vmem:[#allocation86_spill] sm:$0xff] }
 0x43a   :  { %2747 = vmatprep.mubr.bf16.mxu0 %v8825_v4  ;;  %v2606_v10 = vpack.c.bf16 %v2570_v37, %v2569_v43  ;;  %v8833_v4 = vunpack.c.h.s8.bf16 %v8829_v63  ;;  %v2563_v6 = vmul.f32 %v6641_v5, %v8834_v24  ;;  %v8840_v37 = vunpack.c.l.s8.bf16 %v8839_v15  ;;  %v8849_v63 = vld [vmem:[#allocation103_spill] sm:$0xff] }
 0x43b   :  { %v2605_v0 = vpack.c.bf16 %v2568_v32, %v2567_v62  ;;  %v8844_v27 = vunpack.c.h.s8.bf16 %v8839_v15  ;;  %v8851_v62 = vld [vmem:[#allocation90_spill] sm:$0xff] }
 0x43c   :  { %2919 = vmatpush2.bf16.msra.mxu0 %v2609_v21  ;;  %4497 = vmatpush2.bf16.msra.mxu1 %v2609_v21  ;;  %v2564_v21 = vmul.f32 %v6661_v49, %v8832_v11  ;;  %v8852_v50 = vunpack.c.l.s8.bf16 %v8851_v62  ;;  %v8856_v25 = vunpack.c.h.s8.bf16 %v8851_v62 }
 0x43d   :  { %2920 = vmatprep.subr.bf16.mxu0 %v8758_v16  ;;  %4482 = vmatprep.subr.bf16.mxu1 %v8758_v16 }
 0x43e   :  { %v2603_v18 = vpack.c.bf16 %v2564_v21, %v2563_v6 }
 0x43f   :  { %2748 = vmatmul.mubr.bf16.gmra.mxu0 %v8826_v45  ;;  %v8837_v45 = vld [vmem:[#allocation99_spill] sm:$0xff] }
 0x440   :  { %2921 = vmatpush2.bf16.msra.mxu0 %v2608_v14  ;;  %4498 = vmatpush2.bf16.msra.mxu1 %v2608_v14  ;;  %v8835_v14 = vld [vmem:[#allocation97_spill] sm:$0xff]  ;;  %v8838_v49 = vunpack.c.l.s8.bf16 %v8837_v45 }
 0x441   :  { %2922 = vmatprep.subr.bf16.mxu0 %v8758_v16  ;;  %4483 = vmatprep.subr.bf16.mxu1 %v8758_v16  ;;  %v8836_v9 = vunpack.c.l.s8.bf16 %v8835_v14  ;;  %v8841_v5 = vunpack.c.h.s8.bf16 %v8835_v14 }
 0x442   :  { %2755 = vmatprep.mubr.bf16.mxu0 %v8828_v38  ;;  %v8845_v38 = vld [vmem:[#allocation101_spill] sm:$0xff] }
 0x443   :  { %v8846_v43 = vunpack.c.l.s8.bf16 %v8845_v38 }
 0x444   :  { %2923 = vmatpush2.bf16.msra.mxu0 %v2607_v36  ;;  %4499 = vmatpush2.bf16.msra.mxu1 %v2607_v36  ;;  %v8842_v36 = vunpack.c.h.s8.bf16 %v8755_v22  ;;  %v8853_v22 = vunpack.c.h.s8.bf16 %v8845_v38 }
 0x445   :  { %2924 = vmatprep.subr.bf16.mxu0 %v8758_v16  ;;  %4484 = vmatprep.subr.bf16.mxu1 %v8758_v16 }
 0x447   :  { %2756 = vmatmul.mubr.bf16.gmra.mxu0 %v8830_v35  ;;  %v8850_v35 = vunpack.c.l.s8.bf16 %v8849_v63 }
 0x448   :  { %2925 = vmatpush2.bf16.msra.mxu0 %v2606_v10  ;;  %4500 = vmatpush2.bf16.msra.mxu1 %v2606_v10  ;;  %v8847_v10 = vld [vmem:[#allocation88_spill] sm:$0xff] }
 0x449   :  { %2926 = vmatprep.subr.bf16.mxu0 %v8758_v16  ;;  %4485 = vmatprep.subr.bf16.mxu1 %v8758_v16  ;;  %v8848_v32 = vunpack.c.l.s8.bf16 %v8847_v10 }
 0x44a   :  { %2763 = vmatprep.mubr.bf16.mxu0 %v8831_v19  ;;  %v8855_v19 = vunpack.c.h.s8.bf16 %v8849_v63 }
 0x44c   :  { %2927 = vmatpush2.bf16.msra.mxu0 %v2605_v0  ;;  %4501 = vmatpush2.bf16.msra.mxu1 %v2605_v0  ;;  %v8854_v0 = vunpack.c.h.s8.bf16 %v8847_v10 }
 0x44d   :  { %2928 = vmatprep.subr.bf16.mxu0 %v8758_v16  ;;  %4486 = vmatprep.subr.bf16.mxu1 %v8758_v16 }
 0x44f   :  { %2764 = vmatmul.mubr.bf16.gmra.mxu0 %v8833_v4  ;;  %v8859_v4 = vld [vmem:[#allocation92_spill] sm:$0xff] }
 0x450   :  { %2929 = vmatpush2.bf16.msra.mxu0 %v2604_v17  ;;  %4502 = vmatpush2.bf16.msra.mxu1 %v2604_v17  ;;  %v8857_v17 = vld [vmem:[#allocation105_spill] sm:$0xff]  ;;  %v8860_v6 = vunpack.c.l.s8.bf16 %v8859_v4  ;;  %v8866_v15 = vunpack.c.h.s8.bf16 %v8859_v4  ;;  %v8885_v4 = vld [vmem:[#allocation115_spill] sm:$0xff] }
 0x451   :  { %2930 = vmatprep.subr.bf16.mxu0 %v8758_v16  ;;  %4487 = vmatprep.subr.bf16.mxu1 %v8758_v16  ;;  %v8843_v16 = vunpack.c.h.s8.bf16 %v8837_v45  ;;  %v8858_v21 = vunpack.c.l.s8.bf16 %v8857_v17 }
 0x452   :  { %2771 = vmatprep.mubr.bf16.mxu0 %v8836_v9  ;;  %v8863_v9 = vld [vmem:[#allocation94_spill] sm:$0xff] }
 0x453   :  { %v8864_v45 = vunpack.c.l.s8.bf16 %v8863_v9 }
 0x454   :  { %2931 = vmatpush2.bf16.msra.mxu0 %v2603_v18  ;;  %4503 = vmatpush2.bf16.msra.mxu1 %v2603_v18  ;;  %v8861_v18 = vld [vmem:[#allocation107_spill] sm:$0xff] }
 0x455   :  { %v8862_v14 = vunpack.c.l.s8.bf16 %v8861_v18 }
 0x457   :  { %2772 = vmatmul.mubr.bf16.gmra.mxu0 %v8838_v49  ;;  %2949 = vmatmul.mubr.bf16.vlgmr.msra.gmra.mxu1 %v8840_v37  ;;  %v8865_v49 = vunpack.c.h.s8.bf16 %v8857_v17  ;;  %v8867_v37 = vunpack.c.h.s8.bf16 %v8861_v18  ;;  %v8887_v18 = vld [vmem:[#allocation102_spill] sm:$0xff] }
 0x458   :  { %2779 = vmatprep.mubr.bf16.mxu0 %v8841_v5  ;;  %2956 = vmatprep.mubr.bf16.mxu1 %v8842_v36  ;;  %v8868_v5 = vunpack.c.h.s8.bf16 %v8863_v9  ;;  %v8869_v36 = vld [vmem:[#allocation109_spill] sm:$0xff] }
 0x45f   :  { %2780 = vmatmul.mubr.bf16.gmra.mxu0 %v8843_v16  ;;  %2957 = vmatmul.mubr.bf16.gmra.mxu1 %v8844_v27  ;;  %v8870_v16 = vunpack.c.l.s8.bf16 %v8869_v36  ;;  %v8871_v27 = vld [vmem:[#allocation96_spill] sm:$0xff] }
 0x460   :  { %2787 = vmatprep.mubr.bf16.mxu0 %v8846_v43  ;;  %2964 = vmatprep.mubr.bf16.mxu1 %v8848_v32  ;;  %v8872_v38 = vunpack.c.l.s8.bf16 %v8871_v27  ;;  %v8873_v43 = vld [vmem:[#allocation111_spill] sm:$0xff]  ;;  %v8875_v32 = vld [vmem:[#allocation98_spill] sm:$0xff]  ;;  %v8878_v62 = vunpack.c.h.s8.bf16 %v8871_v27  ;;  %v8893_v27 = vld [vmem:[#allocation117_spill] sm:$0xff] }
 0x461   :  { %v8874_v10 = vunpack.c.l.s8.bf16 %v8873_v43  ;;  %v8876_v63 = vunpack.c.l.s8.bf16 %v8875_v32 }
 0x467   :  { %2788 = vmatmul.mubr.bf16.gmra.mxu0 %v8850_v35  ;;  %2965 = vmatmul.mubr.bf16.gmra.mxu1 %v8852_v50  ;;  %v8877_v35 = vunpack.c.h.s8.bf16 %v8869_v36  ;;  %v8879_v50 = vunpack.c.h.s8.bf16 %v8873_v43  ;;  %v8891_v36 = vunpack.c.h.s8.bf16 %v8885_v4  ;;  %v8895_v43 = vld [vmem:[#allocation104_spill] sm:$0xff] }
 0x468   :  { %2795 = vmatprep.mubr.bf16.mxu0 %v8853_v22  ;;  %2972 = vmatprep.mubr.bf16.mxu1 %v8854_v0  ;;  %v8880_v22 = vunpack.c.h.s8.bf16 %v8875_v32  ;;  %v8881_v0 = vld [vmem:[#allocation113_spill] sm:$0xff] }
 0x469   :  { %v8889_v9 = vunpack.c.h.s8.bf16 %v8881_v0 }
 0x46f   :  { %2796 = vmatmul.mubr.bf16.gmra.mxu0 %v8855_v19  ;;  %2973 = vmatmul.mubr.bf16.gmra.mxu1 %v8856_v25  ;;  %v8882_v19 = vunpack.c.l.s8.bf16 %v8881_v0  ;;  %v8883_v25 = vld [vmem:[#allocation100_spill] sm:$0xff]  ;;  %v8899_v0 = vld [vmem:[#allocation106_spill] sm:$0xff] }
 0x470   :  { %2803 = vmatprep.mubr.bf16.mxu0 %v8858_v21  ;;  %2980 = vmatprep.mubr.bf16.mxu1 %v8860_v6  ;;  %v8884_v17 = vunpack.c.l.s8.bf16 %v8883_v25  ;;  %v8886_v6 = vunpack.c.l.s8.bf16 %v8885_v4 }
 0x477   :  { %2804 = vmatmul.mubr.bf16.gmra.mxu0 %v8862_v14  ;;  %2981 = vmatmul.mubr.bf16.gmra.mxu1 %v8864_v45  ;;  %v8888_v14 = vunpack.c.l.s8.bf16 %v8887_v18  ;;  %v8890_v45 = vunpack.c.h.s8.bf16 %v8883_v25  ;;  %v8901_v25 = vunpack.c.h.s8.bf16 %v8893_v27 }
 0x478   :  { %2811 = vmatprep.mubr.bf16.mxu0 %v8865_v49  ;;  %2988 = vmatprep.mubr.bf16.mxu1 %v8866_v15 }
 0x47f   :  { %2812 = vmatmul.mubr.bf16.gmra.mxu0 %v8867_v37  ;;  %2989 = vmatmul.mubr.bf16.gmra.mxu1 %v8868_v5 }
 0x480   :  { %2819 = vmatprep.mubr.bf16.mxu0 %v8870_v16  ;;  %2996 = vmatprep.mubr.bf16.mxu1 %v8872_v38  ;;  %v8892_v16 = vunpack.c.h.s8.bf16 %v8887_v18  ;;  %v8894_v38 = vunpack.c.l.s8.bf16 %v8893_v27 }
 0x487   :  { %2820 = vmatmul.mubr.bf16.gmra.mxu0 %v8874_v10  ;;  %2997 = vmatmul.mubr.bf16.gmra.mxu1 %v8876_v63  ;;  %v8896_v10 = vunpack.c.l.s8.bf16 %v8895_v43 }
 0x488   :  { %2827 = vmatprep.mubr.bf16.mxu0 %v8877_v35  ;;  %3004 = vmatprep.mubr.bf16.mxu1 %v8878_v62 }
 0x48f   :  { %2828 = vmatmul.mubr.bf16.gmra.mxu0 %v8879_v50  ;;  %3005 = vmatmul.mubr.bf16.gmra.mxu1 %v8880_v22  ;;  %v8897_v50 = vld [vmem:[#allocation119_spill] sm:$0xff] }
 0x490   :  { %2835 = vmatprep.mubr.bf16.mxu0 %v8882_v19  ;;  %3012 = vmatprep.mubr.bf16.mxu1 %v8884_v17  ;;  %v8898_v22 = vunpack.c.l.s8.bf16 %v8897_v50  ;;  %v8900_v19 = vunpack.c.l.s8.bf16 %v8899_v0  ;;  %v8902_v17 = vunpack.c.h.s8.bf16 %v8895_v43 }
 0x497   :  { %v6799_v21 = vpop.f32.mrf.mxu0  ;;  %2836 = vmatmul.mubr.bf16.gmra.mxu0 %v8886_v6  ;;  %3013 = vmatmul.mubr.bf16.gmra.mxu1 %v8888_v14 }
 0x498   :  { %2843 = vmatprep.mubr.bf16.mxu0 %v8889_v9  ;;  %3020 = vmatprep.mubr.bf16.mxu1 %v8890_v45  ;;  %v8903_v9 = vunpack.c.h.s8.bf16 %v8897_v50  ;;  %v8904_v45 = vunpack.c.h.s8.bf16 %v8899_v0  ;;  %v8911_v50 = vld [vmem:[#allocation110_spill] sm:$0xff] }
 0x499   :  { %v2647_v49 = vpop.f32.mrf.mxu0 }
 0x49a   :  { %v8905_v49 = vld [vmem:[#allocation121_spill] sm:$0xff] }
 0x49b   :  { %v6809_v15 = vpop.f32.mrf.mxu0  ;;  %v8913_v0 = vunpack.c.h.s8.bf16 %v8905_v49 }
 0x49d   :  { %v2650_v37 = vpop.f32.mrf.mxu0 }
 0x49e   :  { %v8906_v37 = vunpack.c.l.s8.bf16 %v8905_v49  ;;  %v8919_v49 = vld [vmem:[#allocation112_spill] sm:$0xff] }
 0x49f   :  { %v6811_v5 = vpop.f32.mrf.mxu0  ;;  %2844 = vmatmul.mubr.bf16.gmra.mxu0 %v8891_v36  ;;  %3021 = vmatmul.mubr.bf16.gmra.mxu1 %v8892_v16  ;;  %v8907_v36 = vld [vmem:[#allocation108_spill] sm:$0xff] }
 0x4a0   :  { %2851 = vmatprep.mubr.bf16.mxu0 %v8894_v38  ;;  %3028 = vmatprep.mubr.bf16.mxu1 %v8896_v10  ;;  %v8908_v16 = vunpack.c.l.s8.bf16 %v8907_v36 }
 0x4a1   :  { %v2655_v32 = vpop.f32.mrf.mxu0 }
 0x4a2   :  { %v8909_v32 = vld [vmem:[#allocation123_spill] sm:$0xff] }
 0x4a3   :  { %v6821_v63 = vpop.f32.mrf.mxu0 }
 0x4a5   :  { %v2658_v35 = vpop.f32.mrf.mxu0 }
 0x4a6   :  { %v8910_v35 = vunpack.c.l.s8.bf16 %v8909_v32 }
 0x4a7   :  { %v6823_v62 = vpop.f32.mrf.mxu0  ;;  %2852 = vmatmul.mubr.bf16.gmra.mxu0 %v8898_v22  ;;  %3029 = vmatmul.mubr.bf16.gmra.mxu1 %v8900_v19  ;;  %v8912_v22 = vunpack.c.l.s8.bf16 %v8911_v50  ;;  %v8914_v19 = vunpack.c.h.s8.bf16 %v8907_v36 }
 0x4a8   :  { %2859 = vmatprep.mubr.bf16.mxu0 %v8901_v25  ;;  %3036 = vmatprep.mubr.bf16.mxu1 %v8902_v17 }
 0x4a9   :  { %v2663_v4 = vpop.f32.mrf.mxu0 }
 0x4ab   :  { %v6833_v6 = vpop.f32.mrf.mxu0 }
 0x4ad   :  { %v2666_v18 = vpop.f32.mrf.mxu0 }
 0x4af   :  { %v6835_v14 = vpop.f32.mrf.mxu0  ;;  %2860 = vmatmul.mubr.bf16.gmra.mxu0 %v8903_v9  ;;  %3037 = vmatmul.mubr.bf16.gmra.mxu1 %v8904_v45  ;;  %v8915_v9 = vunpack.c.h.s8.bf16 %v8909_v32  ;;  %v8916_v45 = vunpack.c.h.s8.bf16 %v8911_v50  ;;  %v8923_v32 = vld [vmem:[#allocation114_spill] sm:$0xff] }
 0x4b0   :  { %2867 = vmatprep.mubr.bf16.mxu0 %v8906_v37  ;;  %3044 = vmatprep.mubr.bf16.mxu1 %v8908_v16  ;;  %v8917_v37 = vld [vmem:[#allocation125_spill] sm:$0xff] }
 0x4b1   :  { %v2671_v27 = vpop.f32.mrf.mxu0  ;;  %v8918_v16 = vunpack.c.l.s8.bf16 %v8917_v37  ;;  %v8925_v50 = vunpack.c.h.s8.bf16 %v8917_v37  ;;  %v8931_v37 = vld [vmem:[#allocation116_spill] sm:$0xff] }
 0x4b2   :  { %v8920_v27 = vunpack.c.l.s8.bf16 %v8919_v49 }
 0x4b3   :  { %v6845_v38 = vpop.f32.mrf.mxu0 }
 0x4b5   :  { %v2674_v43 = vpop.f32.mrf.mxu0 }
 0x4b7   :  { %v6847_v10 = vpop.f32.mrf.mxu0  ;;  %2868 = vmatmul.mubr.bf16.gmra.mxu0 %v8910_v35  ;;  %3045 = vmatmul.mubr.bf16.gmra.mxu1 %v8912_v22 }
 0x4b8   :  { %2875 = vmatprep.mubr.bf16.mxu0 %v8913_v0  ;;  %3052 = vmatprep.mubr.bf16.mxu1 %v8914_v19  ;;  %v8921_v0 = vld [vmem:[#allocation127_spill] sm:$0xff] }
 0x4b9   :  { %v2679_v25 = vpop.f32.mrf.mxu0  ;;  %v8922_v19 = vunpack.c.l.s8.bf16 %v8921_v0 }
 0x4ba   :  { %v8924_v25 = vunpack.c.l.s8.bf16 %v8923_v32 }
 0x4bb   :  { %v6857_v17 = vpop.f32.mrf.mxu0 }
 0x4bd   :  { %v2682_v4 = vpop.f32.mrf.mxu0 }
 0x4be   :  { %v8926_v4 = vunpack.c.h.s8.bf16 %v8919_v49 }
 0x4bf   :  { %v6859_v18 = vpop.f32.mrf.mxu0  ;;  %2876 = vmatmul.mubr.bf16.gmra.mxu0 %v8915_v9  ;;  %3053 = vmatmul.mubr.bf16.gmra.mxu1 %v8916_v45 }
 0x4c0   :  { %2883 = vmatprep.mubr.bf16.mxu0 %v8918_v16  ;;  %3060 = vmatprep.mubr.bf16.mxu1 %v8920_v27 }
 0x4c1   :  { %v2687_v36 = vpop.f32.mrf.mxu0 }
 0x4c2   :  { %v8927_v36 = vunpack.c.h.s8.bf16 %v8921_v0  ;;  %v8935_v0 = vld [vmem:[#allocation118_spill] sm:$0xff] }
 0x4c3   :  { %v6869_v43 = vpop.f32.mrf.mxu0 }
 0x4c5   :  { %v2690_v35 = vpop.f32.mrf.mxu0 }
 0x4c6   :  { %v8928_v35 = vunpack.c.h.s8.bf16 %v8923_v32 }
 0x4c7   :  { %v6871_v22 = vpop.f32.mrf.mxu0  ;;  %2884 = vmatmul.mubr.bf16.gmra.mxu0 %v8922_v19  ;;  %3061 = vmatmul.mubr.bf16.gmra.mxu1 %v8924_v25  ;;  %v8929_v19 = vld [vmem:[#allocation51_spill] sm:$0xff] }
 0x4c8   :  { %2891 = vmatprep.mubr.bf16.mxu0 %v8925_v50  ;;  %3068 = vmatprep.mubr.bf16.mxu1 %v8926_v4  ;;  %v8930_v25 = vunpack.c.l.s8.bf16 %v8929_v19  ;;  %v8932_v50 = vunpack.c.l.s8.bf16 %v8931_v37  ;;  %v8937_v32 = vunpack.c.h.s8.bf16 %v8929_v19 }
 0x4c9   :  { %v2695_v9 = vpop.f32.mrf.mxu0 }
 0x4cb   :  { %v6881_v45 = vpop.f32.mrf.mxu0 }
 0x4cd   :  { %v2698_v16 = vpop.f32.mrf.mxu0 }
 0x4ce   :  { %v8933_v16 = vld [vmem:[#allocation82_spill] sm:$0xff] }
 0x4cf   :  { %v6883_v27 = vpop.f32.mrf.mxu0  ;;  %2892 = vmatmul.mubr.bf16.gmra.mxu0 %v8927_v36  ;;  %3069 = vmatmul.mubr.bf16.gmra.mxu1 %v8928_v35  ;;  %v8934_v34 = vunpack.c.l.s8.bf16 %v8933_v16  ;;  %v8936_v36 = vunpack.c.l.s8.bf16 %v8935_v0  ;;  %v8938_v35 = vunpack.c.h.s8.bf16 %v8931_v37 }
 0x4d0   :  { %2932 = vmatprep.mubr.bf16.mxu0 %v8930_v25  ;;  %3076 = vmatprep.mubr.bf16.mxu1 %v8932_v50 }
 0x4d1   :  { %v2703_v49 = vpop.f32.mrf.mxu0 }
 0x4d3   :  { %v6893_v4 = vpop.f32.mrf.mxu0 }
 0x4d5   :  { %v2706_v9 = vpop.f32.mrf.mxu0 }
 0x4d6   :  { %v8939_v9 = vunpack.c.h.s8.bf16 %v8933_v16 }
 0x4d7   :  { %v6895_v33 = vpop.f32.mrf.mxu0  ;;  %2933 = vmatmul.mubr.bf16.vlgmr.msra.gmra.mxu0 %v8934_v34  ;;  %3077 = vmatmul.mubr.bf16.gmra.mxu1 %v8936_v36  ;;  %v8940_v34 = vunpack.c.h.s8.bf16 %v8935_v0  ;;  %v8942_v36 = vunpack.c.l.s8.bf16 %v8941_v41 }
 0x4d8   :  { %2940 = vmatprep.mubr.bf16.mxu0 %v8937_v32  ;;  %3084 = vmatprep.mubr.bf16.mxu1 %v8938_v35 }
 0x4d9   :  { %v2711_v25 = vpop.f32.mrf.mxu0 }
 0x4da   :  { %v8943_v25 = vld [vmem:[#allocation122_spill] sm:$0xff] }
 0x4db   :  { %v6905_v50 = vpop.f32.mrf.mxu0  ;;  %v8944_v51 = vunpack.c.l.s8.bf16 %v8943_v25 }
 0x4dd   :  { %v2714_v49 = vpop.f32.mrf.mxu0 }
 0x4de   :  { %v8945_v49 = vunpack.c.h.s8.bf16 %v8941_v41  ;;  %v8949_v41 = vld [vmem:[#allocation126_spill] sm:$0xff] }
 0x4df   :  { %v6907_v12 = vpop.f32.mrf.mxu0  ;;  %2941 = vmatmul.mubr.bf16.gmra.mxu0 %v8939_v9  ;;  %3085 = vmatmul.mubr.bf16.gmra.mxu1 %v8940_v34 }
 0x4e0   :  { %3092 = vmatprep.mubr.bf16.mxu1 %v8942_v36  ;;  %v8946_v36 = vunpack.c.h.s8.bf16 %v8943_v25 }
 0x4e1   :  { %v2719_v19 = vpop.f32.mrf.mxu0 }
 0x4e2   :  { %v8947_v19 = vld [vmem:[#allocation124_spill] sm:$0xff] }
 0x4e3   :  { %v6915_v32 = vpop.f32.mrf.mxu0  ;;  %v8948_v3 = vunpack.c.l.s8.bf16 %v8947_v19 }
 0x4e5   :  { %v2722_v37 = vpop.f32.mrf.mxu0 }
 0x4e7   :  { %v6917_v35 = vpop.f32.mrf.mxu0  ;;  %3093 = vmatmul.mubr.bf16.gmra.mxu1 %v8944_v51 }
 0x4e8   :  { %3100 = vmatprep.mubr.bf16.mxu1 %v8945_v49  ;;  %v8950_v49 = vunpack.c.l.s8.bf16 %v8949_v41 }
 0x4e9   :  { %v2727_v16 = vpop.f32.mrf.mxu0 }
 0x4ea   :  { %v8951_v16 = vunpack.c.h.s8.bf16 %v8947_v19  ;;  %v8955_v19 = vld [vmem:[#allocation129_spill] sm:$0xff] }
 0x4eb   :  { %v6923_v9 = vpop.f32.mrf.mxu0 }
 0x4ed   :  { %v2730_v0 = vpop.f32.mrf.mxu0 }
 0x4ef   :  { %v6925_v34 = vpop.f32.mrf.mxu0  ;;  %3101 = vmatmul.mubr.bf16.gmra.mxu1 %v8946_v36 }
 0x4f0   :  { %3108 = vmatprep.mubr.bf16.mxu1 %v8948_v3  ;;  %v8952_v3 = vunpack.c.h.s8.bf16 %v8949_v41 }
 0x4f1   :  { %v2735_v37 = vpop.f32.mrf.mxu0 }
 0x4f2   :  { %v8953_v37 = vld [vmem:[#allocation128_spill] sm:$0xff] }
 0x4f3   :  { %v6931_v42 = vpop.f32.mrf.mxu0  ;;  %v8954_v31 = vunpack.c.l.s8.bf16 %v8953_v37 }
 0x4f5   :  { %v2738_v54 = vpop.f32.mrf.mxu0 }
 0x4f7   :  { %v6933_v51 = vpop.f32.mrf.mxu0  ;;  %3109 = vmatmul.mubr.bf16.gmra.mxu1 %v8950_v49 }
 0x4f8   :  { %3116 = vmatprep.mubr.bf16.mxu1 %v8951_v16  ;;  %v8956_v16 = vunpack.c.l.s8.bf16 %v8955_v19 }
 0x4f9   :  { %v2743_v0 = vpop.f32.mrf.mxu0 }
 0x4fa   :  { %v8957_v0 = vunpack.c.h.s8.bf16 %v8953_v37 }
 0x4fb   :  { %v6939_v28 = vpop.f32.mrf.mxu0 }
 0x4fd   :  { %v2746_v25 = vpop.f32.mrf.mxu0 }
 0x4ff   :  { %v6941_v36 = vpop.f32.mrf.mxu0  ;;  %3117 = vmatmul.mubr.bf16.gmra.mxu1 %v8952_v3 }
 0x500   :  { %3124 = vmatprep.mubr.bf16.mxu1 %v8954_v31  ;;  %v8958_v31 = vunpack.c.h.s8.bf16 %v8955_v19 }
 0x501   :  { %v2751_v54 = vpop.f32.mrf.mxu0 }
 0x502   :  { %v8959_v54 = vld [vmem:[#allocation130_spill] sm:$0xff] }
 0x503   :  { %v6947_v30 = vpop.f32.mrf.mxu0  ;;  %v8960_v55 = vunpack.c.l.s8.bf16 %v8959_v54  ;;  %v8963_v52 = vunpack.c.h.s8.bf16 %v8959_v54 }
 0x505   :  { %v2754_v20 = vpop.f32.mrf.mxu0 }
 0x507   :  { %v6949_v49 = vpop.f32.mrf.mxu0  ;;  %3125 = vmatmul.mubr.bf16.gmra.mxu1 %v8956_v16 }
 0x508   :  { %3132 = vmatprep.mubr.bf16.mxu1 %v8957_v0  ;;  %v8961_v0 = vld [vmem:[#allocation131_spill] sm:$0xff] }
 0x509   :  { %v2759_v25 = vpop.f32.mrf.mxu0  ;;  %v8965_v56 = vunpack.c.h.s8.bf16 %v8961_v0 }
 0x50a   :  { %v8962_v25 = vunpack.c.l.s8.bf16 %v8961_v0 }
 0x50b   :  { %v6955_v26 = vpop.f32.mrf.mxu0 }
 0x50d   :  { %v2762_v41 = vpop.f32.mrf.mxu0 }
 0x50f   :  { %v6957_v3 = vpop.f32.mrf.mxu0  ;;  %3133 = vmatmul.mubr.bf16.gmra.mxu1 %v8958_v31 }
 0x510   :  { %3140 = vmatprep.mubr.bf16.mxu1 %v8960_v55  ;;  %v6975_v55 = vld [vmem:[%s8104_s6] ss:$0 sm:$0xff] }
 0x511   :  { %v2767_v20 = vpop.f32.mrf.mxu0 }
 0x513   :  { %v6963_v11 = vpop.f32.mrf.mxu0 }
 0x515   :  { %v2770_v24 = vpop.f32.mrf.mxu0 }
 0x517   :  { %v6965_v16 = vpop.f32.mrf.mxu0  ;;  %v2950_v37 = vpop.f32.mrf.mxu1  ;;  %3141 = vmatmul.mubr.bf16.gmra.mxu1 %v8962_v25  ;;  %v6983_v25 = vld [vmem:[%s8105_s7] ss:$0 sm:$0xff] }
 0x518   :  { %v2951_v41 = vadd.f32 %v2950_v37, %v6823_v62  ;;  %3148 = vmatprep.mubr.bf16.mxu1 %v8963_v52 }
 0x519   :  { %v2775_v19 = vpop.f32.mrf.mxu0  ;;  %v2952_v31 = vpop.f32.mrf.mxu1 }
 0x51a   :  { %v3193_v24 = vmul.f32 %v2951_v41, %v8766_v48 }
 0x51b   :  { %v6978_v20 = vpop.f32.mrf.mxu0  ;;  %v2953_v53 = vpop.f32.mrf.mxu1 }
 0x51c   :  { %v2954_v62 = vadd.f32 %v2953_v53, %v6833_v6  ;;  %v6987_v52 = vadd.f32 %v6975_v55, %v3193_v24  ;;  %v8967_v6 = vld [vmem:[#allocation132_spill] sm:$0xff] }
 0x51d   :  { %v2778_v54 = vpop.f32.mrf.mxu0  ;;  %v2955_v37 = vpop.f32.mrf.mxu1  ;;  %v8968_v24 = vunpack.c.l.s8.bf16 %v8967_v6 }
 0x51e   :  { %8964 = vst [vmem:[#allocation84_spill] sm:$0xff] %v6987_v52  ;;  %v3194_v19 = vmul.f32 %v2954_v62, %v8765_v58  ;;  %v6992_v48 = vadd.f32 %v6983_v25, %v6987_v52 }
 0x51f   :  { %v6994_v41 = vpop.f32.mrf.mxu0  ;;  %v2958_v31 = vpop.f32.mrf.mxu1  ;;  %3149 = vmatmul.mubr.bf16.gmra.mxu1 %v8965_v56 }
 0x520   :  { %v2959_v57 = vadd.f32 %v2958_v31, %v6835_v14  ;;  %3403 = vmax.xlane.f32.xlu1 %v6992_v48  ;;  %v7001_v53 = vadd.f32 %v6975_v55, %v3194_v19  ;;  %3156 = vmatprep.mubr.bf16.mxu1 %v8968_v24 }
 0x521   :  { %v2783_v58 = vpop.f32.mrf.mxu0  ;;  %v2960_v62 = vpop.f32.mrf.mxu1 }
 0x522   :  { %8966 = vst [vmem:[#allocation24_spill] sm:$0xff] %v7001_v53  ;;  %v3195_v54 = vmul.f32 %v2959_v57, %v8764_v7  ;;  %v7008_v37 = vadd.f32 %v6983_v25, %v7001_v53  ;;  %v8970_v53 = vld [vmem:[#allocation133_spill] sm:$0xff] }
 0x523   :  { %v7010_v0 = vpop.f32.mrf.mxu0  ;;  %v2961_v56 = vpop.f32.mrf.mxu1  ;;  %v8971_v52 = vunpack.c.l.s8.bf16 %v8970_v53 }
 0x524   :  { %v2962_v14 = vadd.f32 %v2961_v56, %v6845_v38  ;;  %3405 = vmax.xlane.f32.xlu0 %v7008_v37  ;;  %v7015_v19 = vadd.f32 %v6975_v55, %v3195_v54  ;;  %v8973_v56 = vunpack.c.h.s8.bf16 %v8967_v6 }
 0x525   :  { %v2786_v31 = vpop.f32.mrf.mxu0  ;;  %v2963_v24 = vpop.f32.mrf.mxu1 }
 0x526   :  { %8969 = vst [vmem:[#allocation25_spill] sm:$0xff] %v7015_v19  ;;  %v3196_v58 = vmul.f32 %v2962_v14, %v8763_v59  ;;  %v7020_v57 = vadd.f32 %v6983_v25, %v7015_v19 }
 0x527   :  { %v7022_v7 = vpop.f32.mrf.mxu0  ;;  %v2966_v62 = vpop.f32.mrf.mxu1  ;;  %3157 = vmatmul.mubr.bf16.gmra.mxu1 %v8971_v52 }
 0x528   :  { %v2967_v38 = vadd.f32 %v2966_v62, %v6847_v10  ;;  %3407 = vmax.xlane.f32.xlu1 %v7020_v57  ;;  %v7029_v54 = vadd.f32 %v6975_v55, %v3196_v58  ;;  %3164 = vmatprep.mubr.bf16.mxu1 %v8973_v56 }
 0x529   :  { %v2791_v59 = vpop.f32.mrf.mxu0  ;;  %v2968_v14 = vpop.f32.mrf.mxu1 }
 0x52a   :  { %8972 = vst [vmem:[#allocation28_spill] sm:$0xff] %v7029_v54  ;;  %v3197_v31 = vmul.f32 %v2967_v38, %v8762_v40  ;;  %v7036_v24 = vadd.f32 %v6983_v25, %v7029_v54  ;;  %v8977_v14 = vunpack.c.h.s8.bf16 %v8970_v53 }
 0x52b   :  { %v7038_v19 = vpop.f32.mrf.mxu0  ;;  %v2969_v52 = vpop.f32.mrf.mxu1 }
 0x52c   :  { %8974 = vst [vmem:[#allocation29_spill] sm:$0xff] %v7036_v24  ;;  %v2970_v10 = vadd.f32 %v2969_v52, %v6857_v17  ;;  %3409 = vmax.xlane.f32.xlu0 %v7036_v24  ;;  %v7043_v58 = vadd.f32 %v6975_v55, %v3197_v31  ;;  %v8979_v52 = vld [vmem:[#allocation134_spill] sm:$0xff] }
 0x52d   :  { %v2794_v6 = vpop.f32.mrf.mxu0  ;;  %v2971_v62 = vpop.f32.mrf.mxu1 }
 0x52e   :  { %8975 = vst [vmem:[#allocation30_spill] sm:$0xff] %v7043_v58  ;;  %v3198_v56 = vmul.f32 %v2970_v10, %v8761_v23  ;;  %v7048_v40 = vadd.f32 %v6983_v25, %v7043_v58  ;;  %v8980_v6 = vunpack.c.l.s8.bf16 %v8979_v52  ;;  %v8981_v62 = vld [vmem:[#allocation21_spill] sm:$0xff] }
 0x52f   :  { %v7050_v38 = vpop.f32.mrf.mxu0  ;;  %v2974_v59 = vpop.f32.mrf.mxu1  ;;  %3165 = vmatmul.mubr.bf16.gmra.mxu1 %v8977_v14 }
 0x530   :  { %8976 = vst [vmem:[#allocation31_spill] sm:$0xff] %v7048_v40  ;;  %v2975_v17 = vadd.f32 %v2974_v59, %v6859_v18  ;;  %3411 = vmax.xlane.f32.xlu1 %v7048_v40  ;;  %v7057_v31 = vadd.f32 %v6975_v55, %v3198_v56  ;;  %3172 = vmatprep.mubr.bf16.mxu1 %v8980_v6  ;;  %v8985_v40 = vld [vmem:[#allocation135_spill] sm:$0xff] }
 0x531   :  { %v2799_v23 = vpop.f32.mrf.mxu0  ;;  %v2976_v10 = vpop.f32.mrf.mxu1  ;;  %v8986_v24 = vunpack.c.l.s8.bf16 %v8985_v40 }
 0x532   :  { %8978 = vst [vmem:[#allocation67_spill] sm:$0xff] %v7057_v31  ;;  %v3199_v58 = vmul.f32 %v2975_v17, %v8981_v62  ;;  %v7064_v54 = vadd.f32 %v6983_v25, %v7057_v31  ;;  %v8984_v23 = vld [vmem:[#allocation20_spill] sm:$0xff] }
 0x533   :  { %v7066_v53 = vpop.f32.mrf.mxu0  ;;  %v2977_v14 = vpop.f32.mrf.mxu1 }
 0x534   :  { %8982 = vst [vmem:[#allocation70_spill] sm:$0xff] %v7064_v54  ;;  %v2978_v18 = vadd.f32 %v2977_v14, %v6869_v43  ;;  %3413 = vmax.xlane.f32.xlu0 %v7064_v54  ;;  %v7071_v56 = vadd.f32 %v6975_v55, %v3199_v58  ;;  %v8988_v14 = vunpack.c.h.s8.bf16 %v8979_v52 }
 0x535   :  { %v2802_v59 = vpop.f32.mrf.mxu0  ;;  %v2979_v6 = vpop.f32.mrf.mxu1 }
 0x536   :  { %8983 = vst [vmem:[#allocation71_spill] sm:$0xff] %v7071_v56  ;;  %v3200_v10 = vmul.f32 %v2978_v18, %v8984_v23  ;;  %v7076_v17 = vadd.f32 %v6983_v25, %v7071_v56  ;;  %v8989_v6 = vld [vmem:[#allocation17_spill] sm:$0xff] }
 0x537   :  { %v7078_v62 = vpop.f32.mrf.mxu0  ;;  %v2982_v31 = vpop.f32.mrf.mxu1  ;;  %3173 = vmatmul.mubr.bf16.gmra.mxu1 %v8986_v24 }
 0x538   :  { %v2983_v43 = vadd.f32 %v2982_v31, %v6871_v22  ;;  %3415 = vmax.xlane.f32.xlu1 %v7076_v17  ;;  %v7085_v58 = vadd.f32 %v6975_v55, %v3200_v10  ;;  %3180 = vmatprep.mubr.bf16.mxu1 %v8988_v14  ;;  %v8992_v14 = vld [vmem:[#allocation16_spill] sm:$0xff] }
 0x539   :  { %v2807_v18 = vpop.f32.mrf.mxu0  ;;  %v2984_v59 = vpop.f32.mrf.mxu1 }
 0x53a   :  { %8987 = vst [vmem:[#allocation72_spill] sm:$0xff] %v7085_v58  ;;  %v3201_v23 = vmul.f32 %v2983_v43, %v8989_v6  ;;  %v7092_v56 = vadd.f32 %v6983_v25, %v7085_v58  ;;  %v8993_v58 = vunpack.c.h.s8.bf16 %v8985_v40 }
 0x53b   :  { %v7094_v54 = vpop.f32.mrf.mxu0  ;;  %v2985_v24 = vpop.f32.mrf.mxu1 }
 0x53c   :  { %8990 = vst [vmem:[#allocation36_spill] sm:$0xff] %v7092_v56  ;;  %v2986_v22 = vadd.f32 %v2985_v24, %v6881_v45  ;;  %3417 = vmax.xlane.f32.xlu0 %v7092_v56  ;;  %v7099_v31 = vadd.f32 %v6975_v55, %v3201_v23 }
 0x53d   :  { %v2810_v52 = vpop.f32.mrf.mxu0  ;;  %v2987_v10 = vpop.f32.mrf.mxu1 }
 0x53e   :  { %8991 = vst [vmem:[#allocation73_spill] sm:$0xff] %v7099_v31  ;;  %v3202_v18 = vmul.f32 %v2986_v22, %v8992_v14  ;;  %v7104_v43 = vadd.f32 %v6983_v25, %v7099_v31  ;;  %v8995_v22 = vld [vmem:[#allocation13_spill] sm:$0xff] }
 0x53f   :  { %v7106_v59 = vpop.f32.mrf.mxu0  ;;  %v2990_v6 = vpop.f32.mrf.mxu1  ;;  %3181 = vmatmul.mubr.bf16.gmra.mxu1 %v8993_v58 }
 0x540   :  { %v2991_v45 = vadd.f32 %v2990_v6, %v6883_v27  ;;  %3419 = vmax.xlane.f32.xlu1 %v7104_v43  ;;  %v7113_v23 = vadd.f32 %v6975_v55, %v3202_v18  ;;  %v8997_v6 = vld [vmem:[#allocation15_spill] sm:$0xff] }
 0x541   :  { %v2815_v24 = vpop.f32.mrf.mxu0  ;;  %v2992_v52 = vpop.f32.mrf.mxu1 }
 0x542   :  { %8994 = vst [vmem:[#allocation74_spill] sm:$0xff] %v7113_v23  ;;  %v3203_v10 = vmul.f32 %v2991_v45, %v8995_v22  ;;  %v7118_v14 = vadd.f32 %v6983_v25, %v7113_v23 }
 0x543   :  { %v7120_v31 = vpop.f32.mrf.mxu0  ;;  %v2993_v56 = vpop.f32.mrf.mxu1 }
 0x544   :  { %v2994_v40 = vadd.f32 %v2993_v56, %v6893_v4  ;;  %3421 = vmax.xlane.f32.xlu0 %v7118_v14  ;;  %v7125_v27 = vadd.f32 %v6975_v55, %v3203_v10 }
 0x545   :  { %v2818_v58 = vpop.f32.mrf.mxu0  ;;  %v2995_v18 = vpop.f32.mrf.mxu1 }
 0x546   :  { %8996 = vst [vmem:[#allocation75_spill] sm:$0xff] %v7125_v27  ;;  %v3204_v24 = vmul.f32 %v2994_v40, %v8997_v6  ;;  %v7130_v45 = vadd.f32 %v6983_v25, %v7125_v27 }
 0x547   :  { %v7132_v52 = vpop.f32.mrf.mxu0  ;;  %v2998_v22 = vpop.f32.mrf.mxu1 }
 0x548   :  { %v2999_v23 = vadd.f32 %v2998_v22, %v6895_v33  ;;  %3423 = vmax.xlane.f32.xlu1 %v7130_v45  ;;  %v7137_v4 = vadd.f32 %v6975_v55, %v3204_v24 }
 0x549   :  { %v2823_v56 = vpop.f32.mrf.mxu0  ;;  %v3000_v10 = vpop.f32.mrf.mxu1 }
 0x54a   :  { %8998 = vst [vmem:[#allocation76_spill] sm:$0xff] %v7137_v4  ;;  %v3205_v58 = vmul.f32 %v2999_v23, %v8781_v44  ;;  %v7142_v40 = vadd.f32 %v6983_v25, %v7137_v4 }
 0x54b   :  { %v7144_v18 = vpop.f32.mrf.mxu0  ;;  %v3001_v6 = vpop.f32.mrf.mxu1 }
 0x54c   :  { %v3002_v27 = vadd.f32 %v3001_v6, %v6905_v50  ;;  %3425 = vmax.xlane.f32.xlu0 %v7142_v40  ;;  %v7149_v33 = vadd.f32 %v6975_v55, %v3205_v58 }
 0x54d   :  { %v2826_v24 = vpop.f32.mrf.mxu0  ;;  %v3003_v22 = vpop.f32.mrf.mxu1 }
 0x54e   :  { %8999 = vst [vmem:[#allocation77_spill] sm:$0xff] %v7149_v33  ;;  %v3206_v56 = vmul.f32 %v3002_v27, %v8780_v8  ;;  %v7154_v44 = vadd.f32 %v6983_v25, %v7149_v33 }
 0x54f   :  { %v7156_v23 = vpop.f32.mrf.mxu0  ;;  %v3006_v10 = vpop.f32.mrf.mxu1 }
 0x550   :  { %9000 = vst [vmem:[#allocation78_spill] sm:$0xff] %v7154_v44  ;;  %v3007_v4 = vadd.f32 %v3006_v10, %v6907_v12  ;;  %3427 = vmax.xlane.f32.xlu1 %v7154_v44  ;;  %v7161_v50 = vadd.f32 %v6975_v55, %v3206_v56 }
 0x551   :  { %v2831_v58 = vpop.f32.mrf.mxu0  ;;  %v3008_v6 = vpop.f32.mrf.mxu1 }
 0x552   :  { %9001 = vst [vmem:[#allocation34_spill] sm:$0xff] %v7161_v50  ;;  %v3207_v24 = vmul.f32 %v3007_v4, %v8779_v46  ;;  %v7166_v8 = vadd.f32 %v6983_v25, %v7161_v50  ;;  %v9004_v58 = vld [vmem:[#allocation66_spill] sm:$0xff] }
 0x553   :  { %v7168_v27 = vpop.f32.mrf.mxu0  ;;  %v3009_v22 = vpop.f32.mrf.mxu1 }
 0x554   :  { %9002 = vst [vmem:[#allocation35_spill] sm:$0xff] %v7166_v8  ;;  %v3010_v33 = vadd.f32 %v3009_v22, %v6915_v32  ;;  %3429 = vmax.xlane.f32.xlu0 %v7166_v8  ;;  %v7173_v12 = vadd.f32 %v6975_v55, %v3207_v24 }
 0x555   :  { %v2834_v56 = vpop.f32.mrf.mxu0  ;;  %v3011_v10 = vpop.f32.mrf.mxu1 }
 0x556   :  { %9003 = vst [vmem:[#allocation39_spill] sm:$0xff] %v7173_v12  ;;  %v3208_v6 = vmul.f32 %v3010_v33, %v9004_v58  ;;  %v7178_v46 = vadd.f32 %v6983_v25, %v7173_v12  ;;  %v9007_v56 = vld [vmem:[#allocation63_spill] sm:$0xff] }
 0x557   :  { %v7180_v4 = vpop.f32.mrf.mxu0  ;;  %v3014_v50 = vpop.f32.mrf.mxu1 }
 0x558   :  { %9005 = vst [vmem:[#allocation40_spill] sm:$0xff] %v7178_v46  ;;  %v3015_v44 = vadd.f32 %v3014_v50, %v6917_v35  ;;  %3431 = vmax.xlane.f32.xlu1 %v7178_v46  ;;  %v7185_v32 = vadd.f32 %v6975_v55, %v3208_v6 }
 0x559   :  { %v2839_v24 = vpop.f32.mrf.mxu0  ;;  %v3016_v22 = vpop.f32.mrf.mxu1 }
 0x55a   :  { %9006 = vst [vmem:[#allocation79_spill] sm:$0xff] %v7185_v32  ;;  %v3209_v10 = vmul.f32 %v3015_v44, %v9007_v56  ;;  %v7190_v33 = vadd.f32 %v6983_v25, %v7185_v32  ;;  %v9010_v24 = vld [vmem:[#allocation62_spill] sm:$0xff] }
 0x55b   :  { %v7192_v58 = vpop.f32.mrf.mxu0  ;;  %v3017_v12 = vpop.f32.mrf.mxu1 }
 0x55c   :  { %9008 = vst [vmem:[#allocation83_spill] sm:$0xff] %v7190_v33  ;;  %v3018_v8 = vadd.f32 %v3017_v12, %v6923_v9  ;;  %3433 = vmax.xlane.f32.xlu0 %v7190_v33  ;;  %v7197_v35 = vadd.f32 %v6975_v55, %v3209_v10 }
 0x55d   :  { %v2842_v50 = vpop.f32.mrf.mxu0  ;;  %v3019_v6 = vpop.f32.mrf.mxu1 }
 0x55e   :  { %9009 = vst [vmem:[#allocation85_spill] sm:$0xff] %v7197_v35  ;;  %v3210_v22 = vmul.f32 %v3018_v8, %v9010_v24  ;;  %v7202_v44 = vadd.f32 %v6983_v25, %v7197_v35  ;;  %v9013_v50 = vld [vmem:[#allocation59_spill] sm:$0xff] }
 0x55f   :  { %v7204_v56 = vpop.f32.mrf.mxu0  ;;  %v3022_v32 = vpop.f32.mrf.mxu1 }
 0x560   :  { %9011 = vst [vmem:[#allocation87_spill] sm:$0xff] %v7202_v44  ;;  %v3023_v46 = vadd.f32 %v3022_v32, %v6925_v34  ;;  %3435 = vmax.xlane.f32.xlu1 %v7202_v44  ;;  %v7209_v9 = vadd.f32 %v6975_v55, %v3210_v22 }
 0x561   :  { %v2847_v12 = vpop.f32.mrf.mxu0  ;;  %v3024_v10 = vpop.f32.mrf.mxu1 }
 0x562   :  { %9012 = vst [vmem:[#allocation89_spill] sm:$0xff] %v7209_v9  ;;  %v3211_v6 = vmul.f32 %v3023_v46, %v9013_v50  ;;  %v7214_v8 = vadd.f32 %v6983_v25, %v7209_v9  ;;  %v9016_v12 = vld [vmem:[#allocation58_spill] sm:$0xff] }
 0x563   :  { %v7216_v24 = vpop.f32.mrf.mxu0  ;;  %v3025_v35 = vpop.f32.mrf.mxu1 }
 0x564   :  { %9014 = vst [vmem:[#allocation91_spill] sm:$0xff] %v7214_v8  ;;  %v3026_v33 = vadd.f32 %v3025_v35, %v6931_v42  ;;  %3437 = vmax.xlane.f32.xlu0 %v7214_v8  ;;  %v7221_v34 = vadd.f32 %v6975_v55, %v3211_v6 }
 0x565   :  { %v2850_v32 = vpop.f32.mrf.mxu0  ;;  %v3027_v22 = vpop.f32.mrf.mxu1 }
 0x566   :  { %9015 = vst [vmem:[#allocation93_spill] sm:$0xff] %v7221_v34  ;;  %v3212_v10 = vmul.f32 %v3026_v33, %v9016_v12  ;;  %v7226_v46 = vadd.f32 %v6983_v25, %v7221_v34  ;;  %v9019_v32 = vld [vmem:[#allocation55_spill] sm:$0xff] }
 0x567   :  { %v7228_v50 = vpop.f32.mrf.mxu0  ;;  %v3030_v9 = vpop.f32.mrf.mxu1 }
 0x568   :  { %9017 = vst [vmem:[#allocation95_spill] sm:$0xff] %v7226_v46  ;;  %v3031_v44 = vadd.f32 %v3030_v9, %v6933_v51  ;;  %3439 = vmax.xlane.f32.xlu1 %v7226_v46  ;;  %v7233_v42 = vadd.f32 %v6975_v55, %v3212_v10 }
 0x569   :  { %v2855_v35 = vpop.f32.mrf.mxu0  ;;  %v3032_v6 = vpop.f32.mrf.mxu1 }
 0x56a   :  { %9018 = vst [vmem:[#allocation97_spill] sm:$0xff] %v7233_v42  ;;  %v3213_v22 = vmul.f32 %v3031_v44, %v9019_v32  ;;  %v7238_v33 = vadd.f32 %v6983_v25, %v7233_v42  ;;  %v9022_v35 = vld [vmem:[#allocation54_spill] sm:$0xff] }
 0x56b   :  { %v7240_v12 = vpop.f32.mrf.mxu0  ;;  %v3033_v34 = vpop.f32.mrf.mxu1 }
 0x56c   :  { %9020 = vst [vmem:[#allocation99_spill] sm:$0xff] %v7238_v33  ;;  %v3034_v8 = vadd.f32 %v3033_v34, %v6939_v28  ;;  %3441 = vmax.xlane.f32.xlu0 %v7238_v33  ;;  %v7245_v51 = vadd.f32 %v6975_v55, %v3213_v22 }
 0x56d   :  { %v2858_v9 = vpop.f32.mrf.mxu0  ;;  %v3035_v10 = vpop.f32.mrf.mxu1 }
 0x56e   :  { %9021 = vst [vmem:[#allocation86_spill] sm:$0xff] %v7245_v51  ;;  %v3214_v6 = vmul.f32 %v3034_v8, %v9022_v35  ;;  %v7250_v44 = vadd.f32 %v6983_v25, %v7245_v51  ;;  %v9025_v9 = vld [vmem:[#allocation50_spill] sm:$0xff] }
 0x56f   :  { %v7252_v32 = vpop.f32.mrf.mxu0  ;;  %v3038_v42 = vpop.f32.mrf.mxu1 }
 0x570   :  { %9023 = vst [vmem:[#allocation101_spill] sm:$0xff] %v7250_v44  ;;  %v3039_v46 = vadd.f32 %v3038_v42, %v6941_v36  ;;  %3443 = vmax.xlane.f32.xlu1 %v7250_v44  ;;  %v7257_v28 = vadd.f32 %v6975_v55, %v3214_v6 }
 0x571   :  { %v2863_v34 = vpop.f32.mrf.mxu0  ;;  %v3040_v22 = vpop.f32.mrf.mxu1 }
 0x572   :  { %9024 = vst [vmem:[#allocation88_spill] sm:$0xff] %v7257_v28  ;;  %v3215_v10 = vmul.f32 %v3039_v46, %v9025_v9  ;;  %v7262_v8 = vadd.f32 %v6983_v25, %v7257_v28  ;;  %v9028_v34 = vld [vmem:[#allocation49_spill] sm:$0xff] }
 0x573   :  { %v7264_v35 = vpop.f32.mrf.mxu0  ;;  %v3041_v51 = vpop.f32.mrf.mxu1 }
 0x574   :  { %9026 = vst [vmem:[#allocation103_spill] sm:$0xff] %v7262_v8  ;;  %v3042_v33 = vadd.f32 %v3041_v51, %v6947_v30  ;;  %3445 = vmax.xlane.f32.xlu0 %v7262_v8  ;;  %v7269_v36 = vadd.f32 %v6975_v55, %v3215_v10 }
 0x575   :  { %v2866_v42 = vpop.f32.mrf.mxu0  ;;  %v3043_v6 = vpop.f32.mrf.mxu1 }
 0x576   :  { %9027 = vst [vmem:[#allocation90_spill] sm:$0xff] %v7269_v36  ;;  %v3216_v22 = vmul.f32 %v3042_v33, %v9028_v34  ;;  %v7274_v46 = vadd.f32 %v6983_v25, %v7269_v36  ;;  %v9031_v42 = vld [vmem:[#allocation46_spill] sm:$0xff] }
 0x577   :  { %v7276_v9 = vpop.f32.mrf.mxu0  ;;  %v3046_v28 = vpop.f32.mrf.mxu1 }
 0x578   :  { %9029 = vst [vmem:[#allocation105_spill] sm:$0xff] %v7274_v46  ;;  %v3047_v44 = vadd.f32 %v3046_v28, %v6949_v49  ;;  %3447 = vmax.xlane.f32.xlu1 %v7274_v46  ;;  %v7281_v30 = vadd.f32 %v6975_v55, %v3216_v22 }
 0x579   :  { %v2871_v51 = vpop.f32.mrf.mxu0  ;;  %v3048_v10 = vpop.f32.mrf.mxu1 }
 0x57a   :  { %9030 = vst [vmem:[#allocation92_spill] sm:$0xff] %v7281_v30  ;;  %v3217_v6 = vmul.f32 %v3047_v44, %v9031_v42  ;;  %v7286_v33 = vadd.f32 %v6983_v25, %v7281_v30  ;;  %v9034_v51 = vld [vmem:[#allocation45_spill] sm:$0xff] }
 0x57b   :  { %v7288_v34 = vpop.f32.mrf.mxu0  ;;  %v3049_v36 = vpop.f32.mrf.mxu1 }
 0x57c   :  { %9032 = vst [vmem:[#allocation107_spill] sm:$0xff] %v7286_v33  ;;  %v3050_v8 = vadd.f32 %v3049_v36, %v6955_v26  ;;  %3449 = vmax.xlane.f32.xlu0 %v7286_v33  ;;  %v7293_v49 = vadd.f32 %v6975_v55, %v3217_v6 }
 0x57d   :  { %v2874_v28 = vpop.f32.mrf.mxu0  ;;  %v3051_v22 = vpop.f32.mrf.mxu1 }
 0x57e   :  { %9033 = vst [vmem:[#allocation94_spill] sm:$0xff] %v7293_v49  ;;  %v3218_v10 = vmul.f32 %v3050_v8, %v9034_v51  ;;  %v7298_v44 = vadd.f32 %v6983_v25, %v7293_v49  ;;  %v9037_v28 = vld [vmem:[#allocation42_spill] sm:$0xff] }
 0x57f   :  { %v7300_v42 = vpop.f32.mrf.mxu0  ;;  %v3054_v30 = vpop.f32.mrf.mxu1 }
 0x580   :  { %9035 = vst [vmem:[#allocation109_spill] sm:$0xff] %v7298_v44  ;;  %v3055_v46 = vadd.f32 %v3054_v30, %v6957_v3  ;;  %3451 = vmax.xlane.f32.xlu1 %v7298_v44  ;;  %v7305_v26 = vadd.f32 %v6975_v55, %v3218_v10 }
 0x581   :  { %v2879_v36 = vpop.f32.mrf.mxu0  ;;  %v3056_v6 = vpop.f32.mrf.mxu1 }
 0x582   :  { %9036 = vst [vmem:[#allocation96_spill] sm:$0xff] %v7305_v26  ;;  %v3219_v22 = vmul.f32 %v3055_v46, %v9037_v28  ;;  %v7310_v8 = vadd.f32 %v6983_v25, %v7305_v26  ;;  %v9039_v36 = vld [vmem:[#allocation41_spill] sm:$0xff] }
 0x583   :  { %v7312_v51 = vpop.f32.mrf.mxu0  ;;  %v3057_v49 = vpop.f32.mrf.mxu1 }
 0x584   :  { %v3058_v33 = vadd.f32 %v3057_v49, %v6963_v11  ;;  %3453 = vmax.xlane.f32.xlu0 %v7310_v8  ;;  %v7317_v3 = vadd.f32 %v6975_v55, %v3219_v22 }
 0x585   :  { %v2882_v30 = vpop.f32.mrf.mxu0  ;;  %v3059_v10 = vpop.f32.mrf.mxu1 }
 0x586   :  { %9038 = vst [vmem:[#allocation111_spill] sm:$0xff] %v7317_v3  ;;  %v3220_v6 = vmul.f32 %v3058_v33, %v9039_v36  ;;  %v7322_v46 = vadd.f32 %v6983_v25, %v7317_v3 }
 0x587   :  { %v7324_v28 = vpop.f32.mrf.mxu0  ;;  %v3062_v26 = vpop.f32.mrf.mxu1 }
 0x588   :  { %v3063_v44 = vadd.f32 %v3062_v26, %v6965_v16  ;;  %3455 = vmax.xlane.f32.xlu1 %v7322_v46  ;;  %v7329_v11 = vadd.f32 %v6975_v55, %v3220_v6 }
 0x589   :  { %v2887_v49 = vpop.f32.mrf.mxu0  ;;  %v3064_v22 = vpop.f32.mrf.mxu1 }
 0x58a   :  { %9040 = vst [vmem:[#allocation98_spill] sm:$0xff] %v7329_v11  ;;  %v3221_v30 = vmul.f32 %v3063_v44, %v8808_v29  ;;  %v7334_v33 = vadd.f32 %v6983_v25, %v7329_v11 }
 0x58b   :  { %v7336_v10 = vpop.f32.mrf.mxu0  ;;  %v3065_v36 = vpop.f32.mrf.mxu1 }
 0x58c   :  { %v3066_v3 = vadd.f32 %v3065_v36, %v6978_v20  ;;  %3457 = vmax.xlane.f32.xlu0 %v7334_v33  ;;  %v7341_v16 = vadd.f32 %v6975_v55, %v3221_v30 }
 0x58d   :  { %v2890_v26 = vpop.f32.mrf.mxu0  ;;  %v3067_v6 = vpop.f32.mrf.mxu1 }
 0x58e   :  { %9041 = vst [vmem:[#allocation113_spill] sm:$0xff] %v7341_v16  ;;  %v3222_v49 = vmul.f32 %v3066_v3, %v8806_v39  ;;  %v7346_v29 = vadd.f32 %v6983_v25, %v7341_v16 }
 0x58f   :  { %v7348_v44 = vpop.f32.mrf.mxu0  ;;  %v3070_v22 = vpop.f32.mrf.mxu1 }
 0x590   :  { %9042 = vst [vmem:[#allocation100_spill] sm:$0xff] %v7346_v29  ;;  %v3071_v11 = vadd.f32 %v3070_v22, %v6994_v41  ;;  %3459 = vmax.xlane.f32.xlu1 %v7346_v29  ;;  %v7353_v20 = vadd.f32 %v6975_v55, %v3222_v49 }
 0x591   :  { %v2895_v30 = vpop.f32.mrf.mxu0  ;;  %v3072_v36 = vpop.f32.mrf.mxu1 }
 0x592   :  { %9043 = vst [vmem:[#allocation115_spill] sm:$0xff] %v7353_v20  ;;  %v3223_v26 = vmul.f32 %v3071_v11, %v8805_v47  ;;  %v7358_v39 = vadd.f32 %v6983_v25, %v7353_v20 }
 0x593   :  { %v7360_v3 = vpop.f32.mrf.mxu0  ;;  %v3073_v6 = vpop.f32.mrf.mxu1 }
 0x594   :  { %9044 = vst [vmem:[#allocation102_spill] sm:$0xff] %v7358_v39  ;;  %v3074_v16 = vadd.f32 %v3073_v6, %v7010_v0  ;;  %3461 = vmax.xlane.f32.xlu0 %v7358_v39  ;;  %v7365_v41 = vadd.f32 %v6975_v55, %v3223_v26 }
 0x595   :  { %v2898_v49 = vpop.f32.mrf.mxu0  ;;  %v3075_v22 = vpop.f32.mrf.mxu1 }
 0x596   :  { %9045 = vst [vmem:[#allocation117_spill] sm:$0xff] %v7365_v41  ;;  %v3224_v30 = vmul.f32 %v3074_v16, %v8803_v13  ;;  %v7370_v47 = vadd.f32 %v6983_v25, %v7365_v41  ;;  %v9047_v49 = vld [vmem:[#allocation38_spill] sm:$0xff] }
 0x597   :  { %v2934_v11 = vpop.f32.mrf.mxu0  ;;  %v3078_v36 = vpop.f32.mrf.mxu1 }
 0x598   :  { %v2935_v20 = vadd.f32 %v2934_v11, %v6799_v21  ;;  %v3079_v29 = vadd.f32 %v3078_v36, %v7022_v7  ;;  %3463 = vmax.xlane.f32.xlu1 %v7370_v47  ;;  %v7376_v0 = vadd.f32 %v6975_v55, %v3224_v30 }
 0x599   :  { %v2936_v26 = vpop.f32.mrf.mxu0  ;;  %v3080_v6 = vpop.f32.mrf.mxu1 }
 0x59a   :  { %9046 = vst [vmem:[#allocation104_spill] sm:$0xff] %v7376_v0  ;;  %v3189_v22 = vmul.f32 %v2935_v20, %v9047_v49  ;;  %v3225_v13 = vmul.f32 %v3079_v29, %v5213_v2  ;;  %v7382_v16 = vadd.f32 %v6983_v25, %v7376_v0  ;;  %v9050_v29 = vld [vmem:[#allocation37_spill] sm:$0xff] }
 0x59b   :  { %v2937_v41 = vpop.f32.mrf.mxu0  ;;  %v3081_v39 = vpop.f32.mrf.mxu1 }
 0x59c   :  { %v2938_v21 = vadd.f32 %v2937_v41, %v6809_v15  ;;  %v3082_v7 = vadd.f32 %v3081_v39, %v7038_v19  ;;  %3465 = vmax.xlane.f32.xlu0 %v7382_v16  ;;  %v7388_v30 = vadd.f32 %v6975_v55, %v3225_v13  ;;  %v7391_v11 = vadd.f32 %v6975_v55, %v3189_v22 }
 0x59d   :  { %v2939_v20 = vpop.f32.mrf.mxu0  ;;  %v3083_v2 = vpop.f32.mrf.mxu1 }
 0x59e   :  { %9048 = vst [vmem:[#allocation119_spill] sm:$0xff] %v7388_v30  ;;  %9049 = vst [vmem:[#allocation106_spill] sm:$0xff] %v7391_v11  ;;  %v3190_v36 = vmul.f32 %v2938_v21, %v9050_v29  ;;  %v3226_v26 = vmul.f32 %v3082_v7, %v5211_v1  ;;  %v7397_v6 = vadd.f32 %v6983_v25, %v7388_v30  ;;  %v9053_v7 = vld [vmem:[#allocation33_spill] sm:$0xff] }
 0x59f   :  { %v7401_v15 = vadd.f32 %v6983_v25, %v7391_v11  ;;  %v2942_v19 = vpop.f32.mrf.mxu0  ;;  %v3086_v39 = vpop.f32.mrf.mxu1 }
 0x5a0   :  { %v7404_v41 = vadd.f32 %v6975_v55, %v3190_v36  ;;  %v7407_v49 = vadd.f32 %v6975_v55, %v3226_v26  ;;  %v2943_v22 = vadd.f32 %v2942_v19, %v6811_v5  ;;  %v3087_v1 = vadd.f32 %v3086_v39, %v7050_v38  ;;  %3467 = vmax.xlane.f32.xlu1 %v7397_v6 }
 0x5a1   :  { %3395 = vmax.xlane.f32.xlu0 %v7401_v15  ;;  %v2944_v13 = vpop.f32.mrf.mxu0  ;;  %v3088_v21 = vpop.f32.mrf.mxu1 }
 0x5a2   :  { %9051 = vst [vmem:[#allocation121_spill] sm:$0xff] %v7404_v41  ;;  %9052 = vst [vmem:[#allocation108_spill] sm:$0xff] %v7407_v49  ;;  %v3191_v20 = vmul.f32 %v2943_v22, %v9053_v7  ;;  %v3227_v2 = vmul.f32 %v3087_v1, %v5205_v61  ;;  %v7417_v29 = vadd.f32 %v6983_v25, %v7404_v41  ;;  %v9056_v13 = vld [vmem:[#allocation32_spill] sm:$0xff] }
 0x5a3   :  { %v7421_v36 = vadd.f32 %v6983_v25, %v7407_v49  ;;  %v2945_v5 = vpop.f32.mrf.mxu0  ;;  %v3089_v38 = vpop.f32.mrf.mxu1 }
 0x5a4   :  { %v7424_v26 = vadd.f32 %v6975_v55, %v3191_v20  ;;  %v7427_v19 = vadd.f32 %v6975_v55, %v3227_v2  ;;  %v2946_v39 = vadd.f32 %v2945_v5, %v6821_v63  ;;  %v3090_v61 = vadd.f32 %v3089_v38, %v7066_v53  ;;  %3397 = vmax.xlane.f32.xlu1 %v7417_v29 }
 0x5a5   :  { %3469 = vmax.xlane.f32.xlu0 %v7421_v36  ;;  %v3091_v22 = vpop.f32.mrf.mxu1  ;;  %v2947_v1 = vpop.f32.mrf.mxu0 }
 0x5a6   :  { %9054 = vst [vmem:[#allocation123_spill] sm:$0xff] %v7424_v26  ;;  %9055 = vst [vmem:[#allocation110_spill] sm:$0xff] %v7427_v19  ;;  %v3192_v21 = vmul.f32 %v2946_v39, %v9056_v13  ;;  %v7436_v7 = vadd.f32 %v6983_v25, %v7427_v19  ;;  %v7440_v20 = vadd.f32 %v6983_v25, %v7424_v26  ;;  %v9058_v22 = vld [vmem:[#allocation27_spill] sm:$0xff] }
 0x5a7   :  { %v3228_v63 = vmul.f32 %v3090_v61, %v5203_v60  ;;  %v3094_v2 = vpop.f32.mrf.mxu1 }
 0x5a8   :  { %v7444_v53 = vadd.f32 %v6975_v55, %v3192_v21  ;;  %v3095_v5 = vadd.f32 %v3094_v2, %v7078_v62  ;;  %3471 = vmax.xlane.f32.xlu1 %v7436_v7 }
 0x5a9   :  { %3399 = vmax.xlane.f32.xlu0 %v7440_v20  ;;  %v3096_v38 = vpop.f32.mrf.mxu1  ;;  %v7449_v39 = vpop.xlane.xlu1 %3403  ;;  %v7459_v61 = vadd.f32 %v6975_v55, %v3228_v63 }
 0x5aa   :  { %9057 = vst [vmem:[#allocation125_spill] sm:$0xff] %v7444_v53  ;;  %v3229_v1 = vmul.f32 %v3095_v5, %v9058_v22  ;;  %v3527_v13 = vsub.f32 %v6992_v48, %v7449_v39  ;;  %v7456_v60 = vadd.f32 %v6983_v25, %v7444_v53  ;;  %v9061_v48 = vld [vmem:[#allocation26_spill] sm:$0xff] }
 0x5ab   :  { %9059 = vst [vmem:[#allocation112_spill] sm:$0xff] %v7459_v61  ;;  %v3097_v62 = vpop.f32.mrf.mxu1 }
 0x5ac   :  { %v7462_v21 = vadd.f32 %v6975_v55, %v3229_v1  ;;  %v3595_v2 = vmul.f32 1.442695, %v3527_v13  ;;  %v3098_v38 = vadd.f32 %v3097_v62, %v7094_v54  ;;  %v7477_v1 = vadd.f32 %v6983_v25, %v7459_v61 }
 0x5ad   :  { %3401 = vmax.xlane.f32.xlu0 %v7456_v60  ;;  %v3099_v5 = vpop.f32.mrf.mxu1  ;;  %v7466_v22 = vpop.xlane.xlu0 %3405 }
 0x5ae   :  { %9060 = vst [vmem:[#allocation127_spill] sm:$0xff] %v7462_v21  ;;  %4563 = vpow2.f32 %v3595_v2  ;;  %v3230_v19 = vmul.f32 %v3098_v38, %v9061_v48  ;;  %v3528_v53 = vsub.f32 %v7008_v37, %v7466_v22  ;;  %v7473_v26 = vadd.f32 %v6983_v25, %v7462_v21  ;;  %v9063_v38 = vld [vmem:[#allocation23_spill] sm:$0xff] }
 0x5af   :  { %v3102_v63 = vpop.f32.mrf.mxu1 }
 0x5b0   :  { %v7480_v54 = vadd.f32 %v6975_v55, %v3230_v19  ;;  %v3597_v13 = vmul.f32 1.442695, %v3528_v53  ;;  %v3103_v62 = vadd.f32 %v3102_v63, %v7106_v59  ;;  %3475 = vmax.xlane.f32.xlu1 %v7473_v26 }
 0x5b1   :  { %3473 = vmax.xlane.f32.xlu0 %v7477_v1  ;;  %v3104_v37 = vpop.f32.mrf.mxu1  ;;  %v7485_v2 = vpop.xlane.xlu1 %3407 }
 0x5b2   :  { %9062 = vst [vmem:[#allocation114_spill] sm:$0xff] %v7480_v54  ;;  %4565 = vpow2.f32 %v3597_v13  ;;  %v3231_v5 = vmul.f32 %v3103_v62, %v9063_v38  ;;  %v3529_v48 = vsub.f32 %v7020_v57, %v7485_v2  ;;  %v7492_v19 = vadd.f32 %v6983_v25, %v7480_v54  ;;  %v9065_v62 = vld [vmem:[#allocation22_spill] sm:$0xff]  ;;  %v9066_v57 = vld [vmem:[#allocation29_spill] sm:$0xff] }
 0x5b3   :  { %v3105_v61 = vpop.f32.mrf.mxu1 }
 0x5b4   :  { %v7495_v59 = vadd.f32 %v6975_v55, %v3231_v5  ;;  %v3599_v53 = vmul.f32 1.442695, %v3529_v48  ;;  %v3106_v63 = vadd.f32 %v3105_v61, %v7120_v31 }
 0x5b5   :  { %3477 = vmax.xlane.f32.xlu0 %v7492_v19  ;;  %v3107_v37 = vpop.f32.mrf.mxu1  ;;  %v7499_v13 = vpop.xlane.xlu0 %3409 }
 0x5b6   :  { %9064 = vst [vmem:[#allocation51_spill] sm:$0xff] %v7495_v59  ;;  %4567 = vpow2.f32 %v3599_v53  ;;  %v3232_v38 = vmul.f32 %v3106_v63, %v9065_v62  ;;  %v3530_v21 = vsub.f32 %v9066_v57, %v7499_v13  ;;  %v7506_v54 = vadd.f32 %v6983_v25, %v7495_v59  ;;  %v9068_v63 = vld [vmem:[#allocation19_spill] sm:$0xff] }
 0x5b7   :  { %v3110_v49 = vpop.f32.mrf.mxu1  ;;  %v9069_v62 = vld [vmem:[#allocation31_spill] sm:$0xff] }
 0x5b8   :  { %v7509_v5 = vadd.f32 %v6975_v55, %v3232_v38  ;;  %v3601_v31 = vmul.f32 1.442695, %v3530_v21  ;;  %v3111_v61 = vadd.f32 %v3110_v49, %v7132_v52  ;;  %3479 = vmax.xlane.f32.xlu1 %v7506_v54 }
 0x5b9   :  { %v3112_v48 = vpop.f32.mrf.mxu1  ;;  %v7513_v53 = vpop.xlane.xlu1 %3411 }
 0x5ba   :  { %9067 = vst [vmem:[#allocation116_spill] sm:$0xff] %v7509_v5  ;;  %4569 = vpow2.f32 %v3601_v31  ;;  %v3233_v37 = vmul.f32 %v3111_v61, %v9068_v63  ;;  %v3531_v57 = vsub.f32 %v9069_v62, %v7513_v53  ;;  %v7520_v38 = vadd.f32 %v6983_v25, %v7509_v5  ;;  %v9071_v48 = vld [vmem:[#allocation18_spill] sm:$0xff] }
 0x5bb   :  { %v4564_v30 = vpop.eup %4563  ;;  %v3113_v59 = vpop.f32.mrf.mxu1  ;;  %v9072_v62 = vld [vmem:[#allocation70_spill] sm:$0xff] }
 0x5bc   :  { %v7523_v21 = vadd.f32 %v6975_v55, %v3233_v37  ;;  %v3603_v52 = vmul.f32 1.442695, %v3531_v57  ;;  %v3114_v49 = vadd.f32 %v3113_v59, %v7144_v18  ;;  %3723 = vadd.xlane.f32.xlu1 %v4564_v30  ;;  %3481 = vmax.xlane.f32.xlu0 %v7520_v38 }
 0x5bd   :  { %v3115_v31 = vpop.f32.mrf.mxu1  ;;  %v7527_v61 = vpop.xlane.xlu0 %3413 }
 0x5be   :  { %9070 = vst [vmem:[#allocation82_spill] sm:$0xff] %v7523_v21  ;;  %4571 = vpow2.f32 %v3603_v52  ;;  %v3234_v63 = vmul.f32 %v3114_v49, %v9071_v48  ;;  %v3532_v41 = vsub.f32 %v9072_v62, %v7527_v61  ;;  %v7534_v37 = vadd.f32 %v6983_v25, %v7523_v21  ;;  %v9074_v49 = vld [vmem:[#allocation12_spill] sm:$0xff] }
 0x5bf   :  { %v4566_v5 = vpop.eup %4565  ;;  %v3118_v11 = vpop.f32.mrf.mxu1 }
 0x5c0   :  { %v7537_v18 = vadd.f32 %v6975_v55, %v3234_v63  ;;  %v3605_v30 = vmul.f32 1.442695, %v3532_v41  ;;  %v3119_v59 = vadd.f32 %v3118_v11, %v7156_v23  ;;  %3483 = vmax.xlane.f32.xlu1 %v7534_v37  ;;  %3725 = vadd.xlane.f32.xlu0 %v4566_v5 }
 0x5c1   :  { %v3120_v57 = vpop.f32.mrf.mxu1  ;;  %v7541_v52 = vpop.xlane.xlu1 %3415 }
 0x5c2   :  { %9073 = vst [vmem:[#allocation118_spill] sm:$0xff] %v7537_v18  ;;  %4573 = vpow2.f32 %v3605_v30  ;;  %v3235_v31 = vmul.f32 %v3119_v59, %v9074_v49  ;;  %v3533_v48 = vsub.f32 %v7076_v17, %v7541_v52  ;;  %v7548_v63 = vadd.f32 %v6983_v25, %v7537_v18  ;;  %v9076_v17 = vld [vmem:[#allocation14_spill] sm:$0xff]  ;;  %v9077_v57 = vld [vmem:[#allocation36_spill] sm:$0xff] }
 0x5c3   :  { %v4568_v62 = vpop.eup %4567  ;;  %v3121_v21 = vpop.f32.mrf.mxu1 }
 0x5c4   :  { %v7551_v23 = vadd.f32 %v6975_v55, %v3235_v31  ;;  %v3607_v11 = vmul.f32 1.442695, %v3533_v48  ;;  %v3122_v41 = vadd.f32 %v3121_v21, %v7168_v27  ;;  %3727 = vadd.xlane.f32.xlu1 %v4568_v62  ;;  %3485 = vmax.xlane.f32.xlu0 %v7548_v63 }
 0x5c5   :  { %v3123_v5 = vpop.f32.mrf.mxu1  ;;  %v7555_v30 = vpop.xlane.xlu0 %3417 }
 0x5c6   :  { %9075 = vst [vmem:[#allocation120_spill] sm:$0xff] %v7551_v23  ;;  %4575 = vpow2.f32 %v3607_v11  ;;  %v3236_v59 = vmul.f32 %v3122_v41, %v9076_v17  ;;  %v3534_v49 = vsub.f32 %v9077_v57, %v7555_v30  ;;  %v7562_v31 = vadd.f32 %v6983_v25, %v7551_v23  ;;  %v9079_v41 = vld [vmem:[#allocation81_spill] sm:$0xff] }
 0x5c7   :  { %v4570_v18 = vpop.eup %4569  ;;  %v3126_v0 = vpop.f32.mrf.mxu1 }
 0x5c8   :  { %v7565_v27 = vadd.f32 %v6975_v55, %v3236_v59  ;;  %v3609_v21 = vmul.f32 1.442695, %v3534_v49  ;;  %v3127_v48 = vadd.f32 %v3126_v0, %v7180_v4  ;;  %3487 = vmax.xlane.f32.xlu1 %v7562_v31  ;;  %3729 = vadd.xlane.f32.xlu0 %v4570_v18 }
 0x5c9   :  { %v3128_v62 = vpop.f32.mrf.mxu1  ;;  %v7569_v11 = vpop.xlane.xlu1 %3419 }
 0x5ca   :  { %9078 = vst [vmem:[#allocation122_spill] sm:$0xff] %v7565_v27  ;;  %4577 = vpow2.f32 %v3609_v21  ;;  %v3237_v5 = vmul.f32 %v3127_v48, %v9079_v41  ;;  %v3535_v17 = vsub.f32 %v7104_v43, %v7569_v11  ;;  %v7576_v59 = vadd.f32 %v6983_v25, %v7565_v27  ;;  %v9081_v43 = vld [vmem:[#allocation80_spill] sm:$0xff] }
 0x5cb   :  { %v4572_v57 = vpop.eup %4571  ;;  %v3129_v23 = vpop.f32.mrf.mxu1 }
 0x5cc   :  { %v7579_v4 = vadd.f32 %v6975_v55, %v3237_v5  ;;  %v3611_v0 = vmul.f32 1.442695, %v3535_v17  ;;  %v3130_v18 = vadd.f32 %v3129_v23, %v7192_v58  ;;  %3731 = vadd.xlane.f32.xlu1 %v4572_v57  ;;  %3489 = vmax.xlane.f32.xlu0 %v7576_v59 }
 0x5cd   :  { %v3131_v49 = vpop.f32.mrf.mxu1  ;;  %v7583_v21 = vpop.xlane.xlu0 %3421 }
 0x5ce   :  { %9080 = vst [vmem:[#allocation124_spill] sm:$0xff] %v7579_v4  ;;  %4579 = vpow2.f32 %v3611_v0  ;;  %v3238_v48 = vmul.f32 %v3130_v18, %v9081_v43  ;;  %v3536_v62 = vsub.f32 %v7118_v14, %v7583_v21  ;;  %v7590_v5 = vadd.f32 %v6983_v25, %v7579_v4  ;;  %v9083_v14 = vld [vmem:[#allocation69_spill] sm:$0xff] }
 0x5cf   :  { %v4574_v41 = vpop.eup %4573  ;;  %v3134_v27 = vpop.f32.mrf.mxu1 }
 0x5d0   :  { %v7593_v58 = vadd.f32 %v6975_v55, %v3238_v48  ;;  %v3613_v23 = vmul.f32 1.442695, %v3536_v62  ;;  %v3135_v17 = vadd.f32 %v3134_v27, %v7204_v56  ;;  %3491 = vmax.xlane.f32.xlu1 %v7590_v5  ;;  %3733 = vadd.xlane.f32.xlu0 %v4574_v41 }
 0x5d1   :  { %v3136_v57 = vpop.f32.mrf.mxu1  ;;  %v7597_v0 = vpop.xlane.xlu1 %3423 }
 0x5d2   :  { %9082 = vst [vmem:[#allocation126_spill] sm:$0xff] %v7593_v58  ;;  %4581 = vpow2.f32 %v3613_v23  ;;  %v3239_v18 = vmul.f32 %v3135_v17, %v9083_v14  ;;  %v3537_v49 = vsub.f32 %v7130_v45, %v7597_v0  ;;  %v7604_v48 = vadd.f32 %v6983_v25, %v7593_v58  ;;  %v9086_v45 = vld [vmem:[#allocation68_spill] sm:$0xff] }
 0x5d3   :  { %v4576_v43 = vpop.eup %4575  ;;  %v3137_v4 = vpop.f32.mrf.mxu1 }
 0x5d4   :  { %v7607_v56 = vadd.f32 %v6975_v55, %v3239_v18  ;;  %v3615_v27 = vmul.f32 1.442695, %v3537_v49  ;;  %v3138_v62 = vadd.f32 %v3137_v4, %v7216_v24  ;;  %3735 = vadd.xlane.f32.xlu1 %v4576_v43  ;;  %3493 = vmax.xlane.f32.xlu0 %v7604_v48 }
 0x5d5   :  { %v3139_v41 = vpop.f32.mrf.mxu1  ;;  %v7611_v23 = vpop.xlane.xlu0 %3425 }
 0x5d6   :  { %9084 = vst [vmem:[#allocation128_spill] sm:$0xff] %v7607_v56  ;;  %9085 = vst [vmem:[#allocation129_spill] sm:$0xff] %v7611_v23  ;;  %4583 = vpow2.f32 %v3615_v27  ;;  %v3240_v17 = vmul.f32 %v3138_v62, %v9086_v45  ;;  %v3538_v57 = vsub.f32 %v7142_v40, %v7611_v23  ;;  %v7618_v18 = vadd.f32 %v6983_v25, %v7607_v56  ;;  %v9089_v40 = vld [vmem:[#allocation65_spill] sm:$0xff]  ;;  %v9090_v41 = vld [vmem:[#allocation78_spill] sm:$0xff] }
 0x5d7   :  { %v4578_v14 = vpop.eup %4577  ;;  %v3142_v58 = vpop.f32.mrf.mxu1 }
 0x5d8   :  { %v7621_v24 = vadd.f32 %v6975_v55, %v3240_v17  ;;  %v3617_v4 = vmul.f32 1.442695, %v3538_v57  ;;  %v3143_v49 = vadd.f32 %v3142_v58, %v7228_v50  ;;  %3495 = vmax.xlane.f32.xlu1 %v7618_v18  ;;  %3737 = vadd.xlane.f32.xlu0 %v4578_v14 }
 0x5d9   :  { %v3144_v43 = vpop.f32.mrf.mxu1  ;;  %v7625_v27 = vpop.xlane.xlu1 %3427 }
 0x5da   :  { %9087 = vst [vmem:[#allocation130_spill] sm:$0xff] %v7621_v24  ;;  %9088 = vst [vmem:[#allocation131_spill] sm:$0xff] %v7625_v27  ;;  %4585 = vpow2.f32 %v3617_v4  ;;  %v3241_v62 = vmul.f32 %v3143_v49, %v9089_v40  ;;  %v3539_v45 = vsub.f32 %v9090_v41, %v7625_v27  ;;  %v7632_v17 = vadd.f32 %v6983_v25, %v7621_v24  ;;  %v9093_v49 = vld [vmem:[#allocation64_spill] sm:$0xff]  ;;  %v9094_v40 = vld [vmem:[#allocation35_spill] sm:$0xff] }
 0x5db   :  { %v4580_v56 = vpop.eup %4579  ;;  %v3145_v23 = vpop.f32.mrf.mxu1 }
 0x5dc   :  { %v7635_v50 = vadd.f32 %v6975_v55, %v3241_v62  ;;  %v3619_v58 = vmul.f32 1.442695, %v3539_v45  ;;  %v3146_v57 = vadd.f32 %v3145_v23, %v7240_v12  ;;  %3739 = vadd.xlane.f32.xlu1 %v4580_v56  ;;  %3497 = vmax.xlane.f32.xlu0 %v7632_v17  ;;  %v7647_v55 = vld [vmem:[%s8105_s7] ss:$0 sm:$0xff] }
 0x5dd   :  { %v3147_v14 = vpop.f32.mrf.mxu1  ;;  %v7639_v4 = vpop.xlane.xlu0 %3429  ;;  %v7656_v56 = vld [vmem:[%s8104_s6] ss:$0 sm:$0xff]  ;;  %s4914_s6 = smov [#allocation8]  }
 0x5de   :  { %9091 = vst [vmem:[#allocation132_spill] sm:$0xff] %v7635_v50  ;;  %9092 = vst [vmem:[#allocation133_spill] sm:$0xff] %v7639_v4  ;;  %4587 = vpow2.f32 %v3619_v58  ;;  %v3242_v43 = vmul.f32 %v3146_v57, %v9093_v49  ;;  %v3540_v41 = vsub.f32 %v9094_v40, %v7639_v4  ;;  %v7651_v12 = vadd.f32 %v7647_v55, %v7635_v50  ;;  %v9097_v14 = vld [vmem:[#allocation61_spill] sm:$0xff]  ;;  %v9098_v40 = vld [vmem:[#allocation40_spill] sm:$0xff]  ;;  %s4168_s7 = sshll.u32 %s4914_s6, 4  ;;  %s4169_s7 = int_to_ptr.vmem [resolvable:$true] %s4168_s7 }
 0x5df   :  { %v4582_v25 = vpop.eup %4581  ;;  %v3150_v24 = vpop.f32.mrf.mxu1  ;;  %s4882_s29 = scalar_lea.vmem %s4169_s7, 8192  ;;  %p4887_p2 = scmp.lt.s32.totalorder %s4169_s7, %s4169_s7 }
 0x5e0   :  { %v7659_v23 = vadd.f32 %v7656_v56, %v3242_v43  ;;  %v3621_v62 = vmul.f32 1.442695, %v3540_v41  ;;  %v3151_v45 = vadd.f32 %v3150_v24, %v7252_v32  ;;  %3499 = vmax.xlane.f32.xlu1 %v7651_v12  ;;  %3741 = vadd.xlane.f32.xlu0 %v4582_v25  ;;  %p4883_p1 = scmp.ne.s32.totalorder %s4169_s7, %s4882_s29  ;;  %p4888_p3 = scmp.lt.s32.totalorder %s4882_s29, %s4882_s29 }
 0x5e1   :  { %v3152_v58 = vpop.f32.mrf.mxu1  ;;  %v7663_v57 = vpop.xlane.xlu1 %3431 }
 0x5e2   :  { %9095 = vst [vmem:[#allocation134_spill] sm:$0xff] %v7659_v23  ;;  %9096 = vst [vmem:[#allocation21_spill] sm:$0xff] %v7663_v57  ;;  %4589 = vpow2.f32 %v3621_v62  ;;  %v3243_v49 = vmul.f32 %v3151_v45, %v9097_v14  ;;  %v3541_v50 = vsub.f32 %v9098_v40, %v7663_v57  ;;  %v7670_v43 = vadd.f32 %v7647_v55, %v7659_v23  ;;  %v9101_v45 = vld [vmem:[#allocation60_spill] sm:$0xff]  ;;  %v9102_v14 = vld [vmem:[#allocation83_spill] sm:$0xff]  ;;  %p4889_p4 = por %p4888_p3, %p4887_p2 }
 0x5e3   :  { %v4584_v4 = vpop.eup %4583  ;;  %v3153_v27 = vpop.f32.mrf.mxu1 }
 0x5e4   :  { %v7673_v32 = vadd.f32 %v7656_v56, %v3243_v49  ;;  %v3623_v24 = vmul.f32 1.442695, %v3541_v50  ;;  %v3154_v41 = vadd.f32 %v3153_v27, %v7264_v35  ;;  %3743 = vadd.xlane.f32.xlu1 %v4584_v4  ;;  %3501 = vmax.xlane.f32.xlu0 %v7670_v43  ;;  %p4890_p5 = pnand %p4889_p4, %p4883_p1 }
 0x5e5   :  { %v3155_v25 = vpop.f32.mrf.mxu1  ;;  %v7677_v62 = vpop.xlane.xlu0 %3433 }
 0x5e6   :  { %9099 = vst [vmem:[#allocation20_spill] sm:$0xff] %v7673_v32  ;;  %9100 = vst [vmem:[#allocation135_spill] sm:$0xff] %v7677_v62  ;;  %4591 = vpow2.f32 %v3623_v24  ;;  %v3244_v58 = vmul.f32 %v3154_v41, %v9101_v45  ;;  %v3542_v40 = vsub.f32 %v9102_v14, %v7677_v62  ;;  %v7684_v49 = vadd.f32 %v7647_v55, %v7673_v32  ;;  %v9105_v41 = vld [vmem:[#allocation57_spill] sm:$0xff]  ;;  %v9106_v45 = vld [vmem:[#allocation87_spill] sm:$0xff] }
 0x5e7   :  { %v4586_v23 = vpop.eup %4585  ;;  %v3158_v57 = vpop.f32.mrf.mxu1 }
 0x5e8   :  { %v7687_v35 = vadd.f32 %v7656_v56, %v3244_v58  ;;  %v3625_v27 = vmul.f32 1.442695, %v3542_v40  ;;  %v3159_v50 = vadd.f32 %v3158_v57, %v7276_v9  ;;  %3503 = vmax.xlane.f32.xlu1 %v7684_v49  ;;  %3745 = vadd.xlane.f32.xlu0 %v4586_v23 }
 0x5e9   :  { %v3160_v4 = vpop.f32.mrf.mxu1  ;;  %v7691_v24 = vpop.xlane.xlu1 %3435 }
 0x5ea   :  { %9103 = vst [vmem:[#allocation17_spill] sm:$0xff] %v7687_v35  ;;  %9104 = vst [vmem:[#allocation16_spill] sm:$0xff] %v7691_v24  ;;  %4593 = vpow2.f32 %v3625_v27  ;;  %v3245_v25 = vmul.f32 %v3159_v50, %v9105_v41  ;;  %v3543_v14 = vsub.f32 %v9106_v45, %v7691_v24  ;;  %v7698_v58 = vadd.f32 %v7647_v55, %v7687_v35  ;;  %v9109_v50 = vld [vmem:[#allocation56_spill] sm:$0xff]  ;;  %v9110_v41 = vld [vmem:[#allocation91_spill] sm:$0xff] }
 0x5eb   :  { %v4588_v32 = vpop.eup %4587  ;;  %v3161_v62 = vpop.f32.mrf.mxu1 }
 0x5ec   :  { %v7701_v9 = vadd.f32 %v7656_v56, %v3245_v25  ;;  %v3627_v57 = vmul.f32 1.442695, %v3543_v14  ;;  %v3162_v23 = vadd.f32 %v3161_v62, %v7288_v34  ;;  %3747 = vadd.xlane.f32.xlu1 %v4588_v32  ;;  %3505 = vmax.xlane.f32.xlu0 %v7698_v58 }
 0x5ed   :  { %v3163_v40 = vpop.f32.mrf.mxu1  ;;  %v7705_v27 = vpop.xlane.xlu0 %3437 }
 0x5ee   :  { %9107 = vst [vmem:[#allocation13_spill] sm:$0xff] %v7701_v9  ;;  %9108 = vst [vmem:[#allocation15_spill] sm:$0xff] %v7705_v27  ;;  %4595 = vpow2.f32 %v3627_v57  ;;  %v3246_v4 = vmul.f32 %v3162_v23, %v9109_v50  ;;  %v3544_v45 = vsub.f32 %v9110_v41, %v7705_v27  ;;  %v7712_v25 = vadd.f32 %v7647_v55, %v7701_v9  ;;  %v9113_v23 = vld [vmem:[#allocation53_spill] sm:$0xff]  ;;  %v9114_v50 = vld [vmem:[#allocation95_spill] sm:$0xff] }
 0x5ef   :  { %v4590_v35 = vpop.eup %4589  ;;  %v3166_v24 = vpop.f32.mrf.mxu1 }
 0x5f0   :  { %v7715_v34 = vadd.f32 %v7656_v56, %v3246_v4  ;;  %v3629_v32 = vmul.f32 1.442695, %v3544_v45  ;;  %v3167_v62 = vadd.f32 %v3166_v24, %v7300_v42  ;;  %3507 = vmax.xlane.f32.xlu1 %v7712_v25  ;;  %3749 = vadd.xlane.f32.xlu0 %v4590_v35 }
 0x5f1   :  { %v3168_v14 = vpop.f32.mrf.mxu1  ;;  %v7719_v57 = vpop.xlane.xlu1 %3439 }
 0x5f2   :  { %9111 = vst [vmem:[#allocation66_spill] sm:$0xff] %v7715_v34  ;;  %9112 = vst [vmem:[#allocation63_spill] sm:$0xff] %v7719_v57  ;;  %4597 = vpow2.f32 %v3629_v32  ;;  %v3247_v40 = vmul.f32 %v3167_v62, %v9113_v23  ;;  %v3545_v41 = vsub.f32 %v9114_v50, %v7719_v57  ;;  %v7726_v4 = vadd.f32 %v7647_v55, %v7715_v34  ;;  %v9117_v62 = vld [vmem:[#allocation52_spill] sm:$0xff]  ;;  %v9118_v23 = vld [vmem:[#allocation99_spill] sm:$0xff] }
 0x5f3   :  { %v4592_v9 = vpop.eup %4591  ;;  %v3169_v27 = vpop.f32.mrf.mxu1 }
 0x5f4   :  { %v7729_v42 = vadd.f32 %v7656_v56, %v3247_v40  ;;  %v3631_v24 = vmul.f32 1.442695, %v3545_v41  ;;  %v3170_v35 = vadd.f32 %v3169_v27, %v7312_v51  ;;  %3751 = vadd.xlane.f32.xlu1 %v4592_v9  ;;  %3509 = vmax.xlane.f32.xlu0 %v7726_v4 }
 0x5f5   :  { %v3171_v45 = vpop.f32.mrf.mxu1  ;;  %v7733_v32 = vpop.xlane.xlu0 %3441 }
 0x5f6   :  { %9115 = vst [vmem:[#allocation62_spill] sm:$0xff] %v7729_v42  ;;  %9116 = vst [vmem:[#allocation59_spill] sm:$0xff] %v7733_v32  ;;  %4599 = vpow2.f32 %v3631_v24  ;;  %v3248_v14 = vmul.f32 %v3170_v35, %v9117_v62  ;;  %v3546_v50 = vsub.f32 %v9118_v23, %v7733_v32  ;;  %v7740_v40 = vadd.f32 %v7647_v55, %v7729_v42  ;;  %v9121_v35 = vld [vmem:[#allocation48_spill] sm:$0xff]  ;;  %v9122_v62 = vld [vmem:[#allocation101_spill] sm:$0xff] }
 0x5f7   :  { %v4594_v34 = vpop.eup %4593  ;;  %v3174_v57 = vpop.f32.mrf.mxu1 }
 0x5f8   :  { %v7743_v51 = vadd.f32 %v7656_v56, %v3248_v14  ;;  %v3633_v9 = vmul.f32 1.442695, %v3546_v50  ;;  %v3175_v27 = vadd.f32 %v3174_v57, %v7324_v28  ;;  %3511 = vmax.xlane.f32.xlu1 %v7740_v40  ;;  %3753 = vadd.xlane.f32.xlu0 %v4594_v34 }
 0x5f9   :  { %v3176_v41 = vpop.f32.mrf.mxu1  ;;  %v7747_v24 = vpop.xlane.xlu1 %3443 }
 0x5fa   :  { %9119 = vst [vmem:[#allocation58_spill] sm:$0xff] %v7743_v51  ;;  %9120 = vst [vmem:[#allocation55_spill] sm:$0xff] %v7747_v24  ;;  %4601 = vpow2.f32 %v3633_v9  ;;  %v3249_v45 = vmul.f32 %v3175_v27, %v9121_v35  ;;  %v3547_v23 = vsub.f32 %v9122_v62, %v7747_v24  ;;  %v7754_v14 = vadd.f32 %v7647_v55, %v7743_v51  ;;  %v9125_v27 = vld [vmem:[#allocation47_spill] sm:$0xff] }
 0x5fb   :  { %v4596_v42 = vpop.eup %4595  ;;  %v3177_v32 = vpop.f32.mrf.mxu1  ;;  %v9126_v35 = vld [vmem:[#allocation103_spill] sm:$0xff] }
 0x5fc   :  { %v7757_v28 = vadd.f32 %v7656_v56, %v3249_v45  ;;  %v3635_v57 = vmul.f32 1.442695, %v3547_v23  ;;  %v3178_v34 = vadd.f32 %v3177_v32, %v7336_v10  ;;  %3755 = vadd.xlane.f32.xlu1 %v4596_v42  ;;  %3513 = vmax.xlane.f32.xlu0 %v7754_v14 }
 0x5fd   :  { %v3179_v50 = vpop.f32.mrf.mxu1  ;;  %v7761_v9 = vpop.xlane.xlu0 %3445 }
 0x5fe   :  { %9123 = vst [vmem:[#allocation54_spill] sm:$0xff] %v7757_v28  ;;  %9124 = vst [vmem:[#allocation50_spill] sm:$0xff] %v7761_v9  ;;  %4603 = vpow2.f32 %v3635_v57  ;;  %v3250_v41 = vmul.f32 %v3178_v34, %v9125_v27  ;;  %v3548_v62 = vsub.f32 %v9126_v35, %v7761_v9  ;;  %v7768_v45 = vadd.f32 %v7647_v55, %v7757_v28  ;;  %v9128_v34 = vld [vmem:[#allocation44_spill] sm:$0xff]  ;;  %v9129_v27 = vld [vmem:[#allocation105_spill] sm:$0xff] }
 0x5ff   :  { %v4598_v51 = vpop.eup %4597  ;;  %v3182_v24 = vpop.f32.mrf.mxu1 }
 0x600   :  { %v7771_v10 = vadd.f32 %v7656_v56, %v3250_v41  ;;  %v3637_v42 = vmul.f32 1.442695, %v3548_v62  ;;  %v3183_v32 = vadd.f32 %v3182_v24, %v7348_v44  ;;  %3515 = vmax.xlane.f32.xlu1 %v7768_v45  ;;  %3757 = vadd.xlane.f32.xlu0 %v4598_v51 }
 0x601   :  { %v3184_v23 = vpop.f32.mrf.mxu1  ;;  %v7775_v57 = vpop.xlane.xlu1 %3447 }
 0x602   :  { %9127 = vst [vmem:[#allocation49_spill] sm:$0xff] %v7771_v10  ;;  %4605 = vpow2.f32 %v3637_v42  ;;  %v3251_v50 = vmul.f32 %v3183_v32, %v9128_v34  ;;  %v3549_v35 = vsub.f32 %v9129_v27, %v7775_v57  ;;  %v7782_v41 = vadd.f32 %v7647_v55, %v7771_v10  ;;  %v9131_v32 = vld [vmem:[#allocation43_spill] sm:$0xff] }
 0x603   :  { %v4600_v28 = vpop.eup %4599  ;;  %v3185_v9 = vpop.f32.mrf.mxu1  ;;  %v9132_v34 = vld [vmem:[#allocation107_spill] sm:$0xff] }
 0x604   :  { %v7785_v44 = vadd.f32 %v7656_v56, %v3251_v50  ;;  %v3639_v24 = vmul.f32 1.442695, %v3549_v35  ;;  %v3186_v51 = vadd.f32 %v3185_v9, %v7360_v3  ;;  %3759 = vadd.xlane.f32.xlu1 %v4600_v28  ;;  %3517 = vmax.xlane.f32.xlu0 %v7782_v41  ;;  %v9134_v9 = vld [vmem:[#allocation109_spill] sm:$0xff] }
 0x605   :  { %v7789_v62 = vpop.xlane.xlu0 %3449  ;;  %v3187_v42 = vpop.f32.mrf.mxu1 }
 0x606   :  { %9130 = vst [vmem:[#allocation46_spill] sm:$0xff] %v7785_v44  ;;  %4607 = vpow2.f32 %v3639_v24  ;;  %v3252_v23 = vmul.f32 %v3186_v51, %v9131_v32  ;;  %v3550_v27 = vsub.f32 %v9132_v34, %v7789_v62  ;;  %v7796_v50 = vadd.f32 %v7647_v55, %v7785_v44 }
 0x607   :  { %v4602_v10 = vpop.eup %4601 }
 0x608   :  { %v7799_v35 = vadd.f32 %v7656_v56, %v3252_v23  ;;  %v3641_v3 = vmul.f32 1.442695, %v3550_v27  ;;  %3519 = vmax.xlane.f32.xlu1 %v7796_v50  ;;  %3761 = vadd.xlane.f32.xlu0 %v4602_v10 }
 0x609   :  { %v7802_v28 = vpop.xlane.xlu1 %3451 }
 0x60a   :  { %9133 = vst [vmem:[#allocation45_spill] sm:$0xff] %v7799_v35  ;;  %4609 = vpow2.f32 %v3641_v3  ;;  %v3551_v24 = vsub.f32 %v9134_v9, %v7802_v28  ;;  %v7808_v51 = vadd.f32 %v7647_v55, %v7799_v35 }
 0x60b   :  { %v4604_v42 = vpop.eup %4603 }
 0x60c   :  { %v3643_v32 = vmul.f32 1.442695, %v3551_v24  ;;  %3763 = vadd.xlane.f32.xlu1 %v4604_v42  ;;  %3521 = vmax.xlane.f32.xlu0 %v7808_v51 }
 0x60d   :  { %v7811_v56 = vpop.xlane.xlu0 %3453 }
 0x60e   :  { %4611 = vpow2.f32 %v3643_v32  ;;  %v3552_v10 = vsub.f32 %v7310_v8, %v7811_v56 }
 0x60f   :  { %v4606_v23 = vpop.eup %4605 }
 0x610   :  { %v3645_v34 = vmul.f32 1.442695, %v3552_v10  ;;  %3765 = vadd.xlane.f32.xlu0 %v4606_v23  ;;  %v9135_v23 = vld [vmem:[#allocation100_spill] sm:$0xff] }
 0x611   :  { %v7815_v27 = vpop.xlane.xlu1 %3455 }
 0x612   :  { %4613 = vpow2.f32 %v3645_v34  ;;  %v3553_v55 = vsub.f32 %v7322_v46, %v7815_v27 }
 0x613   :  { %v4608_v3 = vpop.eup %4607 }
 0x614   :  { %v3647_v9 = vmul.f32 1.442695, %v3553_v55  ;;  %3767 = vadd.xlane.f32.xlu1 %v4608_v3  ;;  %v9136_v3 = vld [vmem:[#allocation102_spill] sm:$0xff] }
 0x615   :  { %v7819_v24 = vpop.xlane.xlu0 %3457 }
 0x616   :  { %4615 = vpow2.f32 %v3647_v9  ;;  %v3554_v42 = vsub.f32 %v7334_v33, %v7819_v24 }
 0x617   :  { %v4610_v32 = vpop.eup %4609 }
 0x618   :  { %v3649_v8 = vmul.f32 1.442695, %v3554_v42  ;;  %3769 = vadd.xlane.f32.xlu0 %v4610_v32 }
 0x619   :  { %v7823_v10 = vpop.xlane.xlu1 %3459 }
 0x61a   :  { %4617 = vpow2.f32 %v3649_v8  ;;  %v3555_v34 = vsub.f32 %v9135_v23, %v7823_v10 }
 0x61b   :  { %v4612_v35 = vpop.eup %4611 }
 0x61c   :  { %v3651_v46 = vmul.f32 1.442695, %v3555_v34  ;;  %3771 = vadd.xlane.f32.xlu1 %v4612_v35 }
 0x61d   :  { %v7827_v55 = vpop.xlane.xlu0 %3461 }
 0x61e   :  { %4619 = vpow2.f32 %v3651_v46  ;;  %v3556_v9 = vsub.f32 %v9136_v3, %v7827_v55 }
 0x61f   :  { %v4614_v44 = vpop.eup %4613 }
 0x620   :  { %v3653_v33 = vmul.f32 1.442695, %v3556_v9  ;;  %3773 = vadd.xlane.f32.xlu0 %v4614_v44 }
 0x621   :  { %v7831_v42 = vpop.xlane.xlu1 %3463 }
 0x622   :  { %9137 = vst [vmem:[#allocation42_spill] sm:$0xff] %v7831_v42  ;;  %4621 = vpow2.f32 %v3653_v33  ;;  %v3557_v32 = vsub.f32 %v7370_v47, %v7831_v42 }
 0x623   :  { %v4616_v8 = vpop.eup %4615 }
 0x624   :  { %v3655_v23 = vmul.f32 1.442695, %v3557_v32  ;;  %3775 = vadd.xlane.f32.xlu1 %v4616_v8 }
 0x625   :  { %v7835_v34 = vpop.xlane.xlu0 %3465 }
 0x626   :  { %9138 = vst [vmem:[#allocation41_spill] sm:$0xff] %v7835_v34  ;;  %4623 = vpow2.f32 %v3655_v23  ;;  %v3558_v35 = vsub.f32 %v7382_v16, %v7835_v34 }
 0x627   :  { %v4618_v46 = vpop.eup %4617 }
 0x628   :  { %v3657_v3 = vmul.f32 1.442695, %v3558_v35  ;;  %3777 = vadd.xlane.f32.xlu0 %v4618_v46 }
 0x629   :  { %v7839_v9 = vpop.xlane.xlu1 %3467 }
 0x62a   :  { %4625 = vpow2.f32 %v3657_v3  ;;  %v7841_v44 = vpop.xlane.xlu0 %3395  ;;  %v3559_v47 = vsub.f32 %v7397_v6, %v7839_v9 }
 0x62b   :  { %v4620_v33 = vpop.eup %4619  ;;  %v3523_v32 = vsub.f32 %v7401_v15, %v7841_v44 }
 0x62c   :  { %3779 = vadd.xlane.f32.xlu1 %v4620_v33  ;;  %v3659_v3 = vmul.f32 1.442695, %v3559_v47 }
 0x62d   :  { %v3587_v8 = vmul.f32 1.442695, %v3523_v32  ;;  %v7847_v23 = vpop.xlane.xlu1 %3397 }
 0x62e   :  { %v3524_v16 = vsub.f32 %v7417_v29, %v7847_v23  ;;  %v7851_v35 = vpop.xlane.xlu0 %3469 }
 0x62f   :  { %v4622_v46 = vpop.eup %4621  ;;  %4627 = vpow2.f32 %v3587_v8  ;;  %v3560_v34 = vsub.f32 %v7421_v36, %v7851_v35 }
 0x630   :  { %v3589_v42 = vmul.f32 1.442695, %v3524_v16  ;;  %3781 = vadd.xlane.f32.xlu0 %v4622_v46 }
 0x631   :  { %v7855_v6 = vpop.xlane.xlu1 %3471  ;;  %v3661_v15 = vmul.f32 1.442695, %v3560_v34 }
 0x632   :  { %4629 = vpow2.f32 %v3589_v42  ;;  %v3561_v33 = vsub.f32 %v7436_v7, %v7855_v6  ;;  %v7859_v32 = vpop.xlane.xlu0 %3399 }
 0x633   :  { %v4624_v29 = vpop.eup %4623  ;;  %4631 = vpow2.f32 %v3659_v3  ;;  %v3525_v47 = vsub.f32 %v7440_v20, %v7859_v32 }
 0x634   :  { %3783 = vadd.xlane.f32.xlu1 %v4624_v29  ;;  %4633 = vpow2.f32 %v3661_v15  ;;  %v3663_v36 = vmul.f32 1.442695, %v3561_v33 }
 0x635   :  { %v3591_v8 = vmul.f32 1.442695, %v3525_v47 }
 0x636   :  { %v7863_v16 = vpop.xlane.xlu0 %3401 }
 0x637   :  { %v4626_v46 = vpop.eup %4625  ;;  %4635 = vpow2.f32 %v3591_v8  ;;  %v3526_v42 = vsub.f32 %v7456_v60, %v7863_v16 }
 0x638   :  { %3785 = vadd.xlane.f32.xlu0 %v4626_v46  ;;  %4637 = vpow2.f32 %v3663_v36 }
 0x639   :  { %v3593_v7 = vmul.f32 1.442695, %v3526_v42  ;;  %v7867_v34 = vpop.xlane.xlu1 %3475 }
 0x63a   :  { %v7869_v3 = vpop.xlane.xlu0 %3473  ;;  %v3563_v20 = vsub.f32 %v7473_v26, %v7867_v34 }
 0x63b   :  { %4639 = vpow2.f32 %v3593_v7  ;;  %v3562_v15 = vsub.f32 %v7477_v1, %v7869_v3 }
 0x63c   :  { %v4628_v33 = vpop.eup %4627  ;;  %v3667_v29 = vmul.f32 1.442695, %v3563_v20 }
 0x63d   :  { %v3665_v47 = vmul.f32 1.442695, %v3562_v15  ;;  %3715 = vadd.xlane.f32.xlu1 %v4628_v33 }
 0x63e   :  { %v7875_v8 = vpop.xlane.xlu0 %3477  ;;  %4641 = vpow2.f32 %v3667_v29 }
 0x63f   :  { %v4630_v60 = vpop.eup %4629  ;;  %v3564_v36 = vsub.f32 %v7492_v19, %v7875_v8  ;;  %4643 = vpow2.f32 %v3665_v47 }
 0x640   :  { %v4632_v46 = vpop.eup %4631  ;;  %3717 = vadd.xlane.f32.xlu0 %v4630_v60 }
 0x641   :  { %v3669_v42 = vmul.f32 1.442695, %v3564_v36  ;;  %3787 = vadd.xlane.f32.xlu1 %v4632_v46  ;;  %v7879_v26 = vpop.xlane.xlu1 %3479  ;;  %v4634_v7 = vpop.eup %4633 }
 0x642   :  { %v3565_v1 = vsub.f32 %v7506_v54, %v7879_v26 }
 0x643   :  { %4645 = vpow2.f32 %v3669_v42 }
 0x644   :  { %v4636_v20 = vpop.eup %4635  ;;  %3789 = vadd.xlane.f32.xlu0 %v4634_v7  ;;  %v3671_v15 = vmul.f32 1.442695, %v3565_v1 }
 0x645   :  { %3719 = vadd.xlane.f32.xlu1 %v4636_v20  ;;  %v3724_v33 = vpop.xlane.xlu1 %3723  ;;  %v7883_v29 = vpop.xlane.xlu0 %3481 }
 0x646   :  { %v4638_v19 = vpop.eup %4637  ;;  %4647 = vpow2.f32 %v3671_v15  ;;  %v3566_v47 = vsub.f32 %v7520_v38, %v7883_v29 }
 0x647   :  { %4649 = vlog2.f32 %v3724_v33 }
 0x648   :  { %v4640_v60 = vpop.eup %4639  ;;  %v3673_v36 = vmul.f32 1.442695, %v3566_v47 }
 0x649   :  { %3791 = vadd.xlane.f32.xlu1 %v4638_v19  ;;  %3721 = vadd.xlane.f32.xlu0 %v4640_v60  ;;  %v7887_v46 = vpop.xlane.xlu1 %3483  ;;  %v3726_v54 = vpop.xlane.xlu0 %3725 }
 0x64a   :  { %4651 = vpow2.f32 %v3673_v36  ;;  %v3567_v42 = vsub.f32 %v7534_v37, %v7887_v46 }
 0x64b   :  { %v4642_v7 = vpop.eup %4641  ;;  %4653 = vlog2.f32 %v3726_v54 }
 0x64c   :  { %v4644_v1 = vpop.eup %4643  ;;  %v3675_v20 = vmul.f32 1.442695, %v3567_v42 }
 0x64d   :  { %3795 = vadd.xlane.f32.xlu1 %v4642_v7  ;;  %3793 = vadd.xlane.f32.xlu0 %v4644_v1  ;;  %v3728_v15 = vpop.xlane.xlu1 %3727  ;;  %v7891_v38 = vpop.xlane.xlu0 %3485  ;;  %v9141_v1 = vld [vmem:[#allocation84_spill] sm:$0xff] }
 0x64e   :  { %9139 = vst [vmem:[#allocation38_spill] sm:$0xff] %v7891_v38  ;;  %4655 = vpow2.f32 %v3675_v20  ;;  %v3568_v33 = vsub.f32 %v7548_v63, %v7891_v38  ;;  %v3847_v20 = vsub.f32 %v9141_v1, %v7449_v39 }
 0x64f   :  { %4657 = vlog2.f32 %v3728_v15 }
 0x650   :  { %v4646_v19 = vpop.eup %4645  ;;  %v3677_v47 = vmul.f32 1.442695, %v3568_v33 }
 0x651   :  { %3797 = vadd.xlane.f32.xlu0 %v4646_v19  ;;  %v7895_v60 = vpop.xlane.xlu1 %3487  ;;  %v3730_v37 = vpop.xlane.xlu0 %3729 }
 0x652   :  { %9140 = vst [vmem:[#allocation37_spill] sm:$0xff] %v7895_v60  ;;  %4659 = vpow2.f32 %v3677_v47  ;;  %v3569_v36 = vsub.f32 %v7562_v31, %v7895_v60 }
 0x653   :  { %v4648_v54 = vpop.eup %4647  ;;  %4661 = vlog2.f32 %v3730_v37  ;;  %v9142_v37 = vld [vmem:[#allocation24_spill] sm:$0xff] }
 0x654   :  { %v4650_v42 = vpop.eup %4649  ;;  %v3679_v7 = vmul.f32 1.442695, %v3569_v36  ;;  %3799 = vadd.xlane.f32.xlu1 %v4648_v54  ;;  %v3848_v36 = vsub.f32 %v9142_v37, %v7466_v22 }
 0x655   :  { %v3916_v63 = vmul.f32 0.6931472, %v4650_v42  ;;  %v3732_v38 = vpop.xlane.xlu1 %3731  ;;  %v7901_v15 = vpop.xlane.xlu0 %3489 }
 0x656   :  { %4663 = vpow2.f32 %v3679_v7  ;;  %v3570_v33 = vsub.f32 %v7576_v59, %v7901_v15 }
 0x657   :  { %v4652_v19 = vpop.eup %4651  ;;  %v4039_v47 = vsub.f32 %v3847_v20, %v3916_v63  ;;  %4665 = vlog2.f32 %v3732_v38  ;;  %v9143_v63 = vld [vmem:[#allocation25_spill] sm:$0xff] }
 0x658   :  { %v4654_v31 = vpop.eup %4653  ;;  %v3681_v60 = vmul.f32 1.442695, %v3570_v33  ;;  %3801 = vadd.xlane.f32.xlu0 %v4652_v19  ;;  %v3849_v33 = vsub.f32 %v9143_v63, %v7485_v2 }
 0x659   :  { %4103 = vst [vmem:[#allocation8 + $0x20] sm:$0xff] %v4039_v47  ;;  %v3918_v54 = vmul.f32 0.6931472, %v4654_v31  ;;  %v7907_v39 = vpop.xlane.xlu1 %3491  ;;  %v3734_v42 = vpop.xlane.xlu0 %3733 }
 0x65a   :  { %4667 = vpow2.f32 %v3681_v60  ;;  %v3571_v7 = vsub.f32 %v7590_v5, %v7907_v39 }
 0x65b   :  { %v4656_v1 = vpop.eup %4655  ;;  %v4040_v59 = vsub.f32 %v3848_v36, %v3918_v54  ;;  %4669 = vlog2.f32 %v3734_v42  ;;  %v9144_v54 = vld [vmem:[#allocation28_spill] sm:$0xff] }
 0x65c   :  { %v4658_v20 = vpop.eup %4657  ;;  %v3683_v38 = vmul.f32 1.442695, %v3571_v7  ;;  %3803 = vadd.xlane.f32.xlu1 %v4656_v1  ;;  %v3850_v42 = vsub.f32 %v9144_v54, %v7499_v13  ;;  %v9146_v54 = vld [vmem:[#allocation67_spill] sm:$0xff] }
 0x65d   :  { %4104 = vst [vmem:[#allocation8 + $0x28] sm:$0xff] %v4040_v59  ;;  %v3920_v22 = vmul.f32 0.6931472, %v4658_v20  ;;  %v3736_v19 = vpop.xlane.xlu1 %3735  ;;  %v7913_v47 = vpop.xlane.xlu0 %3493 }
 0x65e   :  { %4671 = vpow2.f32 %v3683_v38  ;;  %v3572_v60 = vsub.f32 %v7604_v48, %v7913_v47 }
 0x65f   :  { %v4660_v31 = vpop.eup %4659  ;;  %v4041_v5 = vsub.f32 %v3849_v33, %v3920_v22  ;;  %4673 = vlog2.f32 %v3736_v19  ;;  %v9145_v33 = vld [vmem:[#allocation30_spill] sm:$0xff] }
 0x660   :  { %v4662_v37 = vpop.eup %4661  ;;  %v3685_v36 = vmul.f32 1.442695, %v3572_v60  ;;  %3805 = vadd.xlane.f32.xlu0 %v4660_v31  ;;  %v3851_v22 = vsub.f32 %v9145_v33, %v7513_v53 }
 0x661   :  { %4105 = vst [vmem:[#allocation8 + $0x30] sm:$0xff] %v4041_v5  ;;  %v3922_v2 = vmul.f32 0.6931472, %v4662_v37  ;;  %v7919_v7 = vpop.xlane.xlu1 %3495  ;;  %v3738_v1 = vpop.xlane.xlu0 %3737 }
 0x662   :  { %4675 = vpow2.f32 %v3685_v36  ;;  %v3573_v59 = vsub.f32 %v7618_v18, %v7919_v7 }
 0x663   :  { %v4664_v20 = vpop.eup %4663  ;;  %v4042_v48 = vsub.f32 %v3850_v42, %v3922_v2  ;;  %4677 = vlog2.f32 %v3738_v1  ;;  %v3852_v42 = vsub.f32 %v9146_v54, %v7527_v61 }
 0x664   :  { %v4666_v38 = vpop.eup %4665  ;;  %v3687_v63 = vmul.f32 1.442695, %v3573_v59  ;;  %3807 = vadd.xlane.f32.xlu1 %v4664_v20 }
 0x665   :  { %4106 = vst [vmem:[#allocation8 + $0x38] sm:$0xff] %v4042_v48  ;;  %v3924_v13 = vmul.f32 0.6931472, %v4666_v38  ;;  %v3740_v19 = vpop.xlane.xlu1 %3739  ;;  %v7925_v60 = vpop.xlane.xlu0 %3497 }
 0x666   :  { %4679 = vpow2.f32 %v3687_v63  ;;  %v3574_v31 = vsub.f32 %v7632_v17, %v7925_v60  ;;  %v9147_v63 = vld [vmem:[#allocation71_spill] sm:$0xff] }
 0x667   :  { %v4668_v5 = vpop.eup %4667  ;;  %v4043_v18 = vsub.f32 %v3851_v22, %v3924_v13  ;;  %4681 = vlog2.f32 %v3740_v19  ;;  %v3853_v33 = vsub.f32 %v9147_v63, %v7541_v52 }
 0x668   :  { %v4670_v37 = vpop.eup %4669  ;;  %v3689_v36 = vmul.f32 1.442695, %v3574_v31  ;;  %3809 = vadd.xlane.f32.xlu0 %v4668_v5 }
 0x669   :  { %4107 = vst [vmem:[#allocation8 + $0x40] sm:$0xff] %v4043_v18  ;;  %v3926_v53 = vmul.f32 0.6931472, %v4670_v37  ;;  %v7931_v2 = vpop.xlane.xlu1 %3499  ;;  %v3742_v1 = vpop.xlane.xlu0 %3741  ;;  %v9148_v37 = vld [vmem:[#allocation72_spill] sm:$0xff] }
 0x66a   :  { %4683 = vpow2.f32 %v3689_v36  ;;  %v3575_v59 = vsub.f32 %v7651_v12, %v7931_v2  ;;  %v3854_v36 = vsub.f32 %v9148_v37, %v7555_v30 }
 0x66b   :  { %v4672_v20 = vpop.eup %4671  ;;  %v4044_v17 = vsub.f32 %v3852_v42, %v3926_v53  ;;  %4685 = vlog2.f32 %v3742_v1 }
 0x66c   :  { %v4674_v48 = vpop.eup %4673  ;;  %v3691_v38 = vmul.f32 1.442695, %v3575_v59  ;;  %3811 = vadd.xlane.f32.xlu1 %v4672_v20 }
 0x66d   :  { %4108 = vst [vmem:[#allocation8 + $0x48] sm:$0xff] %v4044_v17  ;;  %v3928_v61 = vmul.f32 0.6931472, %v4674_v48  ;;  %v3744_v22 = vpop.xlane.xlu1 %3743  ;;  %v7937_v13 = vpop.xlane.xlu0 %3501  ;;  %v9149_v17 = vld [vmem:[#allocation73_spill] sm:$0xff] }
 0x66e   :  { %4687 = vpow2.f32 %v3691_v38  ;;  %v3576_v19 = vsub.f32 %v7670_v43, %v7937_v13  ;;  %v3855_v48 = vsub.f32 %v9149_v17, %v7569_v11 }
 0x66f   :  { %v4676_v31 = vpop.eup %4675  ;;  %v4045_v12 = vsub.f32 %v3853_v33, %v3928_v61  ;;  %4689 = vlog2.f32 %v3744_v22 }
 0x670   :  { %v4678_v5 = vpop.eup %4677  ;;  %v3693_v18 = vmul.f32 1.442695, %v3576_v19  ;;  %3813 = vadd.xlane.f32.xlu0 %v4676_v31  ;;  %v9150_v31 = vld [vmem:[#allocation74_spill] sm:$0xff] }
 0x671   :  { %4109 = vst [vmem:[#allocation8 + $0x50] sm:$0xff] %v4045_v12  ;;  %v3930_v52 = vmul.f32 0.6931472, %v4678_v5  ;;  %v7943_v54 = vpop.xlane.xlu1 %3503  ;;  %v3746_v42 = vpop.xlane.xlu0 %3745  ;;  %v3856_v12 = vsub.f32 %v9150_v31, %v7583_v21 }
 0x672   :  { %4691 = vpow2.f32 %v3693_v18  ;;  %v3577_v53 = vsub.f32 %v7684_v49, %v7943_v54 }
 0x673   :  { %v4680_v1 = vpop.eup %4679  ;;  %v4046_v43 = vsub.f32 %v3854_v36, %v3930_v52  ;;  %4693 = vlog2.f32 %v3746_v42 }
 0x674   :  { %v4682_v59 = vpop.eup %4681  ;;  %v3695_v20 = vmul.f32 1.442695, %v3577_v53  ;;  %3815 = vadd.xlane.f32.xlu1 %v4680_v1  ;;  %v9151_v53 = vld [vmem:[#allocation75_spill] sm:$0xff] }
 0x675   :  { %4110 = vst [vmem:[#allocation8 + $0x58] sm:$0xff] %v4046_v43  ;;  %v3932_v30 = vmul.f32 0.6931472, %v4682_v59  ;;  %v3748_v38 = vpop.xlane.xlu1 %3747  ;;  %v7949_v63 = vpop.xlane.xlu0 %3505  ;;  %v3857_v1 = vsub.f32 %v9151_v53, %v7597_v0 }
 0x676   :  { %4695 = vpow2.f32 %v3695_v20  ;;  %v3578_v33 = vsub.f32 %v7698_v58, %v7949_v63 }
 0x677   :  { %v4684_v61 = vpop.eup %4683  ;;  %v4047_v49 = vsub.f32 %v3855_v48, %v3932_v30  ;;  %4697 = vlog2.f32 %v3748_v38  ;;  %v9152_v38 = vld [vmem:[#allocation129_spill] sm:$0xff] }
 0x678   :  { %v4686_v22 = vpop.eup %4685  ;;  %v3697_v19 = vmul.f32 1.442695, %v3578_v33  ;;  %3817 = vadd.xlane.f32.xlu0 %v4684_v61  ;;  %v9153_v33 = vld [vmem:[#allocation76_spill] sm:$0xff] }
 0x679   :  { %4111 = vst [vmem:[#allocation8 + $0x60] sm:$0xff] %v4047_v49  ;;  %v3934_v11 = vmul.f32 0.6931472, %v4686_v22  ;;  %v7955_v5 = vpop.xlane.xlu1 %3507  ;;  %v3750_v18 = vpop.xlane.xlu0 %3749  ;;  %v3858_v61 = vsub.f32 %v9153_v33, %v9152_v38 }
 0x67a   :  { %4699 = vpow2.f32 %v3697_v19  ;;  %v3579_v37 = vsub.f32 %v7712_v25, %v7955_v5 }
 0x67b   :  { %v4688_v36 = vpop.eup %4687  ;;  %v4048_v58 = vsub.f32 %v3856_v12, %v3934_v11  ;;  %4701 = vlog2.f32 %v3750_v18  ;;  %v9154_v18 = vld [vmem:[#allocation131_spill] sm:$0xff] }
 0x67c   :  { %v4690_v52 = vpop.eup %4689  ;;  %v3699_v42 = vmul.f32 1.442695, %v3579_v37  ;;  %3819 = vadd.xlane.f32.xlu1 %v4688_v36  ;;  %v9155_v37 = vld [vmem:[#allocation77_spill] sm:$0xff] }
 0x67d   :  { %4112 = vst [vmem:[#allocation8 + $0x68] sm:$0xff] %v4048_v58  ;;  %v3936_v21 = vmul.f32 0.6931472, %v4690_v52  ;;  %v3752_v43 = vpop.xlane.xlu1 %3751  ;;  %v7961_v59 = vpop.xlane.xlu0 %3509  ;;  %v3859_v36 = vsub.f32 %v9155_v37, %v9154_v18 }
 0x67e   :  { %4703 = vpow2.f32 %v3699_v42  ;;  %v3580_v20 = vsub.f32 %v7726_v4, %v7961_v59 }
 0x67f   :  { %v4692_v17 = vpop.eup %4691  ;;  %v4049_v25 = vsub.f32 %v3857_v1, %v3936_v21  ;;  %4705 = vlog2.f32 %v3752_v43 }
 0x680   :  { %v4694_v48 = vpop.eup %4693  ;;  %v3701_v30 = vmul.f32 1.442695, %v3580_v20  ;;  %3821 = vadd.xlane.f32.xlu0 %v4692_v17  ;;  %v9156_v20 = vld [vmem:[#allocation133_spill] sm:$0xff]  ;;  %v9157_v17 = vld [vmem:[#allocation34_spill] sm:$0xff] }
 0x681   :  { %4113 = vst [vmem:[#allocation8 + $0x70] sm:$0xff] %v4049_v25  ;;  %v3938_v0 = vmul.f32 0.6931472, %v4694_v48  ;;  %v7967_v49 = vpop.xlane.xlu1 %3511  ;;  %v3754_v22 = vpop.xlane.xlu0 %3753  ;;  %v3860_v25 = vsub.f32 %v9157_v17, %v9156_v20 }
 0x682   :  { %4707 = vpow2.f32 %v3701_v30  ;;  %v3581_v19 = vsub.f32 %v7740_v40, %v7967_v49 }
 0x683   :  { %v4696_v31 = vpop.eup %4695  ;;  %v4050_v4 = vsub.f32 %v3858_v61, %v3938_v0  ;;  %4709 = vlog2.f32 %v3754_v22 }
 0x684   :  { %v4698_v12 = vpop.eup %4697  ;;  %v3703_v11 = vmul.f32 1.442695, %v3581_v19  ;;  %3823 = vadd.xlane.f32.xlu1 %v4696_v31  ;;  %v9158_v19 = vld [vmem:[#allocation21_spill] sm:$0xff]  ;;  %v9159_v31 = vld [vmem:[#allocation39_spill] sm:$0xff] }
 0x685   :  { %4114 = vst [vmem:[#allocation8 + $0x78] sm:$0xff] %v4050_v4  ;;  %v3940_v58 = vmul.f32 0.6931472, %v4698_v12  ;;  %v3756_v52 = vpop.xlane.xlu1 %3755  ;;  %v7973_v42 = vpop.xlane.xlu0 %3513  ;;  %v3861_v4 = vsub.f32 %v9159_v31, %v9158_v19 }
 0x686   :  { %4711 = vpow2.f32 %v3703_v11  ;;  %v3582_v53 = vsub.f32 %v7754_v14, %v7973_v42 }
 0x687   :  { %v4700_v1 = vpop.eup %4699  ;;  %v4051_v40 = vsub.f32 %v3859_v36, %v3940_v58  ;;  %4713 = vlog2.f32 %v3756_v52 }
 0x688   :  { %v4702_v21 = vpop.eup %4701  ;;  %v3705_v43 = vmul.f32 1.442695, %v3582_v53  ;;  %3825 = vadd.xlane.f32.xlu0 %v4700_v1  ;;  %v9160_v53 = vld [vmem:[#allocation135_spill] sm:$0xff] }
 0x689   :  { %4115 = vst [vmem:[#allocation8 + $0x80] sm:$0xff] %v4051_v40  ;;  %v3942_v48 = vmul.f32 0.6931472, %v4702_v21  ;;  %v7979_v30 = vpop.xlane.xlu1 %3515  ;;  %v3758_v38 = vpop.xlane.xlu0 %3757  ;;  %v9161_v1 = vld [vmem:[#allocation79_spill] sm:$0xff] }
 0x68a   :  { %4715 = vpow2.f32 %v3705_v43  ;;  %v3583_v33 = vsub.f32 %v7768_v45, %v7979_v30  ;;  %v3862_v40 = vsub.f32 %v9161_v1, %v9160_v53 }
 0x68b   :  { %v4704_v61 = vpop.eup %4703  ;;  %v4052_v14 = vsub.f32 %v3860_v25, %v3942_v48  ;;  %4717 = vlog2.f32 %v3758_v38 }
 0x68c   :  { %v4706_v0 = vpop.eup %4705  ;;  %v3707_v22 = vmul.f32 1.442695, %v3583_v33  ;;  %3827 = vadd.xlane.f32.xlu1 %v4704_v61  ;;  %v9162_v33 = vld [vmem:[#allocation16_spill] sm:$0xff]  ;;  %v9163_v61 = vld [vmem:[#allocation85_spill] sm:$0xff] }
 0x68d   :  { %4116 = vst [vmem:[#allocation8 + $0x88] sm:$0xff] %v4052_v14  ;;  %v3944_v12 = vmul.f32 0.6931472, %v4706_v0  ;;  %v3760_v11 = vpop.xlane.xlu1 %3759  ;;  %v7985_v18 = vpop.xlane.xlu0 %3517  ;;  %v3863_v14 = vsub.f32 %v9163_v61, %v9162_v33  ;;  %v9168_v61 = vld [vmem:[#allocation59_spill] sm:$0xff] }
 0x68e   :  { %4719 = vpow2.f32 %v3707_v22  ;;  %v3584_v37 = vsub.f32 %v7782_v41, %v7985_v18 }
 0x68f   :  { %v4708_v36 = vpop.eup %4707  ;;  %v4053_v45 = vsub.f32 %v3861_v4, %v3944_v12  ;;  %4721 = vlog2.f32 %v3760_v11 }
 0x690   :  { %v4710_v58 = vpop.eup %4709  ;;  %v3709_v52 = vmul.f32 1.442695, %v3584_v37  ;;  %3829 = vadd.xlane.f32.xlu0 %v4708_v36  ;;  %v9164_v37 = vld [vmem:[#allocation15_spill] sm:$0xff]  ;;  %v9165_v36 = vld [vmem:[#allocation89_spill] sm:$0xff] }
 0x691   :  { %4117 = vst [vmem:[#allocation8 + $0x90] sm:$0xff] %v4053_v45  ;;  %v3946_v21 = vmul.f32 0.6931472, %v4710_v58  ;;  %v7991_v43 = vpop.xlane.xlu1 %3519  ;;  %v3762_v20 = vpop.xlane.xlu0 %3761  ;;  %v3864_v45 = vsub.f32 %v9165_v36, %v9164_v37  ;;  %v9171_v37 = vld [vmem:[#allocation86_spill] sm:$0xff] }
 0x692   :  { %4723 = vpow2.f32 %v3709_v52  ;;  %v3585_v17 = vsub.f32 %v7796_v50, %v7991_v43 }
 0x693   :  { %v4712_v25 = vpop.eup %4711  ;;  %v4054_v41 = vsub.f32 %v3862_v40, %v3946_v21  ;;  %4725 = vlog2.f32 %v3762_v20  ;;  %v9167_v20 = vld [vmem:[#allocation93_spill] sm:$0xff] }
 0x694   :  { %v4714_v48 = vpop.eup %4713  ;;  %v3711_v38 = vmul.f32 1.442695, %v3585_v17  ;;  %3831 = vadd.xlane.f32.xlu1 %v4712_v25 }
 0x695   :  { %4118 = vst [vmem:[#allocation8 + $0x98] sm:$0xff] %v4054_v41  ;;  %v3948_v0 = vmul.f32 0.6931472, %v4714_v48  ;;  %v3764_v22 = vpop.xlane.xlu1 %3763  ;;  %v7997_v19 = vpop.xlane.xlu0 %3521 }
 0x696   :  { %4727 = vpow2.f32 %v3711_v38  ;;  %v3586_v31 = vsub.f32 %v7808_v51, %v7997_v19  ;;  %v9166_v51 = vld [vmem:[#allocation63_spill] sm:$0xff] }
 0x697   :  { %v4716_v4 = vpop.eup %4715  ;;  %v4055_v50 = vsub.f32 %v3863_v14, %v3948_v0  ;;  %4729 = vlog2.f32 %v3764_v22  ;;  %v3865_v17 = vsub.f32 %v9167_v20, %v9166_v51  ;;  %v9169_v14 = vld [vmem:[#allocation97_spill] sm:$0xff] }
 0x698   :  { %v4718_v12 = vpop.eup %4717  ;;  %v3713_v11 = vmul.f32 1.442695, %v3586_v31  ;;  %3833 = vadd.xlane.f32.xlu0 %v4716_v4  ;;  %v3866_v0 = vsub.f32 %v9169_v14, %v9168_v61 }
 0x699   :  { %4119 = vst [vmem:[#allocation8 + $0xa0] sm:$0xff] %v4055_v50  ;;  %v3950_v58 = vmul.f32 0.6931472, %v4718_v12  ;;  %v3766_v52 = vpop.xlane.xlu0 %3765 }
 0x69a   :  { %4731 = vpow2.f32 %v3713_v11  ;;  %v9170_v11 = vld [vmem:[#allocation55_spill] sm:$0xff] }
 0x69b   :  { %v4720_v53 = vpop.eup %4719  ;;  %v4056_v1 = vsub.f32 %v3864_v45, %v3950_v58  ;;  %4733 = vlog2.f32 %v3766_v52  ;;  %v3867_v36 = vsub.f32 %v9171_v37, %v9170_v11  ;;  %v9176_v11 = vld [vmem:[#allocation94_spill] sm:$0xff] }
 0x69c   :  { %v4722_v40 = vpop.eup %4721  ;;  %3835 = vadd.xlane.f32.xlu1 %v4720_v53  ;;  %v3871_v37 = vsub.f32 %v9176_v11, %v7802_v28 }
 0x69d   :  { %v3768_v21 = vpop.xlane.xlu1 %3767  ;;  %4120 = vst [vmem:[#allocation8 + $0xa8] sm:$0xff] %v4056_v1  ;;  %v3952_v25 = vmul.f32 0.6931472, %v4722_v40  ;;  %v9172_v40 = vld [vmem:[#allocation50_spill] sm:$0xff] }
 0x69e   :  { %4735 = vlog2.f32 %v3768_v21  ;;  %v9173_v21 = vld [vmem:[#allocation88_spill] sm:$0xff] }
 0x69f   :  { %v4724_v41 = vpop.eup %4723  ;;  %v4057_v48 = vsub.f32 %v3865_v17, %v3952_v25  ;;  %v3868_v51 = vsub.f32 %v9173_v21, %v9172_v40  ;;  %v9174_v25 = vld [vmem:[#allocation90_spill] sm:$0xff] }
 0x6a0   :  { %v4726_v38 = vpop.eup %4725  ;;  %3837 = vadd.xlane.f32.xlu0 %v4724_v41  ;;  %v3869_v41 = vsub.f32 %v9174_v25, %v7775_v57 }
 0x6a1   :  { %v3770_v33 = vpop.xlane.xlu0 %3769  ;;  %4121 = vst [vmem:[#allocation8 + $0xb0] sm:$0xff] %v4057_v48  ;;  %v3954_v22 = vmul.f32 0.6931472, %v4726_v38 }
 0x6a2   :  { %4737 = vlog2.f32 %v3770_v33 }
 0x6a3   :  { %v4728_v31 = vpop.eup %4727  ;;  %v4058_v4 = vsub.f32 %v3866_v0, %v3954_v22  ;;  %v9175_v0 = vld [vmem:[#allocation92_spill] sm:$0xff] }
 0x6a4   :  { %v4730_v50 = vpop.eup %4729  ;;  %3839 = vadd.xlane.f32.xlu1 %v4728_v31  ;;  %v3870_v22 = vsub.f32 %v9175_v0, %v7789_v62  ;;  %v9180_v0 = vld [vmem:[#allocation113_spill] sm:$0xff] }
 0x6a5   :  { %v3772_v12 = vpop.xlane.xlu1 %3771  ;;  %4122 = vst [vmem:[#allocation8 + $0xb8] sm:$0xff] %v4058_v4  ;;  %v3956_v45 = vmul.f32 0.6931472, %v4730_v50 }
 0x6a6   :  { %4739 = vlog2.f32 %v3772_v12 }
 0x6a7   :  { %v4732_v58 = vpop.eup %4731  ;;  %v4059_v52 = vsub.f32 %v3867_v36, %v3956_v45 }
 0x6a8   :  { %v4734_v53 = vpop.eup %4733  ;;  %3841 = vadd.xlane.f32.xlu0 %v4732_v58 }
 0x6a9   :  { %v3774_v1 = vpop.xlane.xlu0 %3773  ;;  %4123 = vst [vmem:[#allocation8 + $0xc0] sm:$0xff] %v4059_v52  ;;  %v3958_v20 = vmul.f32 0.6931472, %v4734_v53  ;;  %v9177_v52 = vld [vmem:[#allocation96_spill] sm:$0xff] }
 0x6aa   :  { %4741 = vlog2.f32 %v3774_v1  ;;  %v3872_v53 = vsub.f32 %v9177_v52, %v7811_v56  ;;  %v9183_v52 = vld [vmem:[#allocation117_spill] sm:$0xff] }
 0x6ab   :  { %v4736_v17 = vpop.eup %4735  ;;  %v4060_v48 = vsub.f32 %v3868_v51, %v3958_v20  ;;  %v9178_v51 = vld [vmem:[#allocation111_spill] sm:$0xff] }
 0x6ac   :  { %v3960_v38 = vmul.f32 0.6931472, %v4736_v17  ;;  %v3873_v20 = vsub.f32 %v9178_v51, %v7815_v27  ;;  %v9185_v51 = vld [vmem:[#allocation104_spill] sm:$0xff] }
 0x6ad   :  { %v3776_v33 = vpop.xlane.xlu1 %3775  ;;  %4124 = vst [vmem:[#allocation8 + $0xc8] sm:$0xff] %v4060_v48  ;;  %v9179_v48 = vld [vmem:[#allocation98_spill] sm:$0xff] }
 0x6ae   :  { %v4061_v61 = vsub.f32 %v3869_v41, %v3960_v38  ;;  %4743 = vlog2.f32 %v3776_v33  ;;  %v3874_v38 = vsub.f32 %v9179_v48, %v7819_v24 }
 0x6af   :  { %v4738_v14 = vpop.eup %4737 }
 0x6b0   :  { %4125 = vst [vmem:[#allocation8 + $0xd0] sm:$0xff] %v4061_v61  ;;  %v3962_v31 = vmul.f32 0.6931472, %v4738_v14 }
 0x6b1   :  { %v3778_v4 = vpop.xlane.xlu0 %3777 }
 0x6b2   :  { %v4062_v50 = vsub.f32 %v3870_v22, %v3962_v31  ;;  %4745 = vlog2.f32 %v3778_v4  ;;  %v3875_v22 = vsub.f32 %v9180_v0, %v7823_v10 }
 0x6b3   :  { %v4740_v12 = vpop.eup %4739 }
 0x6b4   :  { %4126 = vst [vmem:[#allocation8 + $0xd8] sm:$0xff] %v4062_v50  ;;  %v3964_v57 = vmul.f32 0.6931472, %v4740_v12  ;;  %v9181_v12 = vld [vmem:[#allocation115_spill] sm:$0xff] }
 0x6b5   :  { %v3780_v36 = vpop.xlane.xlu1 %3779  ;;  %v3876_v11 = vsub.f32 %v9181_v12, %v7827_v55  ;;  %v9184_v55 = vld [vmem:[#allocation41_spill] sm:$0xff]  ;;  %v9188_v12 = vld [vmem:[#allocation119_spill] sm:$0xff] }
 0x6b6   :  { %v4063_v45 = vsub.f32 %v3871_v37, %v3964_v57  ;;  %4747 = vlog2.f32 %v3780_v36 }
 0x6b7   :  { %v4742_v58 = vpop.eup %4741 }
 0x6b8   :  { %4127 = vst [vmem:[#allocation8 + $0xe0] sm:$0xff] %v4063_v45  ;;  %v3966_v62 = vmul.f32 0.6931472, %v4742_v58  ;;  %v9182_v58 = vld [vmem:[#allocation42_spill] sm:$0xff] }
 0x6b9   :  { %v3782_v1 = vpop.xlane.xlu0 %3781  ;;  %v3877_v10 = vsub.f32 %v9183_v52, %v9182_v58  ;;  %v9189_v58 = vld [vmem:[#allocation108_spill] sm:$0xff] }
 0x6ba   :  { %v4064_v40 = vsub.f32 %v3872_v53, %v3966_v62  ;;  %4749 = vlog2.f32 %v3782_v1  ;;  %v3880_v52 = vsub.f32 %v9189_v58, %v7851_v35 }
 0x6bb   :  { %v4744_v21 = vpop.eup %4743 }
 0x6bc   :  { %4128 = vst [vmem:[#allocation8 + $0xe8] sm:$0xff] %v4064_v40  ;;  %v3968_v28 = vmul.f32 0.6931472, %v4744_v21 }
 0x6bd   :  { %v3784_v17 = vpop.xlane.xlu1 %3783 }
 0x6be   :  { %v4065_v25 = vsub.f32 %v3873_v20, %v3968_v28  ;;  %4751 = vlog2.f32 %v3784_v17  ;;  %v3878_v20 = vsub.f32 %v9185_v51, %v9184_v55  ;;  %v9191_v51 = vld [vmem:[#allocation110_spill] sm:$0xff] }
 0x6bf   :  { %v4746_v41 = vpop.eup %4745 }
 0x6c0   :  { %4129 = vst [vmem:[#allocation8 + $0xf0] sm:$0xff] %v4065_v25  ;;  %v3970_v56 = vmul.f32 0.6931472, %v4746_v41 }
 0x6c1   :  { %v3786_v33 = vpop.xlane.xlu0 %3785 }
 0x6c2   :  { %v4066_v61 = vsub.f32 %v3874_v38, %v3970_v56  ;;  %4753 = vlog2.f32 %v3786_v33  ;;  %v9186_v38 = vld [vmem:[#allocation106_spill] sm:$0xff] }
 0x6c3   :  { %v4748_v14 = vpop.eup %4747  ;;  %v3843_v56 = vsub.f32 %v9186_v38, %v7841_v44 }
 0x6c4   :  { %4130 = vst [vmem:[#allocation8 + $0xf8] sm:$0xff] %v4066_v61  ;;  %v3972_v27 = vmul.f32 0.6931472, %v4748_v14 }
 0x6c6   :  { %v4067_v31 = vsub.f32 %v3875_v22, %v3972_v27  ;;  %v3716_v4 = vpop.xlane.xlu1 %3715 }
 0x6c7   :  { %v4750_v50 = vpop.eup %4749  ;;  %4755 = vlog2.f32 %v3716_v4 }
 0x6c8   :  { %4131 = vst [vmem:[#allocation8 + $0x100] sm:$0xff] %v4067_v31  ;;  %v3974_v24 = vmul.f32 0.6931472, %v4750_v50  ;;  %v9187_v31 = vld [vmem:[#allocation121_spill] sm:$0xff] }
 0x6c9   :  { %v3718_v37 = vpop.xlane.xlu0 %3717  ;;  %v3844_v4 = vsub.f32 %v9187_v31, %v7847_v23  ;;  %v9190_v23 = vld [vmem:[#allocation123_spill] sm:$0xff] }
 0x6ca   :  { %v4068_v57 = vsub.f32 %v3876_v11, %v3974_v24  ;;  %v3788_v36 = vpop.xlane.xlu1 %3787  ;;  %4757 = vlog2.f32 %v3718_v37  ;;  %v3879_v11 = vsub.f32 %v9188_v12, %v7839_v9 }
 0x6cb   :  { %v4752_v45 = vpop.eup %4751  ;;  %4759 = vlog2.f32 %v3788_v36 }
 0x6cc   :  { %4132 = vst [vmem:[#allocation8 + $0x108] sm:$0xff] %v4068_v57  ;;  %v3976_v53 = vmul.f32 0.6931472, %v4752_v45 }
 0x6cd   :  { %v3790_v62 = vpop.xlane.xlu0 %3789 }
 0x6ce   :  { %v4069_v1 = vsub.f32 %v3877_v10, %v3976_v53  ;;  %v3720_v40 = vpop.xlane.xlu1 %3719  ;;  %4761 = vlog2.f32 %v3790_v62  ;;  %v3845_v53 = vsub.f32 %v9190_v23, %v7859_v32 }
 0x6cf   :  { %v4754_v21 = vpop.eup %4753  ;;  %4763 = vlog2.f32 %v3720_v40 }
 0x6d0   :  { %4133 = vst [vmem:[#allocation8 + $0x110] sm:$0xff] %v4069_v1  ;;  %v3978_v28 = vmul.f32 0.6931472, %v4754_v21 }
 0x6d2   :  { %v4070_v17 = vsub.f32 %v3878_v20, %v3978_v28  ;;  %v3792_v25 = vpop.xlane.xlu1 %3791  ;;  %v3722_v41 = vpop.xlane.xlu0 %3721  ;;  %v3881_v20 = vsub.f32 %v9191_v51, %v7855_v6  ;;  %v9192_v28 = vld [vmem:[#allocation125_spill] sm:$0xff]  ;;  %v9199_v51 = vld [vmem:[#allocation38_spill] sm:$0xff] }
 0x6d3   :  { %4765 = vlog2.f32 %v3792_v25 }
 0x6d4   :  { %v4756_v48 = vpop.eup %4755  ;;  %4134 = vst [vmem:[#allocation8 + $0x118] sm:$0xff] %v4070_v17  ;;  %4767 = vlog2.f32 %v3722_v41  ;;  %v3846_v17 = vsub.f32 %v9192_v28, %v7863_v16 }
 0x6d5   :  { %v3908_v33 = vmul.f32 0.6931472, %v4756_v48 }
 0x6d6   :  { %v3796_v61 = vpop.xlane.xlu1 %3795  ;;  %v3794_v22 = vpop.xlane.xlu0 %3793 }
 0x6d7   :  { %v4758_v14 = vpop.eup %4757  ;;  %v4035_v0 = vsub.f32 %v3843_v56, %v3908_v33  ;;  %4769 = vlog2.f32 %v3796_v61  ;;  %v9193_v33 = vld [vmem:[#allocation127_spill] sm:$0xff] }
 0x6d8   :  { %v4760_v27 = vpop.eup %4759  ;;  %v3910_v50 = vmul.f32 0.6931472, %v4758_v14  ;;  %4771 = vlog2.f32 %v3794_v22  ;;  %v3883_v61 = vsub.f32 %v9193_v33, %v7867_v34 }
 0x6d9   :  { %4099 = vst [vmem:[#allocation8] sm:$0xff] %v4035_v0  ;;  %v3980_v24 = vmul.f32 0.6931472, %v4760_v27  ;;  %v9194_v0 = vld [vmem:[#allocation112_spill] sm:$0xff] }
 0x6da   :  { %v4036_v37 = vsub.f32 %v3844_v4, %v3910_v50  ;;  %v3798_v36 = vpop.xlane.xlu0 %3797  ;;  %v3882_v6 = vsub.f32 %v9194_v0, %v7869_v3  ;;  %v9195_v50 = vld [vmem:[#allocation114_spill] sm:$0xff] }
 0x6db   :  { %v4762_v57 = vpop.eup %4761  ;;  %v4071_v44 = vsub.f32 %v3879_v11, %v3980_v24  ;;  %4773 = vlog2.f32 %v3798_v36  ;;  %v3884_v12 = vsub.f32 %v9195_v50, %v7875_v8 }
 0x6dc   :  { %v4764_v45 = vpop.eup %4763  ;;  %4100 = vst [vmem:[#allocation8 + $0x8] sm:$0xff] %v4036_v37  ;;  %v3982_v10 = vmul.f32 0.6931472, %v4762_v57  ;;  %v9196_v57 = vld [vmem:[#allocation51_spill] sm:$0xff] }
 0x6dd   :  { %4135 = vst [vmem:[#allocation8 + $0x120] sm:$0xff] %v4071_v44  ;;  %v3912_v62 = vmul.f32 0.6931472, %v4764_v45  ;;  %v3800_v9 = vpop.xlane.xlu1 %3799  ;;  %v3885_v3 = vsub.f32 %v9196_v57, %v7879_v26 }
 0x6de   :  { %v4072_v1 = vsub.f32 %v3880_v52, %v3982_v10  ;;  %4775 = vlog2.f32 %v3800_v9  ;;  %v9197_v52 = vld [vmem:[#allocation116_spill] sm:$0xff] }
 0x6df   :  { %v4037_v40 = vsub.f32 %v3845_v53, %v3912_v62  ;;  %v3886_v10 = vsub.f32 %v9197_v52, %v7883_v29 }
 0x6e0   :  { %v4766_v21 = vpop.eup %4765  ;;  %4136 = vst [vmem:[#allocation8 + $0x128] sm:$0xff] %v4072_v1  ;;  %v9198_v1 = vld [vmem:[#allocation82_spill] sm:$0xff] }
 0x6e1   :  { %v4768_v55 = vpop.eup %4767  ;;  %4101 = vst [vmem:[#allocation8 + $0x10] sm:$0xff] %v4037_v40  ;;  %v3984_v35 = vmul.f32 0.6931472, %v4766_v21  ;;  %v3802_v41 = vpop.xlane.xlu0 %3801  ;;  %v3887_v9 = vsub.f32 %v9198_v1, %v7887_v46  ;;  %v9208_v1 = vld [vmem:[#allocation132_spill] sm:$0xff] }
 0x6e2   :  { %v3914_v25 = vmul.f32 0.6931472, %v4768_v55  ;;  %4777 = vlog2.f32 %v3802_v41  ;;  %v9201_v41 = vld [vmem:[#allocation37_spill] sm:$0xff] }
 0x6e3   :  { %v4073_v32 = vsub.f32 %v3881_v20, %v3984_v35  ;;  %v9200_v20 = vld [vmem:[#allocation118_spill] sm:$0xff] }
 0x6e4   :  { %v4770_v48 = vpop.eup %4769  ;;  %v4038_v38 = vsub.f32 %v3846_v17, %v3914_v25  ;;  %v3888_v35 = vsub.f32 %v9200_v20, %v9199_v51 }
 0x6e5   :  { %v4772_v56 = vpop.eup %4771  ;;  %4137 = vst [vmem:[#allocation8 + $0x130] sm:$0xff] %v4073_v32  ;;  %v3988_v14 = vmul.f32 0.6931472, %v4770_v48  ;;  %v3804_v27 = vpop.xlane.xlu1 %3803  ;;  %v9202_v32 = vld [vmem:[#allocation120_spill] sm:$0xff] }
 0x6e6   :  { %4102 = vst [vmem:[#allocation8 + $0x18] sm:$0xff] %v4038_v38  ;;  %v3986_v22 = vmul.f32 0.6931472, %v4772_v56  ;;  %4779 = vlog2.f32 %v3804_v27  ;;  %v3889_v48 = vsub.f32 %v9202_v32, %v9201_v41 }
 0x6e7   :  { %v4075_v31 = vsub.f32 %v3883_v61, %v3988_v14  ;;  %v9203_v61 = vld [vmem:[#allocation122_spill] sm:$0xff] }
 0x6e8   :  { %v4074_v16 = vsub.f32 %v3882_v6, %v3986_v22  ;;  %v4774_v4 = vpop.eup %4773  ;;  %v3890_v14 = vsub.f32 %v9203_v61, %v7901_v15  ;;  %v9212_v61 = vld [vmem:[#allocation13_spill] sm:$0xff] }
 0x6e9   :  { %4139 = vst [vmem:[#allocation8 + $0x140] sm:$0xff] %v4075_v31  ;;  %v3990_v11 = vmul.f32 0.6931472, %v4774_v4  ;;  %v3806_v24 = vpop.xlane.xlu0 %3805  ;;  %v9204_v31 = vld [vmem:[#allocation124_spill] sm:$0xff] }
 0x6ea   :  { %4138 = vst [vmem:[#allocation8 + $0x138] sm:$0xff] %v4074_v16  ;;  %4781 = vlog2.f32 %v3806_v24  ;;  %v3891_v16 = vsub.f32 %v9204_v31, %v7907_v39  ;;  %v9205_v24 = vld [vmem:[#allocation126_spill] sm:$0xff] }
 0x6eb   :  { %v4776_v34 = vpop.eup %4775  ;;  %v4076_v37 = vsub.f32 %v3884_v12, %v3990_v11 }
 0x6ec   :  { %v3992_v44 = vmul.f32 0.6931472, %v4776_v34  ;;  %v3892_v34 = vsub.f32 %v9205_v24, %v7913_v47 }
 0x6ed   :  { %4140 = vst [vmem:[#allocation8 + $0x148] sm:$0xff] %v4076_v37  ;;  %v3808_v36 = vpop.xlane.xlu1 %3807 }
 0x6ee   :  { %v4077_v45 = vsub.f32 %v3885_v3, %v3992_v44  ;;  %4783 = vlog2.f32 %v3808_v36  ;;  %v9206_v44 = vld [vmem:[#allocation128_spill] sm:$0xff] }
 0x6ef   :  { %v4778_v58 = vpop.eup %4777  ;;  %v3893_v36 = vsub.f32 %v9206_v44, %v7919_v7 }
 0x6f0   :  { %4141 = vst [vmem:[#allocation8 + $0x150] sm:$0xff] %v4077_v45  ;;  %v3994_v8 = vmul.f32 0.6931472, %v4778_v58 }
 0x6f1   :  { %v3810_v23 = vpop.xlane.xlu0 %3809 }
 0x6f2   :  { %v4078_v53 = vsub.f32 %v3886_v10, %v3994_v8  ;;  %4785 = vlog2.f32 %v3810_v23  ;;  %v9207_v10 = vld [vmem:[#allocation130_spill] sm:$0xff] }
 0x6f3   :  { %v4780_v62 = vpop.eup %4779  ;;  %v3894_v8 = vsub.f32 %v9207_v10, %v7925_v60  ;;  %v9217_v10 = vld [vmem:[#allocation49_spill] sm:$0xff] }
 0x6f4   :  { %4142 = vst [vmem:[#allocation8 + $0x158] sm:$0xff] %v4078_v53  ;;  %v3996_v26 = vmul.f32 0.6931472, %v4780_v62 }
 0x6f5   :  { %v3812_v40 = vpop.xlane.xlu1 %3811 }
 0x6f6   :  { %v4079_v21 = vsub.f32 %v3887_v9, %v3996_v26  ;;  %4787 = vlog2.f32 %v3812_v40  ;;  %v3895_v9 = vsub.f32 %v9208_v1, %v7931_v2 }
 0x6f7   :  { %v4782_v55 = vpop.eup %4781 }
 0x6f8   :  { %4143 = vst [vmem:[#allocation8 + $0x160] sm:$0xff] %v4079_v21  ;;  %v3998_v29 = vmul.f32 0.6931472, %v4782_v55  ;;  %v9209_v55 = vld [vmem:[#allocation134_spill] sm:$0xff] }
 0x6f9   :  { %v3814_v28 = vpop.xlane.xlu0 %3813  ;;  %v3896_v51 = vsub.f32 %v9209_v55, %v7937_v13 }
 0x6fa   :  { %v4080_v17 = vsub.f32 %v3888_v35, %v3998_v29  ;;  %4789 = vlog2.f32 %v3814_v28  ;;  %v9210_v28 = vld [vmem:[#allocation20_spill] sm:$0xff] }
 0x6fb   :  { %v4784_v25 = vpop.eup %4783 }
 0x6fc   :  { %4144 = vst [vmem:[#allocation8 + $0x168] sm:$0xff] %v4080_v17  ;;  %v4000_v46 = vmul.f32 0.6931472, %v4784_v25  ;;  %v3897_v17 = vsub.f32 %v9210_v28, %v7943_v54 }
 0x6fd   :  { %v3816_v38 = vpop.xlane.xlu1 %3815 }
 0x6fe   :  { %v4081_v56 = vsub.f32 %v3889_v48, %v4000_v46  ;;  %4791 = vlog2.f32 %v3816_v38  ;;  %v9211_v48 = vld [vmem:[#allocation17_spill] sm:$0xff] }
 0x6ff   :  { %v4786_v33 = vpop.eup %4785  ;;  %v3898_v46 = vsub.f32 %v9211_v48, %v7949_v63 }
 0x700   :  { %4145 = vst [vmem:[#allocation8 + $0x170] sm:$0xff] %v4081_v56  ;;  %v4002_v0 = vmul.f32 0.6931472, %v4786_v33 }
 0x701   :  { %v3818_v6 = vpop.xlane.xlu0 %3817 }
 0x702   :  { %v4082_v22 = vsub.f32 %v3890_v14, %v4002_v0  ;;  %4793 = vlog2.f32 %v3818_v6  ;;  %v3899_v14 = vsub.f32 %v9212_v61, %v7955_v5 }
 0x703   :  { %v4788_v27 = vpop.eup %4787 }
 0x704   :  { %4146 = vst [vmem:[#allocation8 + $0x178] sm:$0xff] %v4082_v22  ;;  %v4004_v4 = vmul.f32 0.6931472, %v4788_v27  ;;  %v9213_v27 = vld [vmem:[#allocation66_spill] sm:$0xff] }
 0x705   :  { %v3820_v50 = vpop.xlane.xlu1 %3819  ;;  %v3900_v31 = vsub.f32 %v9213_v27, %v7961_v59 }
 0x706   :  { %v4083_v12 = vsub.f32 %v3891_v16, %v4004_v4  ;;  %4795 = vlog2.f32 %v3820_v50 }
 0x707   :  { %v4790_v11 = vpop.eup %4789 }
 0x708   :  { %4147 = vst [vmem:[#allocation8 + $0x180] sm:$0xff] %v4083_v12  ;;  %v4006_v15 = vmul.f32 0.6931472, %v4790_v11  ;;  %v9214_v12 = vld [vmem:[#allocation62_spill] sm:$0xff] }
 0x709   :  { %v3822_v37 = vpop.xlane.xlu0 %3821  ;;  %v3901_v11 = vsub.f32 %v9214_v12, %v7967_v49 }
 0x70a   :  { %v4084_v57 = vsub.f32 %v3892_v34, %v4006_v15  ;;  %4797 = vlog2.f32 %v3822_v37  ;;  %v9215_v37 = vld [vmem:[#allocation58_spill] sm:$0xff] }
 0x70b   :  { %v4792_v3 = vpop.eup %4791 }
 0x70c   :  { %4148 = vst [vmem:[#allocation8 + $0x188] sm:$0xff] %v4084_v57  ;;  %v4008_v39 = vmul.f32 0.6931472, %v4792_v3  ;;  %v3902_v57 = vsub.f32 %v9215_v37, %v7973_v42 }
 0x70d   :  { %v3824_v45 = vpop.xlane.xlu1 %3823 }
 0x70e   :  { %v4085_v58 = vsub.f32 %v3893_v36, %v4008_v39  ;;  %4799 = vlog2.f32 %v3824_v45  ;;  %v9216_v39 = vld [vmem:[#allocation54_spill] sm:$0xff] }
 0x70f   :  { %v4794_v52 = vpop.eup %4793  ;;  %v3903_v45 = vsub.f32 %v9216_v39, %v7979_v30  ;;  %v9219_v30 = vld [vmem:[#allocation45_spill] sm:$0xff] }
 0x710   :  { %4149 = vst [vmem:[#allocation8 + $0x190] sm:$0xff] %v4085_v58  ;;  %v4010_v47 = vmul.f32 0.6931472, %v4794_v52 }
 0x711   :  { %v3826_v23 = vpop.xlane.xlu0 %3825 }
 0x712   :  { %v4086_v53 = vsub.f32 %v3894_v8, %v4010_v47  ;;  %4801 = vlog2.f32 %v3826_v23  ;;  %v3904_v8 = vsub.f32 %v9217_v10, %v7985_v18 }
 0x713   :  { %v4796_v62 = vpop.eup %4795 }
 0x714   :  { %4150 = vst [vmem:[#allocation8 + $0x198] sm:$0xff] %v4086_v53  ;;  %v4012_v7 = vmul.f32 0.6931472, %v4796_v62  ;;  %v9218_v53 = vld [vmem:[#allocation46_spill] sm:$0xff] }
 0x715   :  { %v3828_v26 = vpop.xlane.xlu1 %3827  ;;  %v3905_v62 = vsub.f32 %v9218_v53, %v7991_v43 }
 0x716   :  { %v4087_v40 = vsub.f32 %v3895_v9, %v4012_v7  ;;  %4803 = vlog2.f32 %v3828_v26  ;;  %v3906_v26 = vsub.f32 %v9219_v30, %v7997_v19 }
 0x717   :  { %v4798_v21 = vpop.eup %4797 }
 0x718   :  { %4151 = vst [vmem:[#allocation8 + $0x1a0] sm:$0xff] %v4087_v40  ;;  %v4014_v60 = vmul.f32 0.6931472, %v4798_v21 }
 0x719   :  { %v3830_v20 = vpop.xlane.xlu0 %3829 }
 0x71a   :  { %v4088_v35 = vsub.f32 %v3896_v51, %v4014_v60  ;;  %4805 = vlog2.f32 %v3830_v20 }
 0x71b   :  { %v4800_v29 = vpop.eup %4799 }
 0x71c   :  { %4152 = vst [vmem:[#allocation8 + $0x1a8] sm:$0xff] %v4088_v35  ;;  %v4016_v2 = vmul.f32 0.6931472, %v4800_v29 }
 0x71d   :  { %v3832_v25 = vpop.xlane.xlu1 %3831 }
 0x71e   :  { %v4089_v41 = vsub.f32 %v3897_v17, %v4016_v2  ;;  %4807 = vlog2.f32 %v3832_v25 }
 0x71f   :  { %v4802_v32 = vpop.eup %4801 }
 0x720   :  { %4153 = vst [vmem:[#allocation8 + $0x1b0] sm:$0xff] %v4089_v41  ;;  %v4018_v13 = vmul.f32 0.6931472, %v4802_v32 }
 0x721   :  { %v3834_v38 = vpop.xlane.xlu0 %3833 }
 0x722   :  { %v4090_v56 = vsub.f32 %v3898_v46, %v4018_v13  ;;  %4809 = vlog2.f32 %v3834_v38 }
 0x723   :  { %v4804_v33 = vpop.eup %4803 }
 0x724   :  { %4154 = vst [vmem:[#allocation8 + $0x1b8] sm:$0xff] %v4090_v56  ;;  %v4020_v54 = vmul.f32 0.6931472, %v4804_v33 }
 0x725   :  { %v3836_v0 = vpop.xlane.xlu1 %3835 }
 0x726   :  { %v4091_v6 = vsub.f32 %v3899_v14, %v4020_v54  ;;  %4811 = vlog2.f32 %v3836_v0 }
 0x727   :  { %v4806_v22 = vpop.eup %4805 }
 0x728   :  { %4155 = vst [vmem:[#allocation8 + $0x1c0] sm:$0xff] %v4091_v6  ;;  %v4022_v63 = vmul.f32 0.6931472, %v4806_v22 }
 0x729   :  { %v3838_v16 = vpop.xlane.xlu0 %3837 }
 0x72a   :  { %v4092_v4 = vsub.f32 %v3900_v31, %v4022_v63  ;;  %4813 = vlog2.f32 %v3838_v16 }
 0x72b   :  { %v4808_v50 = vpop.eup %4807 }
 0x72c   :  { %4156 = vst [vmem:[#allocation8 + $0x1c8] sm:$0xff] %v4092_v4  ;;  %v4024_v5 = vmul.f32 0.6931472, %v4808_v50 }
 0x72d   :  { %v3840_v24 = vpop.xlane.xlu1 %3839 }
 0x72e   :  { %v4093_v34 = vsub.f32 %v3901_v11, %v4024_v5  ;;  %4815 = vlog2.f32 %v3840_v24 }
 0x72f   :  { %v4810_v15 = vpop.eup %4809 }
 0x730   :  { %4157 = vst [vmem:[#allocation8 + $0x1d0] sm:$0xff] %v4093_v34  ;;  %v4026_v59 = vmul.f32 0.6931472, %v4810_v15 }
 0x731   :  { %v3842_v3 = vpop.xlane.xlu0 %3841 }
 0x732   :  { %v4094_v44 = vsub.f32 %v3902_v57, %v4026_v59  ;;  %4817 = vlog2.f32 %v3842_v3 }
 0x733   :  { %v4812_v36 = vpop.eup %4811 }
 0x734   :  { %4158 = vst [vmem:[#allocation8 + $0x1d8] sm:$0xff] %v4094_v44  ;;  %v4028_v49 = vmul.f32 0.6931472, %v4812_v36 }
 0x736   :  { %v4095_v58 = vsub.f32 %v3903_v45, %v4028_v49 }
 0x737   :  { %v4814_v52 = vpop.eup %4813 }
 0x738   :  { %4159 = vst [vmem:[#allocation8 + $0x1e0] sm:$0xff] %v4095_v58  ;;  %v4030_v47 = vmul.f32 0.6931472, %v4814_v52 }
 0x73a   :  { %v4096_v23 = vsub.f32 %v3904_v8, %v4030_v47 }
 0x73b   :  { %v4816_v42 = vpop.eup %4815 }
 0x73c   :  { %4160 = vst [vmem:[#allocation8 + $0x1e8] sm:$0xff] %v4096_v23  ;;  %v4032_v1 = vmul.f32 0.6931472, %v4816_v42 }
 0x73e   :  { %v4097_v9 = vsub.f32 %v3905_v62, %v4032_v1 }
 0x73f   :  { %v4818_v7 = vpop.eup %4817 }
 0x740   :  { %4161 = vst [vmem:[#allocation8 + $0x1f0] sm:$0xff] %v4097_v9  ;;  %v4034_v40 = vmul.f32 0.6931472, %v4818_v7 }
 0x742   :  { %v4098_v21 = vsub.f32 %v3906_v26, %v4034_v40 }
 0x744   :  { %4162 = vst [vmem:[#allocation8 + $0x1f8] sm:$0xff] %v4098_v21 }
 0x745   :  { %4893 = shalt.err (!%p4890_p5)
}
 0x746   :  { %s4915_s30 = smov 128   ;;  %s4916_s9 = smov 8  }
 0x747   :  { %4174 = dma.vmem_to_hbm [thread:$0]  %s4169_s7, 8192, %s8106_s8, [#allocation4], %s4915_s30, %s4915_s30, %s4916_s9  }
 0x748   :  { %4906 = dma.done.wait [#allocation4], 8192  }
 0x749   :  { %4907 = vsyncadd [#allocation4], 4294959104 }
 0x74a   :  { %4178 = vsyncpa [#allocation3], 1 }
 0x74b   :  { %4179 = vsyncpa [#allocation6], 1 }
 0x74c   :  { %4180 = vsyncpa [#allocation4], 1 }

</bundles_post_ra>
